<compile_context>
chip_gen: v7x
topology: tpu7x:2x2x1
jax: 0.10.0
libtpu: 0.0.40
codegen_flags: <defaults>
</compile_context>

<pallas_src>
import functools

import numpy as np
import jax
import jax.numpy as jnp
from jax.experimental import pallas as pl
from jax.experimental.pallas import tpu as pltpu


# ---------------- parameter setup (plain numpy glue, mirrors nn.Module init) ----

def softplus_inverse(x):
    # log(exp(x) - 1), written as in the reference
    return x + np.log(-np.expm1(-x))


def softplus_np(x):
    return np.log1p(np.exp(-np.abs(x))) + np.maximum(x, 0.0)


def make_rbf_params(K=64, cutoff=10.0, dtype=np.float32):
    centers_raw = softplus_inverse(np.linspace(1.0, np.exp(-cutoff), K))
    centers = softplus_np(centers_raw).astype(dtype)      # == F.softplus(centers)
    widths_raw = np.array(
        [softplus_inverse(0.5 / (1.0 - np.exp(-cutoff) / K) ** 2)] * K
    )
    widths = softplus_np(widths_raw).astype(dtype)         # == F.softplus(widths)
    return jnp.asarray(centers), jnp.asarray(widths)


# ---------------- Pallas kernel ------------------------------------------------

def rbf_kernel(d_ref, c_ref, w_ref, o_ref, *, cutoff, pack):
    centers = c_ref[...]                 # (1, K)   resident
    neg_w = -w_ref[...]                  # (1, K)   hoisted negate (once per tile)
    inv_cutoff = 1.0 / cutoff

    cols = []
    for j in range(pack):                # static unroll over packed distances
        d = d_ref[:, j:j + 1]            # (TR, 1)
        x = d * inv_cutoff
        x3 = x * x * x
        x4 = x3 * x
        x5 = x4 * x
        cut = jnp.where(x < 1.0,
                        1.0 - 6.0 * x5 + 15.0 * x4 - 10.0 * x3,
                        jnp.zeros_like(x))          # (TR, 1)
        diff = jnp.exp(-d) - centers                # broadcast -> (TR, K)
        cols.append(cut * jnp.exp(neg_w * (diff * diff)))
    # Lane-dense store: pack*K >= 128 lanes -> unmasked vst.
    o_ref[...] = jnp.concatenate(cols, axis=-1)     # (TR, pack*K)


def rbf_layer(D, centers, widths, *, cutoff=10.0, tile_rows=1024):
    """D: [N] float32 -> out: [N, K] float32 (matches RBFLayer.forward)."""
    N = D.shape[0]
    K = centers.shape[0]

    # Pack multiple distances per output row so the output lane dim is >= 128.
    if K < 128 and 128 % K == 0:
        pack = 128 // K
    else:
        pack = 1
    Kp = pack * K

    rows = pl.cdiv(N, pack)                                # packed rows (ceil)
    tr = max(8, min(int(tile_rows), ((rows + 7) // 8) * 8))
    tr = (tr // 8) * 8                                     # sublane-aligned tile
    rows_pad = ((rows + tr - 1) // tr) * tr
    n_pad = rows_pad * pack

    d_pad = jnp.pad(D.astype(jnp.float32), (0, n_pad - N)) # padded rows sliced off below
    d2 = d_pad.reshape(rows_pad, pack)
    c2 = centers.reshape(1, K).astype(jnp.float32)
    w2 = widths.reshape(1, K).astype(jnp.float32)

    kernel = functools.partial(rbf_kernel, cutoff=float(cutoff), pack=pack)

    out = pl.pallas_call(
        kernel,
        out_shape=jax.ShapeDtypeStruct((rows_pad, Kp), jnp.float32),
        grid=(rows_pad // tr,),
        in_specs=[
            pl.BlockSpec((tr, pack), lambda i: (i, 0)),    # packed distances
            pl.BlockSpec((1, K), lambda i: (0, 0)),        # centers (resident)
            pl.BlockSpec((1, K), lambda i: (0, 0)),        # widths  (resident)
        ],
        out_specs=pl.BlockSpec((tr, Kp), lambda i: (i, 0)),
        compiler_params=pltpu.CompilerParams(
            # On v7x, (pltpu.CORE_PARALLEL,) shards the row axis across both
            # TensorCores for ~2x on this mem-bound kernel; plain "parallel" is
            # the safe default for single-TC chips (v5e/v6e).
            dimension_semantics=("parallel",),
        ),
    )(d2, c2, w2)

    # (rows_pad, pack*K) -> (rows_pad*pack, K) is a free row-major view.
    return out.reshape(rows_pad * pack, K)[:N]


# ---------------- float64 reference for sanity check ---------------------------

def rbf_ref_np(D, centers, widths, cutoff=10.0):
    d = np.asarray(D, dtype=np.float64)[:, None]
    c = np.asarray(centers, dtype=np.float64)[None, :]
    w = np.asarray(widths, dtype=np.float64)[None, :]
    x = d / cutoff
    cut = np.where(x < 1.0, 1.0 - 6.0 * x**5 + 15.0 * x**4 - 10.0 * x**3, 0.0)
    return cut * np.exp(-w * (np.exp(-d) - c) ** 2)


if __name__ == "__main__":
    K = 64
    cutoff = 10.0
    N = 1000          # non-multiple of the tile -> exercises padding / cdiv path

    centers, widths = make_rbf_params(K=K, cutoff=cutoff)

    key = jax.random.PRNGKey(0)
    # distances in [0, 12) so both branches of the cutoff function are exercised
    D = jax.random.uniform(key, (N,), dtype=jnp.float32, minval=0.0, maxval=12.0)

    out = rbf_layer(D, centers, widths, cutoff=cutoff, tile_rows=1024)
    out = jax.block_until_ready(out)

    ref = rbf_ref_np(np.asarray(D), np.asarray(centers), np.asarray(widths), cutoff=cutoff)
    # f32 vs f64: tolerance accounts for cancellation in the quintic cutoff near x=1.
    np.testing.assert_allclose(np.asarray(out), ref, rtol=1e-4, atol=2e-5)

    print("KERNEL_OK")
</pallas_src>

<mosaic_0001>
module attributes {stable_mosaic.version = 11 : i64} {
  func.func @rbf_kernel(%arg0: i32, %arg1: memref<504x2xf32, #tpu.memory_space<vmem>>, %arg2: memref<1x64xf32, #tpu.memory_space<vmem>>, %arg3: memref<1x64xf32, #tpu.memory_space<vmem>>, %arg4: memref<504x128xf32, #tpu.memory_space<vmem>>) attributes {dimension_semantics = [#tpu.dimension_semantics<parallel>], iteration_bounds = array<i64: 1>, scalar_prefetch = 0 : i64, scratch_operands = 0 : i64, tpu.core_type = #tpu.core_type<tc>, window_params = [{transform_indices = @transform_0, window_bounds = array<i64: 504, 2>}, {pipeline_mode = #tpu.pipeline_mode<synchronous>, transform_indices = @transform_1, window_bounds = array<i64: 1, 64>}, {pipeline_mode = #tpu.pipeline_mode<synchronous>, transform_indices = @transform_2, window_bounds = array<i64: 1, 64>}, {transform_indices = @transform_3, window_bounds = array<i64: 504, 128>}]} {
    %c0 = arith.constant 0 : index
    %c0_0 = arith.constant 0 : index
    %0 = vector.load %arg2[%c0, %c0_0] : memref<1x64xf32, #tpu.memory_space<vmem>>, vector<1x64xf32>
    %c0_1 = arith.constant 0 : index
    %c0_2 = arith.constant 0 : index
    %1 = vector.load %arg3[%c0_1, %c0_2] : memref<1x64xf32, #tpu.memory_space<vmem>>, vector<1x64xf32>
    %cst = arith.constant 0.000000e+00 : f32
    %2 = vector.broadcast %cst : f32 to vector<1x64xf32>
    %3 = arith.subf %2, %1 : vector<1x64xf32>
    %c0_3 = arith.constant 0 : index
    %c0_4 = arith.constant 0 : index
    %4 = vector.load %arg1[%c0_3, %c0_4] : memref<504x2xf32, #tpu.memory_space<vmem>>, vector<504x1xf32>
    %cst_5 = arith.constant 1.000000e-01 : f32
    %5 = vector.broadcast %cst_5 : f32 to vector<504x1xf32>
    %6 = arith.mulf %4, %5 : vector<504x1xf32>
    %7 = arith.mulf %6, %6 : vector<504x1xf32>
    %8 = arith.mulf %7, %6 : vector<504x1xf32>
    %9 = arith.mulf %8, %6 : vector<504x1xf32>
    %10 = arith.mulf %9, %6 : vector<504x1xf32>
    %cst_6 = arith.constant 1.000000e+00 : f32
    %11 = vector.broadcast %cst_6 : f32 to vector<504x1xf32>
    %12 = arith.cmpf olt, %6, %11 : vector<504x1xf32>
    %cst_7 = arith.constant 6.000000e+00 : f32
    %13 = vector.broadcast %cst_7 : f32 to vector<504x1xf32>
    %14 = arith.mulf %13, %10 : vector<504x1xf32>
    %cst_8 = arith.constant 1.000000e+00 : f32
    %15 = vector.broadcast %cst_8 : f32 to vector<504x1xf32>
    %16 = arith.subf %15, %14 : vector<504x1xf32>
    %cst_9 = arith.constant 1.500000e+01 : f32
    %17 = vector.broadcast %cst_9 : f32 to vector<504x1xf32>
    %18 = arith.mulf %17, %9 : vector<504x1xf32>
    %19 = arith.addf %16, %18 : vector<504x1xf32>
    %cst_10 = arith.constant 1.000000e+01 : f32
    %20 = vector.broadcast %cst_10 : f32 to vector<504x1xf32>
    %21 = arith.mulf %20, %8 : vector<504x1xf32>
    %22 = arith.subf %19, %21 : vector<504x1xf32>
    %cst_11 = arith.constant 0.000000e+00 : f32
    %23 = vector.broadcast %cst_11 : f32 to vector<504x1xf32>
    %24 = arith.select %12, %22, %23 : vector<504x1xi1>, vector<504x1xf32>
    %cst_12 = arith.constant 0.000000e+00 : f32
    %25 = vector.broadcast %cst_12 : f32 to vector<504x1xf32>
    %26 = arith.subf %25, %4 : vector<504x1xf32>
    %27 = math.exp %26 : vector<504x1xf32>
    %28 = vector.broadcast %27 : vector<504x1xf32> to vector<504x64xf32>
    %29 = vector.broadcast %0 : vector<1x64xf32> to vector<504x64xf32>
    %30 = arith.subf %28, %29 : vector<504x64xf32>
    %31 = arith.mulf %30, %30 : vector<504x64xf32>
    %32 = vector.broadcast %3 : vector<1x64xf32> to vector<504x64xf32>
    %33 = arith.mulf %32, %31 : vector<504x64xf32>
    %34 = math.exp %33 : vector<504x64xf32>
    %35 = vector.broadcast %24 : vector<504x1xf32> to vector<504x64xf32>
    %36 = arith.mulf %35, %34 : vector<504x64xf32>
    %c0_13 = arith.constant 0 : index
    %c1 = arith.constant 1 : index
    %37 = vector.load %arg1[%c0_13, %c1] : memref<504x2xf32, #tpu.memory_space<vmem>>, vector<504x1xf32>
    %cst_14 = arith.constant 1.000000e-01 : f32
    %38 = vector.broadcast %cst_14 : f32 to vector<504x1xf32>
    %39 = arith.mulf %37, %38 : vector<504x1xf32>
    %40 = arith.mulf %39, %39 : vector<504x1xf32>
    %41 = arith.mulf %40, %39 : vector<504x1xf32>
    %42 = arith.mulf %41, %39 : vector<504x1xf32>
    %43 = arith.mulf %42, %39 : vector<504x1xf32>
    %cst_15 = arith.constant 1.000000e+00 : f32
    %44 = vector.broadcast %cst_15 : f32 to vector<504x1xf32>
    %45 = arith.cmpf olt, %39, %44 : vector<504x1xf32>
    %cst_16 = arith.constant 6.000000e+00 : f32
    %46 = vector.broadcast %cst_16 : f32 to vector<504x1xf32>
    %47 = arith.mulf %46, %43 : vector<504x1xf32>
    %cst_17 = arith.constant 1.000000e+00 : f32
    %48 = vector.broadcast %cst_17 : f32 to vector<504x1xf32>
    %49 = arith.subf %48, %47 : vector<504x1xf32>
    %cst_18 = arith.constant 1.500000e+01 : f32
    %50 = vector.broadcast %cst_18 : f32 to vector<504x1xf32>
    %51 = arith.mulf %50, %42 : vector<504x1xf32>
    %52 = arith.addf %49, %51 : vector<504x1xf32>
    %cst_19 = arith.constant 1.000000e+01 : f32
    %53 = vector.broadcast %cst_19 : f32 to vector<504x1xf32>
    %54 = arith.mulf %53, %41 : vector<504x1xf32>
    %55 = arith.subf %52, %54 : vector<504x1xf32>
    %cst_20 = arith.constant 0.000000e+00 : f32
    %56 = vector.broadcast %cst_20 : f32 to vector<504x1xf32>
    %57 = arith.select %45, %55, %56 : vector<504x1xi1>, vector<504x1xf32>
    %cst_21 = arith.constant 0.000000e+00 : f32
    %58 = vector.broadcast %cst_21 : f32 to vector<504x1xf32>
    %59 = arith.subf %58, %37 : vector<504x1xf32>
    %60 = math.exp %59 : vector<504x1xf32>
    %61 = vector.broadcast %60 : vector<504x1xf32> to vector<504x64xf32>
    %62 = vector.broadcast %0 : vector<1x64xf32> to vector<504x64xf32>
    %63 = arith.subf %61, %62 : vector<504x64xf32>
    %64 = arith.mulf %63, %63 : vector<504x64xf32>
    %65 = vector.broadcast %3 : vector<1x64xf32> to vector<504x64xf32>
    %66 = arith.mulf %65, %64 : vector<504x64xf32>
    %67 = math.exp %66 : vector<504x64xf32>
    %68 = vector.broadcast %57 : vector<504x1xf32> to vector<504x64xf32>
    %69 = arith.mulf %68, %67 : vector<504x64xf32>
    %70 = tpu.concatenate %36, %69 in 1 : vector<504x64xf32>, vector<504x64xf32> -> vector<504x128xf32>
    %c0_22 = arith.constant 0 : index
    %c0_23 = arith.constant 0 : index
    %71 = vector.load %arg4[%c0_22, %c0_23] : memref<504x128xf32, #tpu.memory_space<vmem>>, vector<504x128xf32>
    tpu.vector_store %arg4[%c0_22, %c0_23], %70 {strides = array<i32>} : memref<504x128xf32, #tpu.memory_space<vmem>>, vector<504x128xf32>,
    return
  }
  func.func @transform_0(%arg0: i32) -> (i32, i32) {
    %c0_i32 = arith.constant 0 : i32
    %c0_i32_0 = arith.constant 0 : i32
    return %arg0, %c0_i32 : i32, i32
  }
  func.func @transform_1(%arg0: i32) -> (i32, i32) {
    %c0_i32 = arith.constant 0 : i32
    %c0_i32_0 = arith.constant 0 : i32
    %c0_i32_1 = arith.constant 0 : i32
    return %c0_i32, %c0_i32_0 : i32, i32
  }
  func.func @transform_2(%arg0: i32) -> (i32, i32) {
    %c0_i32 = arith.constant 0 : i32
    %c0_i32_0 = arith.constant 0 : i32
    %c0_i32_1 = arith.constant 0 : i32
    return %c0_i32, %c0_i32_0 : i32, i32
  }
  func.func @transform_3(%arg0: i32) -> (i32, i32) {
    %c0_i32 = arith.constant 0 : i32
    %c0_i32_0 = arith.constant 0 : i32
    return %arg0, %c0_i32 : i32, i32
  }
}

</mosaic_0001>

<bundles_post_ra>
// kernel: tpu_custom_call.1
= control target key start
LH: loop header
LB: loop body
LE: loop exit
PB: predicated region body
PF: predicated region fallthrough
CT: control target
= control target key end

     0   :  { %v3839_v3 = vmov 0   ;;  %s6533_s0 = inlined_call_operand.vmem [shape: f32[504,2], index: 0, kind: input, shape index: {}]   ;;  %s6534_s1 = inlined_call_operand.vmem [shape: f32[1,64], index: 1, kind: input, shape index: {}]   ;;  %s6535_s2 = inlined_call_operand.vmem [shape: f32[1,64], index: 2, kind: input, shape index: {}]   ;;  %s6536_s3 = inlined_call_operand.hbm [shape: f32[504,128], index: 3, kind: output, shape index: {}]  }
   0x1   :  { %v3868_v0 = vld [vmem:[%s6533_s0 + $0x10] sm:$0xff]  ;;  %v3873_v1 = vld [vmem:[%s6533_s0] sm:$0xff]  ;;  %v3878_v2 = vld [vmem:[%s6533_s0 + $0x18] sm:$0xff]  ;;  %3394 = vset.pattern.permute.xlu1 %v3839_v3  ;;  %3393 = vset.pattern.permute.xlu0 %v3839_v3 }
   0x2   :  { %v902_v4 = vsub.f32 0.0, %v3868_v0  ;;  %v900_v5 = vsub.f32 0.0, %v3873_v1  ;;  %v903_v6 = vsub.f32 0.0, %v3878_v2  ;;  %v3886_v7 = vld [vmem:[%s6533_s0 + $0x8] sm:$0xff]  ;;  %v3896_v9 = vld [vmem:[%s6533_s0 + $0x20] sm:$0xff]  ;;  %v3904_v16 = vld [vmem:[%s6533_s0 + $0x38] sm:$0xff] }
   0x3   :  { %v3891_v8 = vld [vmem:[%s6533_s0 + $0x28] sm:$0xff]  ;;  %v901_v12 = vsub.f32 0.0, %v3886_v7  ;;  %v904_v15 = vsub.f32 0.0, %v3896_v9  ;;  %v3909_v18 = vld [vmem:[%s6533_s0 + $0x30] sm:$0xff]  ;;  %v907_v20 = vsub.f32 0.0, %v3904_v16  ;;  %v3921_v24 = vld [vmem:[%s6533_s0 + $0x40] sm:$0xff] }
   0x4   :  { %v967_v10 = vmul.f32 1.442695, %v902_v4  ;;  %v963_v11 = vmul.f32 1.442695, %v900_v5  ;;  %v905_v13 = vsub.f32 0.0, %v3891_v8  ;;  %v906_v22 = vsub.f32 0.0, %v3909_v18 }
   0x5   :  { %v969_v14 = vmul.f32 1.442695, %v903_v6  ;;  %v965_v17 = vmul.f32 1.442695, %v901_v12  ;;  %v971_v21 = vmul.f32 1.442695, %v904_v15 }
   0x6   :  { %3397 = vpow2.f32 %v967_v10  ;;  %v973_v19 = vmul.f32 1.442695, %v905_v13  ;;  %v3916_v23 = vld [vmem:[%s6533_s0 + $0x48] sm:$0xff]  ;;  %v977_v25 = vmul.f32 1.442695, %v907_v20  ;;  %v908_v28 = vsub.f32 0.0, %v3921_v24 }
   0x7   :  { %3399 = vpow2.f32 %v963_v11  ;;  %v909_v26 = vsub.f32 0.0, %v3916_v23  ;;  %v975_v27 = vmul.f32 1.442695, %v906_v22  ;;  %v3928_v29 = vld [vmem:[%s6533_s0 + $0x58] sm:$0xff]  ;;  %v3933_v30 = vld [vmem:[%s6533_s0 + $0x50] sm:$0xff]  ;;  %v3945_v37 = vld [vmem:[%s6533_s0 + $0x68] sm:$0xff] }
   0x8   :  { %3401 = vpow2.f32 %v969_v14  ;;  %v911_v33 = vsub.f32 0.0, %v3928_v29  ;;  %v979_v35 = vmul.f32 1.442695, %v908_v28  ;;  %v910_v36 = vsub.f32 0.0, %v3933_v30  ;;  %v3953_v39 = vld [vmem:[%s6533_s0 + $0x60] sm:$0xff]  ;;  %v3963_v45 = vld [vmem:[%s6533_s0 + $0x78] sm:$0xff] }
   0x9   :  { %3403 = vpow2.f32 %v965_v17  ;;  %v981_v32 = vmul.f32 1.442695, %v909_v26  ;;  %v913_v42 = vsub.f32 0.0, %v3945_v37  ;;  %v912_v44 = vsub.f32 0.0, %v3953_v39  ;;  %v3971_v47 = vld [vmem:[%s6533_s0 + $0x70] sm:$0xff]  ;;  %v3981_v53 = vld [vmem:[%s6533_s0 + $0x88] sm:$0xff] }
   0xa   :  { %3405 = vpow2.f32 %v973_v19  ;;  %v985_v41 = vmul.f32 1.442695, %v911_v33  ;;  %v983_v43 = vmul.f32 1.442695, %v910_v36  ;;  %v915_v50 = vsub.f32 0.0, %v3963_v45  ;;  %v3989_v55 = vld [vmem:[%s6533_s0 + $0x80] sm:$0xff] }
   0xb   :  { %3407 = vpow2.f32 %v971_v21  ;;  %v989_v49 = vmul.f32 1.442695, %v913_v42  ;;  %v987_v51 = vmul.f32 1.442695, %v912_v44  ;;  %v914_v52 = vsub.f32 0.0, %v3971_v47  ;;  %v3999_v61 = vld [vmem:[%s6533_s0 + $0x98] sm:$0xff] }
   0xc   :  { %3409 = vpow2.f32 %v977_v25  ;;  %v993_v57 = vmul.f32 1.442695, %v915_v50  ;;  %v917_v58 = vsub.f32 0.0, %v3981_v53  ;;  %v916_v60 = vsub.f32 0.0, %v3989_v55  ;;  %v4007_v63 = vld [vmem:[%s6533_s0 + $0x90] sm:$0xff]  ;;  %v4017_v11 = vld [vmem:[%s6533_s0 + $0xa8] sm:$0xff] }
   0xd   :  { %3411 = vpow2.f32 %v975_v27  ;;  %v991_v59 = vmul.f32 1.442695, %v914_v52  ;;  %v919_v5 = vsub.f32 0.0, %v3999_v61  ;;  %v918_v10 = vsub.f32 0.0, %v4007_v63  ;;  %v4025_v13 = vld [vmem:[%s6533_s0 + $0xa0] sm:$0xff]  ;;  %v4035_v21 = vld [vmem:[%s6533_s0 + $0xb8] sm:$0xff] }
   0xe   :  { %3413 = vpow2.f32 %v981_v32  ;;  %v997_v4 = vmul.f32 1.442695, %v917_v58  ;;  %v995_v6 = vmul.f32 1.442695, %v916_v60  ;;  %v921_v17 = vsub.f32 0.0, %v4017_v11  ;;  %6637 = vst [vmem:[#allocation17_spill] sm:$0xff] %v4035_v21 }
   0xf   :  { %3415 = vpow2.f32 %v979_v35  ;;  %v1001_v15 = vmul.f32 1.442695, %v919_v5  ;;  %v999_v19 = vmul.f32 1.442695, %v918_v10  ;;  %v920_v20 = vsub.f32 0.0, %v4025_v13  ;;  %v4043_v25 = vld [vmem:[%s6533_s0 + $0xb0] sm:$0xff] }
  0x10   :  { %v3935_v31 = vpop.eup %3397  ;;  %3417 = vpow2.f32 %v985_v41  ;;  %v1005_v27 = vmul.f32 1.442695, %v921_v17  ;;  %v923_v28 = vsub.f32 0.0, %v4035_v21  ;;  %v922_v33 = vsub.f32 0.0, %v4043_v25  ;;  %v43_v35 = vld [vmem:[%s6533_s0 + $0xc8] sm:$0xff]  ;;  %v4059_v41 = vld [vmem:[%s6533_s0 + $0xc0] sm:$0xff] }
  0x11   :  { %6625 = vst [vmem:[#allocation5_spill] sm:$0xff] %v3935_v31  ;;  %v3938_v34 = vpop.eup %3399  ;;  %1101 = vperm.xlu1 %3394, %v3935_v31   ;;  %3419 = vpow2.f32 %v983_v43  ;;  %v1003_v32 = vmul.f32 1.442695, %v920_v20  ;;  %6641 = vst [vmem:[#allocation21_spill] sm:$0xff] %v4059_v41  ;;  %v925_v44 = vsub.f32 0.0, %v43_v35  ;;  %v924_v50 = vsub.f32 0.0, %v4059_v41 }
  0x12   :  { %6626 = vst [vmem:[#allocation6_spill] sm:$0xff] %v3938_v34  ;;  %v3947_v38 = vpop.eup %3401  ;;  %1091 = vperm.xlu0 %3393, %v3938_v34   ;;  %3421 = vpow2.f32 %v989_v49  ;;  %v1009_v43 = vmul.f32 1.442695, %v923_v28  ;;  %v1007_v49 = vmul.f32 1.442695, %v922_v33 }
  0x13   :  { %6627 = vst [vmem:[#allocation7_spill] sm:$0xff] %v3947_v38  ;;  %v3955_v40 = vpop.eup %3403  ;;  %3423 = vpow2.f32 %v987_v51  ;;  %v45_v51 = vld [vmem:[%s6533_s0 + $0xd8] sm:$0xff] }
  0x14   :  { %6628 = vst [vmem:[#allocation8_spill] sm:$0xff] %v3955_v40  ;;  %v3965_v46 = vpop.eup %3405  ;;  %3425 = vpow2.f32 %v993_v57 }
  0x15   :  { %1106 = vperm.xlu1 %3394, %v3947_v38   ;;  %6629 = vst [vmem:[#allocation9_spill] sm:$0xff] %v3965_v46  ;;  %v3973_v48 = vpop.eup %3407  ;;  %3427 = vpow2.f32 %v991_v59 }
  0x16   :  { %1096 = vperm.xlu0 %3393, %v3955_v40   ;;  %6630 = vst [vmem:[#allocation10_spill] sm:$0xff] %v3973_v48  ;;  %v3983_v54 = vpop.eup %3409  ;;  %3429 = vpow2.f32 %v997_v4 }
  0x17   :  { %6631 = vst [vmem:[#allocation11_spill] sm:$0xff] %v3983_v54  ;;  %v3991_v56 = vpop.eup %3411  ;;  %3431 = vpow2.f32 %v995_v6 }
  0x18   :  { %6632 = vst [vmem:[#allocation12_spill] sm:$0xff] %v3991_v56  ;;  %v4001_v62 = vpop.eup %3413  ;;  %3433 = vpow2.f32 %v1001_v15 }
  0x19   :  { %1116 = vperm.xlu1 %3394, %v3965_v46   ;;  %6633 = vst [vmem:[#allocation13_spill] sm:$0xff] %v4001_v62  ;;  %v4009_v3 = vpop.eup %3415  ;;  %3435 = vpow2.f32 %v999_v19 }
  0x1a   :  { %1111 = vperm.xlu0 %3393, %v3973_v48   ;;  %6634 = vst [vmem:[#allocation14_spill] sm:$0xff] %v4009_v3  ;;  %v4019_v12 = vpop.eup %3417  ;;  %3437 = vpow2.f32 %v1005_v27 }
  0x1b   :  { %6635 = vst [vmem:[#allocation15_spill] sm:$0xff] %v4019_v12  ;;  %v4027_v14 = vpop.eup %3419  ;;  %3439 = vpow2.f32 %v1003_v32 }
  0x1c   :  { %6636 = vst [vmem:[#allocation16_spill] sm:$0xff] %v4027_v14  ;;  %v4037_v22 = vpop.eup %3421 }
  0x1d   :  { %1126 = vperm.xlu1 %3394, %v3983_v54   ;;  %6638 = vst [vmem:[#allocation18_spill] sm:$0xff] %v4037_v22  ;;  %v4045_v26 = vpop.eup %3423 }
  0x1e   :  { %1121 = vperm.xlu0 %3393, %v3991_v56   ;;  %6639 = vst [vmem:[#allocation19_spill] sm:$0xff] %v4045_v26  ;;  %v4053_v36 = vpop.eup %3425 }
  0x1f   :  { %6640 = vst [vmem:[#allocation20_spill] sm:$0xff] %v4053_v36  ;;  %v4061_v42 = vpop.eup %3427 }
  0x20   :  { %6642 = vst [vmem:[#allocation22_spill] sm:$0xff] %v4061_v42 }
  0x21   :  { %1136 = vperm.xlu1 %3394, %v4001_v62  }
  0x22   :  { %1131 = vperm.xlu0 %3393, %v4009_v3  }
  0x25   :  { %1146 = vperm.xlu1 %3394, %v4019_v12  }
  0x26   :  { %1141 = vperm.xlu0 %3393, %v4027_v14  }
  0x29   :  { %1156 = vperm.xlu1 %3394, %v4037_v22  }
  0x2a   :  { %1151 = vperm.xlu0 %3393, %v4045_v26  }
  0x2d   :  { %1166 = vperm.xlu1 %3394, %v4053_v36  }
  0x2e   :  { %8 = vsyncpa [#allocation3], 0  ;;  %v4068_v52 = vpop.eup %3429  ;;  %1161 = vperm.xlu0 %3393, %v4061_v42   ;;  %v44_v57 = vld [vmem:[%s6533_s0 + $0xd0] sm:$0xff]  ;;  %3441 = vpow2.f32 %v1009_v43  ;;  %v1013_v59 = vmul.f32 1.442695, %v925_v44  ;;  %v927_v60 = vsub.f32 0.0, %v45_v51 }
  0x2f   :  { %6643 = vst [vmem:[#allocation23_spill] sm:$0xff] %v4068_v52  ;;  %v4074_v58 = vpop.eup %3431  ;;  %3443 = vpow2.f32 %v1007_v49  ;;  %v1011_v4 = vmul.f32 1.442695, %v924_v50  ;;  %v926_v5 = vsub.f32 0.0, %v44_v57  ;;  %v47_v6 = vld [vmem:[%s6533_s0 + $0xe8] sm:$0xff]  ;;  %v46_v15 = vld [vmem:[%s6533_s0 + $0xe0] sm:$0xff] }
  0x30   :  { %6644 = vst [vmem:[#allocation24_spill] sm:$0xff] %v4074_v58  ;;  %v4080_v10 = vpop.eup %3433  ;;  %3445 = vpow2.f32 %v1013_v59  ;;  %v1017_v19 = vmul.f32 1.442695, %v927_v60  ;;  %v929_v20 = vsub.f32 0.0, %v47_v6  ;;  %v928_v28 = vsub.f32 0.0, %v46_v15  ;;  %v49_v32 = vld [vmem:[%s6533_s0 + $0xf8] sm:$0xff] }
  0x31   :  { %1176 = vperm.xlu1 %3394, %v4068_v52   ;;  %6645 = vst [vmem:[#allocation25_spill] sm:$0xff] %v4080_v10  ;;  %v4086_v17 = vpop.eup %3435  ;;  %3447 = vpow2.f32 %v1011_v4  ;;  %v1015_v27 = vmul.f32 1.442695, %v926_v5  ;;  %v48_v35 = vld [vmem:[%s6533_s0 + $0xf0] sm:$0xff]  ;;  %v931_v49 = vsub.f32 0.0, %v49_v32  ;;  %v51_v57 = vld [vmem:[%s6533_s0 + $0x108] sm:$0xff] }
  0x32   :  { %1171 = vperm.xlu0 %3393, %v4074_v58   ;;  %6646 = vst [vmem:[#allocation26_spill] sm:$0xff] %v4086_v17  ;;  %v4092_v33 = vpop.eup %3437  ;;  %3449 = vpow2.f32 %v1017_v19  ;;  %v1021_v44 = vmul.f32 1.442695, %v929_v20  ;;  %v1019_v50 = vmul.f32 1.442695, %v928_v28  ;;  %v930_v51 = vsub.f32 0.0, %v48_v35 }
  0x33   :  { %6647 = vst [vmem:[#allocation27_spill] sm:$0xff] %v4092_v33  ;;  %v4098_v43 = vpop.eup %3439  ;;  %3451 = vpow2.f32 %v1015_v27  ;;  %v50_v60 = vld [vmem:[%s6533_s0 + $0x100] sm:$0xff]  ;;  %v1025_v5 = vmul.f32 1.442695, %v931_v49  ;;  %v933_v6 = vsub.f32 0.0, %v51_v57  ;;  %v53_v20 = vld [vmem:[%s6533_s0 + $0x118] sm:$0xff] }
  0x34   :  { %6648 = vst [vmem:[#allocation28_spill] sm:$0xff] %v4098_v43  ;;  %3453 = vpow2.f32 %v1021_v44  ;;  %v1023_v15 = vmul.f32 1.442695, %v930_v51  ;;  %v932_v19 = vsub.f32 0.0, %v50_v60  ;;  %v52_v28 = vld [vmem:[%s6533_s0 + $0x110] sm:$0xff]  ;;  %v55_v35 = vld [vmem:[%s6533_s0 + $0x128] sm:$0xff] }
  0x35   :  { %1186 = vperm.xlu1 %3394, %v4080_v10   ;;  %3455 = vpow2.f32 %v1019_v50  ;;  %v1029_v44 = vmul.f32 1.442695, %v933_v6  ;;  %v935_v49 = vsub.f32 0.0, %v53_v20  ;;  %v54_v50 = vld [vmem:[%s6533_s0 + $0x120] sm:$0xff]  ;;  %v934_v57 = vsub.f32 0.0, %v52_v28  ;;  %v57_v60 = vld [vmem:[%s6533_s0 + $0x138] sm:$0xff] }
  0x36   :  { %1181 = vperm.xlu0 %3393, %v4086_v17   ;;  %3457 = vpow2.f32 %v1025_v5  ;;  %v1027_v51 = vmul.f32 1.442695, %v932_v19  ;;  %v937_v5 = vsub.f32 0.0, %v55_v35  ;;  %v56_v6 = vld [vmem:[%s6533_s0 + $0x130] sm:$0xff]  ;;  %v59_v20 = vld [vmem:[%s6533_s0 + $0x148] sm:$0xff]  ;;  %v936_v28 = vsub.f32 0.0, %v54_v50 }
  0x37   :  { %3459 = vpow2.f32 %v1023_v15  ;;  %v4146_v19 = vmul.f32 0.1, %v3868_v0  ;;  %v4152_v35 = vmul.f32 0.1, %v3873_v1  ;;  %v1031_v0 = vmul.f32 1.442695, %v934_v57 }
  0x38   :  { %v4104_v59 = vpop.eup %3441  ;;  %3461 = vpow2.f32 %v1029_v44  ;;  %v941_v50 = vsub.f32 0.0, %v59_v20  ;;  %v60_v17 = vld [vmem:[%s6533_s0 + $0x150] sm:$0xff]  ;;  %v1037_v1 = vmul.f32 1.442695, %v937_v5  ;;  %v1035_v57 = vmul.f32 1.442695, %v936_v28 }
  0x39   :  { %1196 = vperm.xlu1 %3394, %v4092_v33   ;;  %6649 = vst [vmem:[#allocation29_spill] sm:$0xff] %v4104_v59  ;;  %v4110_v4 = vpop.eup %3443  ;;  %3463 = vpow2.f32 %v1027_v51  ;;  %v938_v33 = vsub.f32 0.0, %v56_v6  ;;  %v62_v20 = vld [vmem:[%s6533_s0 + $0x160] sm:$0xff]  ;;  %v65_v5 = vld [vmem:[%s6533_s0 + $0x178] sm:$0xff]  ;;  %v67_v28 = vld [vmem:[%s6533_s0 + $0x188] sm:$0xff]  ;;  %vm396_vm0 = vcmp.lt.f32.partialorder %v4152_v35, 1.0 }
  0x3a   :  { %1191 = vperm.xlu0 %3393, %v4098_v43   ;;  %6650 = vst [vmem:[#allocation30_spill] sm:$0xff] %v4110_v4  ;;  %v4116_v27 = vpop.eup %3445  ;;  %v61_v43 = vld [vmem:[%s6533_s0 + $0x158] sm:$0xff]  ;;  %v1045_v58 = vmul.f32 1.442695, %v941_v50  ;;  %v944_v42 = vsub.f32 0.0, %v62_v20  ;;  %v947_v36 = vsub.f32 0.0, %v65_v5 }
  0x3b   :  { %6651 = vst [vmem:[#allocation31_spill] sm:$0xff] %v4116_v27  ;;  %v4122_v32 = vpop.eup %3447  ;;  %v943_v6 = vsub.f32 0.0, %v61_v43  ;;  %v144_v43 = vmul.f32 %v4152_v35, %v4152_v35  ;;  %v69_v26 = vld [vmem:[%s6533_s0 + $0x198] sm:$0xff]  ;;  %v949_v50 = vsub.f32 0.0, %v67_v28  ;;  %v71_v5 = vld [vmem:[%s6533_s0 + $0x1a8] sm:$0xff]  ;;  %vm398_vm1 = vcmp.lt.f32.partialorder %v4146_v19, 1.0 }
  0x3c   :  { %6652 = vst [vmem:[#allocation32_spill] sm:$0xff] %v4122_v32  ;;  %v951_v28 = vsub.f32 0.0, %v69_v26  ;;  %v4225_v22 = vmul.f32 1.442695, %v944_v42  ;;  %v73_v26 = vld [vmem:[%s6533_s0 + $0x1b8] sm:$0xff]  ;;  %v79_v3 = vld [vmem:[%s6533_s0 + $0x1e8] sm:$0xff] }
  0x3d   :  { %1206 = vperm.xlu1 %3394, %v4104_v59   ;;  %v939_v59 = vsub.f32 0.0, %v57_v60  ;;  %v4168_v60 = vmul.f32 0.1, %v3878_v2  ;;  %v64_v2 = vld [vmem:[%s6533_s0 + $0x170] sm:$0xff]  ;;  %v4236_v14 = vmul.f32 1.442695, %v949_v50 }
  0x3e   :  { %1201 = vperm.xlu0 %3393, %v4110_v4   ;;  %v4134_v4 = vpop.eup %3449  ;;  %v955_v50 = vsub.f32 0.0, %v73_v26  ;;  %v4294_v56 = vmul.f32 0.1, %v3891_v8  ;;  %v961_v38 = vsub.f32 0.0, %v79_v3 }
  0x3f   :  { %6653 = vst [vmem:[#allocation33_spill] sm:$0xff] %v4134_v4  ;;  %v4143_v15 = vpop.eup %3451  ;;  %vm399_vm3 = vcmp.lt.f32.partialorder %v4168_v60, 1.0 }
  0x40   :  { %6654 = vst [vmem:[#allocation34_spill] sm:$0xff] %v4143_v15  ;;  %v4161_v10 = vpop.eup %3453  ;;  %v4297_v54 = vmul.f32 1.442695, %v955_v50  ;;  %vm401_vm5 = vcmp.lt.f32.partialorder %v4294_v56, 1.0 }
  0x41   :  { %1216 = vperm.xlu1 %3394, %v4116_v27   ;;  %v58_v27 = vld [vmem:[%s6533_s0 + $0x140] sm:$0xff]  ;;  %6655 = vst [vmem:[#allocation35_spill] sm:$0xff] %v4161_v10  ;;  %v4170_v51 = vpop.eup %3455 }
  0x42   :  { %1211 = vperm.xlu0 %3393, %v4122_v32   ;;  %v1033_v32 = vmul.f32 1.442695, %v935_v49  ;;  %v940_v44 = vsub.f32 0.0, %v58_v27  ;;  %v63_v49 = vld [vmem:[%s6533_s0 + $0x168] sm:$0xff]  ;;  %6656 = vst [vmem:[#allocation36_spill] sm:$0xff] %v4170_v51 }
  0x43   :  { %v1041_v27 = vmul.f32 1.442695, %v939_v59  ;;  %v945_v52 = vsub.f32 0.0, %v63_v49  ;;  %v4190_v59 = vpop.eup %3457  ;;  %v68_v49 = vld [vmem:[%s6533_s0 + $0x190] sm:$0xff] }
  0x44   :  { %3465 = vpow2.f32 %v1033_v32  ;;  %6657 = vst [vmem:[#allocation37_spill] sm:$0xff] %v4190_v59  ;;  %v1043_v32 = vmul.f32 1.442695, %v940_v44 }
  0x45   :  { %1226 = vperm.xlu1 %3394, %v4134_v4   ;;  %3467 = vpow2.f32 %v1031_v0  ;;  %v1039_v4 = vmul.f32 1.442695, %v938_v33  ;;  %v4198_v33 = vmul.f32 1.442695, %v943_v6  ;;  %v946_v0 = vsub.f32 0.0, %v64_v2 }
  0x46   :  { %1221 = vperm.xlu0 %3393, %v4143_v15   ;;  %v942_v15 = vsub.f32 0.0, %v60_v17  ;;  %v66_v17 = vld [vmem:[%s6533_s0 + $0x180] sm:$0xff]  ;;  %3469 = vpow2.f32 %v1037_v1  ;;  %v4211_v6 = vmul.f32 0.1, %v3886_v7  ;;  %v4214_v2 = vmul.f32 1.442695, %v945_v52 }
  0x47   :  { %v948_v20 = vsub.f32 0.0, %v66_v17  ;;  %3471 = vpow2.f32 %v1035_v57  ;;  %v70_v1 = vld [vmem:[%s6533_s0 + $0x1a0] sm:$0xff]  ;;  %v4227_v7 = vmul.f32 1.442695, %v947_v36  ;;  %v4234_v57 = vmul.f32 1.442695, %v946_v0 }
  0x48   :  { %v4205_v44 = vmul.f32 1.442695, %v942_v15  ;;  %v4220_v15 = vmul.f32 %v144_v43, %v4152_v35  ;;  %v953_v43 = vsub.f32 0.0, %v71_v5  ;;  %3473 = vpow2.f32 %v1041_v27  ;;  %v75_v5 = vld [vmem:[%s6533_s0 + $0x1c8] sm:$0xff] }
  0x49   :  { %1236 = vperm.xlu1 %3394, %v4161_v10   ;;  %v4196_v10 = vpop.eup %3459  ;;  %v4241_v42 = vmul.f32 1.442695, %v948_v20  ;;  %v952_v36 = vsub.f32 0.0, %v70_v1  ;;  %3475 = vpow2.f32 %v1039_v4  ;;  %v4249_v0 = vmul.f32 1.442695, %v951_v28 }
  0x4a   :  { %1231 = vperm.xlu0 %3393, %v4170_v51   ;;  %6658 = vst [vmem:[#allocation38_spill] sm:$0xff] %v4196_v10  ;;  %v146_v51 = vmul.f32 %v4146_v19, %v4146_v19  ;;  %v4222_v17 = vpop.eup %3461  ;;  %v4264_v1 = vmul.f32 0.1, %v3896_v9  ;;  %v4268_v28 = vmul.f32 1.442695, %v953_v43  ;;  %v147_v43 = vmul.f32 %v4168_v60, %v4168_v60 }
  0x4b   :  { %6659 = vst [vmem:[#allocation39_spill] sm:$0xff] %v4222_v17  ;;  %v4232_v52 = vpop.eup %3463  ;;  %3477 = vpow2.f32 %v1045_v58  ;;  %v957_v48 = vsub.f32 0.0, %v75_v5  ;;  %v78_v58 = vld [vmem:[%s6533_s0 + $0x1e0] sm:$0xff]  ;;  %vm397_vm2 = vcmp.lt.f32.partialorder %v4211_v6, 1.0 }
  0x4c   :  { %6660 = vst [vmem:[#allocation40_spill] sm:$0xff] %v4232_v52  ;;  %v4239_v12 = vmul.f32 %v146_v51, %v4146_v19  ;;  %v4253_v51 = vmul.f32 %v4220_v15, %v4152_v35  ;;  %3479 = vpow2.f32 %v1043_v32  ;;  %v80_v32 = vld [vmem:[%s6533_s0 + $0x1f0] sm:$0xff]  ;;  %v148_v50 = vmul.f32 %v4264_v1, %v4264_v1 }
  0x4d   :  { %1246 = vperm.xlu1 %3394, %v4190_v59   ;;  %v950_v59 = vsub.f32 0.0, %v68_v49  ;;  %v72_v49 = vld [vmem:[%s6533_s0 + $0x1b0] sm:$0xff]  ;;  %3481 = vpow2.f32 %v4198_v33  ;;  %v4328_v3 = vmul.f32 1.442695, %v957_v48  ;;  %v4345_v48 = vmul.f32 1.442695, %v961_v38 }
  0x4e   :  { %1241 = vperm.xlu0 %3393, %v4196_v10   ;;  %v145_v10 = vmul.f32 %v4211_v6, %v4211_v6  ;;  %v4255_v27 = vpop.eup %3465  ;;  %v954_v26 = vsub.f32 0.0, %v72_v49  ;;  %v4281_v9 = vmul.f32 %v4239_v12, %v4146_v19  ;;  %v4285_v49 = vmul.f32 1.442695, %v952_v36 }
  0x4f   :  { %6661 = vst [vmem:[#allocation41_spill] sm:$0xff] %v4255_v27  ;;  %v4258_v20 = vmul.f32 1.442695, %v950_v59  ;;  %v4266_v4 = vpop.eup %3467  ;;  %v77_v59 = vld [vmem:[%s6533_s0 + $0x1d8] sm:$0xff]  ;;  %v333_v36 = vmul.f32 %v4253_v51, %v4152_v35  ;;  %3483 = vpow2.f32 %v4205_v44  ;;  %v4340_v21 = vmul.f32 %v148_v50, %v4264_v1 }
  0x50   :  { %6662 = vst [vmem:[#allocation42_spill] sm:$0xff] %v4266_v4  ;;  %v4291_v62 = vmul.f32 %v145_v10, %v4211_v6  ;;  %v4304_v46 = vpop.eup %3469  ;;  %v959_v8 = vsub.f32 0.0, %v77_v59  ;;  %v335_v40 = vmul.f32 %v4281_v9, %v4146_v19  ;;  %v149_v59 = vmul.f32 %v4294_v56, %v4294_v56 }
  0x51   :  { %1256 = vperm.xlu1 %3394, %v4222_v17   ;;  %v74_v17 = vld [vmem:[%s6533_s0 + $0x1c0] sm:$0xff]  ;;  %6663 = vst [vmem:[#allocation43_spill] sm:$0xff] %v4304_v46  ;;  %v4312_v5 = vpop.eup %3471  ;;  %v459_v34 = vmul.f32 6.0, %v333_v36  ;;  %3485 = vpow2.f32 %v4214_v2  ;;  %v274_v50 = vmul.f32 %v4340_v21, %v4264_v1  ;;  %vm400_vm4 = vcmp.lt.f32.partialorder %v4264_v1, 1.0 }
  0x52   :  { %1251 = vperm.xlu0 %3393, %v4232_v52   ;;  %v76_v52 = vld [vmem:[%s6533_s0 + $0x1d0] sm:$0xff]  ;;  %v956_v10 = vsub.f32 0.0, %v74_v17  ;;  %6664 = vst [vmem:[#allocation44_spill] sm:$0xff] %v4312_v5  ;;  %v960_v17 = vsub.f32 0.0, %v78_v58  ;;  %v4330_v41 = vpop.eup %3473  ;;  %v461_v44 = vmul.f32 6.0, %v335_v40  ;;  %3487 = vpow2.f32 %v4225_v22 }
  0x53   :  { %v958_v31 = vsub.f32 0.0, %v76_v52  ;;  %v271_v52 = vmul.f32 %v4291_v62, %v4211_v6  ;;  %6665 = vst [vmem:[#allocation45_spill] sm:$0xff] %v4330_v41  ;;  %3489 = vpow2.f32 %v4227_v7  ;;  %v522_v38 = vsub.f32 1.0, %v459_v34 }
  0x54   :  { %v4333_v33 = vmul.f32 1.442695, %v956_v10  ;;  %v4350_v10 = vmul.f32 1.442695, %v960_v17  ;;  %v585_v40 = vmul.f32 15.0, %v4253_v51  ;;  %3491 = vpow2.f32 %v4234_v57 }
  0x55   :  { %1266 = vperm.xlu1 %3394, %v4255_v27   ;;  %v4314_v27 = vmul.f32 1.442695, %v954_v26  ;;  %v962_v26 = vsub.f32 0.0, %v80_v32  ;;  %v4337_v58 = vmul.f32 1.442695, %v958_v31  ;;  %v334_v31 = vmul.f32 %v271_v52, %v4211_v6 }
  0x56   :  { %1261 = vperm.xlu0 %3393, %v4266_v4   ;;  %v4319_v4 = vmul.f32 %v147_v43, %v4168_v60  ;;  %v4335_v43 = vmul.f32 1.442695, %v959_v8  ;;  %v4354_v8 = vmul.f32 %v149_v59, %v4294_v56  ;;  %v711_v22 = vmul.f32 10.0, %v4220_v15 }
  0x57   :  { %v4358_v2 = vmul.f32 1.442695, %v962_v26  ;;  %v4370_v7 = vmul.f32 0.1, %v3909_v18  ;;  %3493 = vpow2.f32 %v4236_v14  ;;  %v524_v34 = vsub.f32 1.0, %v461_v44 }
  0x58   :  { %v273_v36 = vmul.f32 %v4319_v4, %v4168_v60  ;;  %v587_v51 = vmul.f32 15.0, %v4281_v9  ;;  %3495 = vpow2.f32 %v4241_v42  ;;  %v460_v57 = vmul.f32 6.0, %v334_v31 }
  0x59   :  { %1276 = vperm.xlu1 %3394, %v4304_v46   ;;  %v4342_v46 = vpop.eup %3475  ;;  %v713_v15 = vmul.f32 10.0, %v4239_v12  ;;  %v4382_v18 = vmul.f32 %v4354_v8, %v4294_v56  ;;  %3497 = vpow2.f32 %v4249_v0  ;;  %v648_v14 = vadd.f32 %v585_v40, %v522_v38 }
  0x5a   :  { %1271 = vperm.xlu0 %3393, %v4312_v5   ;;  %6666 = vst [vmem:[#allocation46_spill] sm:$0xff] %v4342_v46  ;;  %v4361_v32 = vpop.eup %3477  ;;  %v336_v59 = vmul.f32 %v273_v36, %v4168_v60  ;;  %v586_v26 = vmul.f32 15.0, %v271_v52  ;;  %v4387_v9 = vmul.f32 10.0, %v4291_v62  ;;  %v337_v42 = vmul.f32 %v274_v50, %v4264_v1 }
  0x5b   :  { %6667 = vst [vmem:[#allocation47_spill] sm:$0xff] %v4361_v32  ;;  %v4372_v17 = vpop.eup %3479  ;;  %v150_v12 = vmul.f32 %v4370_v7, %v4370_v7  ;;  %v4396_v31 = vmul.f32 0.1, %v3904_v16  ;;  %3499 = vpow2.f32 %v4258_v20  ;;  %v650_v62 = vadd.f32 %v587_v51, %v524_v34 }
  0x5c   :  { %6668 = vst [vmem:[#allocation48_spill] sm:$0xff] %v4372_v17  ;;  %v4389_v44 = vpop.eup %3481  ;;  %v462_v52 = vmul.f32 6.0, %v336_v59  ;;  %v4405_v38 = vmul.f32 0.1, %v3916_v23  ;;  %3501 = vpow2.f32 %v4268_v28  ;;  %v523_v40 = vsub.f32 1.0, %v460_v57 }
  0x5d   :  { %1286 = vperm.xlu1 %3394, %v4330_v41   ;;  %6669 = vst [vmem:[#allocation49_spill] sm:$0xff] %v4389_v44  ;;  %v4401_v0 = vpop.eup %3483  ;;  %v4411_v16 = vmul.f32 0.1, %v3933_v30  ;;  %3503 = vpow2.f32 %v4285_v49  ;;  %v774_v20 = vsub.f32 %v648_v14, %v711_v22  ;;  %v588_v34 = vmul.f32 15.0, %v273_v36 }
  0x5e   :  { %1281 = vperm.xlu0 %3393, %v4342_v46   ;;  %6670 = vst [vmem:[#allocation50_spill] sm:$0xff] %v4401_v0  ;;  %v4418_v23 = vmul.f32 10.0, %v4319_v4  ;;  %v463_v28 = vmul.f32 6.0, %v337_v42  ;;  %v4425_v30 = vmul.f32 %v150_v12, %v4370_v7  ;;  %v151_v59 = vmul.f32 %v4396_v31, %v4396_v31 }
  0x5f   :  { %3505 = vpow2.f32 %v4297_v54  ;;  %v776_v4 = vsub.f32 %v650_v62, %v713_v15  ;;  %v525_v22 = vsub.f32 1.0, %v462_v52  ;;  %v153_v57 = vmul.f32 %v4405_v38, %v4405_v38 }
  0x60   :  { %3507 = vpow2.f32 %v4314_v27  ;;  %v649_v42 = vadd.f32 %v586_v26, %v523_v40  ;;  %v4448_v54 = vsel %vm396_vm0, %v774_v20, 0.0  ;;  %v589_v15 = vmul.f32 15.0, %v274_v50 }
  0x61   :  { %1296 = vperm.xlu1 %3394, %v4361_v32   ;;  %v4399_v32 = vmul.f32 0.1, %v3921_v24  ;;  %v4413_v24 = vpop.eup %3485  ;;  %3509 = vpow2.f32 %v4328_v3  ;;  %v4451_v27 = vmul.f32 0.1, %v3928_v29  ;;  %v276_v62 = vmul.f32 %v4425_v30, %v4370_v7 }
  0x62   :  { %1291 = vperm.xlu0 %3393, %v4372_v17   ;;  %v338_v17 = vmul.f32 %v4382_v18, %v4294_v56  ;;  %6671 = vst [vmem:[#allocation51_spill] sm:$0xff] %v4413_v24  ;;  %v4420_v51 = vpop.eup %3487  ;;  %v214_v52 = vmul.f32 %v151_v59, %v4396_v31  ;;  %3511 = vpow2.f32 %v4333_v33  ;;  %v4467_v29 = vsel %vm398_vm1, %v776_v4, 0.0 }
  0x63   :  { %6672 = vst [vmem:[#allocation52_spill] sm:$0xff] %v4420_v51  ;;  %v152_v49 = vmul.f32 %v4399_v32, %v4399_v32  ;;  %v4431_v36 = vpop.eup %3489  ;;  %v651_v50 = vadd.f32 %v588_v34, %v525_v22  ;;  %v4471_v40 = vmul.f32 %v153_v57, %v4405_v38  ;;  %v775_v20 = vsub.f32 %v649_v42, %v4387_v9 }
  0x64   :  { %6673 = vst [vmem:[#allocation53_spill] sm:$0xff] %v4431_v36  ;;  %v4436_v14 = vpop.eup %3491  ;;  %v464_v12 = vmul.f32 6.0, %v338_v17  ;;  %v526_v17 = vsub.f32 1.0, %v463_v28  ;;  %v590_v59 = vmul.f32 15.0, %v4382_v18  ;;  %3513 = vpow2.f32 %v4335_v43 }
  0x65   :  { %1306 = vperm.xlu1 %3394, %v4389_v44   ;;  %6674 = vst [vmem:[#allocation54_spill] sm:$0xff] %v4436_v14  ;;  %v4442_v44 = vpop.eup %3493  ;;  %v4460_v3 = vmul.f32 %v152_v49, %v4399_v32  ;;  %v715_v19 = vmul.f32 10.0, %v4340_v21  ;;  %v155_v33 = vmul.f32 %v4451_v27, %v4451_v27  ;;  %v4486_v34 = vmul.f32 0.1, %v3953_v39 }
  0x66   :  { %1301 = vperm.xlu0 %3393, %v4401_v0   ;;  %v154_v0 = vmul.f32 %v4411_v16, %v4411_v16  ;;  %6675 = vst [vmem:[#allocation55_spill] sm:$0xff] %v4442_v44  ;;  %v4453_v26 = vpop.eup %3495  ;;  %v527_v28 = vsub.f32 1.0, %v464_v12  ;;  %v652_v18 = vadd.f32 %v589_v15, %v526_v17  ;;  %v277_v4 = vmul.f32 %v214_v52, %v4396_v31 }
  0x67   :  { %6676 = vst [vmem:[#allocation56_spill] sm:$0xff] %v4453_v26  ;;  %v4462_v35 = vpop.eup %3497  ;;  %v278_v43 = vmul.f32 %v4460_v3, %v4399_v32  ;;  %3515 = vpow2.f32 %v4337_v58  ;;  %v777_v21 = vsub.f32 %v651_v50, %v4418_v23  ;;  %v279_v39 = vmul.f32 %v4471_v40, %v4405_v38 }
  0x68   :  { %6677 = vst [vmem:[#allocation57_spill] sm:$0xff] %v4462_v35  ;;  %v4476_v49 = vmul.f32 %v154_v0, %v4411_v16  ;;  %v339_v0 = vmul.f32 %v276_v62, %v4370_v7  ;;  %3517 = vpow2.f32 %v4345_v48  ;;  %v653_v57 = vadd.f32 %v590_v59, %v527_v28 }
  0x69   :  { %1316 = vperm.xlu1 %3394, %v4413_v24   ;;  %v716_v42 = vmul.f32 10.0, %v4354_v8  ;;  %3519 = vpow2.f32 %v4350_v10  ;;  %v4512_v58 = vsel %vm397_vm2, %v775_v20, 0.0  ;;  %v4515_v23 = vmul.f32 %v155_v33, %v4451_v27 }
  0x6a   :  { %1311 = vperm.xlu0 %3393, %v4420_v51   ;;  %v4478_v51 = vpop.eup %3499  ;;  %v280_v12 = vmul.f32 %v4476_v49, %v4411_v16  ;;  %6682 = vst [vmem:[#allocation62_spill] sm:$0xff] %v4512_v58  ;;  %v156_v48 = vmul.f32 %v4486_v34, %v4486_v34  ;;  %v778_v17 = vsub.f32 %v652_v18, %v715_v19  ;;  %v465_v50 = vmul.f32 6.0, %v339_v0 }
  0x6b   :  { %6678 = vst [vmem:[#allocation58_spill] sm:$0xff] %v4478_v51  ;;  %v4488_v9 = vpop.eup %3501  ;;  %v340_v28 = vmul.f32 %v277_v4, %v4396_v31  ;;  %v341_v10 = vmul.f32 %v278_v43, %v4399_v32  ;;  %3521 = vpow2.f32 %v4358_v2  ;;  %v4529_v6 = vsel %vm399_vm3, %v777_v21, 0.0 }
  0x6c   :  { %6679 = vst [vmem:[#allocation59_spill] sm:$0xff] %v4488_v9  ;;  %v4495_v22 = vpop.eup %3503  ;;  %v342_v20 = vmul.f32 %v279_v39, %v4405_v38  ;;  %v4533_v33 = vmul.f32 0.1, %v3945_v37  ;;  %v4536_v19 = vmul.f32 10.0, %v4425_v30  ;;  %v343_v18 = vmul.f32 %v280_v12, %v4411_v16 }
  0x6d   :  { %1326 = vperm.xlu1 %3394, %v4431_v36   ;;  %6680 = vst [vmem:[#allocation60_spill] sm:$0xff] %v4495_v22  ;;  %v4506_v15 = vpop.eup %3505  ;;  %v4540_v0 = vmul.f32 0.1, %v3971_v47  ;;  %v591_v60 = vmul.f32 15.0, %v276_v62  ;;  %v4545_v2 = vmul.f32 10.0, %v214_v52  ;;  %v281_v37 = vmul.f32 %v4515_v23, %v4451_v27 }
  0x6e   :  { %1321 = vperm.xlu0 %3393, %v4436_v14   ;;  %6681 = vst [vmem:[#allocation61_spill] sm:$0xff] %v4506_v15  ;;  %v4519_v8 = vpop.eup %3507  ;;  %v4550_v21 = vmul.f32 %v156_v48, %v4486_v34  ;;  %v4555_v30 = vsel %vm400_vm4, %v778_v17, 0.0  ;;  %v528_v47 = vsub.f32 1.0, %v465_v50  ;;  %v4560_v62 = vmul.f32 10.0, %v4460_v3 }
  0x6f   :  { %v4524_v59 = vpop.eup %3509  ;;  %v468_v52 = vmul.f32 6.0, %v342_v20  ;;  %v4565_v48 = vmul.f32 0.1, %v3963_v45  ;;  %vm402_vm6 = vcmp.lt.f32.partialorder %v4370_v7, 1.0  ;;  %v469_v17 = vmul.f32 6.0, %v343_v18 }
  0x70   :  { %v158_v50 = vmul.f32 %v4540_v0, %v4540_v0  ;;  %v4575_v3 = vmul.f32 0.1, %v3989_v55  ;;  %v593_v45 = vmul.f32 15.0, %v278_v43  ;;  %v344_v20 = vmul.f32 %v281_v37, %v4451_v27 }
  0x71   :  { %1336 = vperm.xlu1 %3394, %v4442_v44   ;;  %v4542_v44 = vpop.eup %3511  ;;  %v282_v56 = vmul.f32 %v4550_v21, %v4486_v34  ;;  %v654_v18 = vadd.f32 %v591_v60, %v528_v47  ;;  %v4587_v55 = vmul.f32 0.1, %v3981_v53  ;;  %vm403_vm7 = vcmp.lt.f32.partialorder %v4396_v31, 1.0 }
  0x72   :  { %1331 = vperm.xlu0 %3393, %v4453_v26   ;;  %v779_v26 = vsub.f32 %v653_v57, %v716_v42  ;;  %v466_v57 = vmul.f32 6.0, %v340_v28  ;;  %v467_v42 = vmul.f32 6.0, %v341_v10  ;;  %v4557_v14 = vpop.eup %3513  ;;  %v592_v10 = vmul.f32 15.0, %v277_v4 }
  0x73   :  { %v4577_v28 = vpop.eup %3515  ;;  %vm404_vm8 = vcmp.lt.f32.partialorder %v4399_v32, 1.0  ;;  %v531_v4 = vsub.f32 1.0, %v468_v52  ;;  %v594_v43 = vmul.f32 15.0, %v279_v39  ;;  %v532_v60 = vsub.f32 1.0, %v469_v17 }
  0x74   :  { %v4569_v1 = vsel %vm401_vm5, %v779_v26, 0.0  ;;  %v4583_v26 = vpop.eup %3517  ;;  %v530_v36 = vsub.f32 1.0, %v467_v42  ;;  %v595_v47 = vmul.f32 15.0, %v280_v12  ;;  %v160_v53 = vmul.f32 %v4575_v3, %v4575_v3 }
  0x75   :  { %1346 = vperm.xlu1 %3394, %v4462_v35   ;;  %v157_v35 = vmul.f32 %v4533_v33, %v4533_v33  ;;  %6683 = vst [vmem:[#allocation63_spill] sm:$0xff] %v4569_v1  ;;  %v4589_v24 = vpop.eup %3519  ;;  %vm405_vm9 = vcmp.lt.f32.partialorder %v4405_v38, 1.0  ;;  %v470_v39 = vmul.f32 6.0, %v344_v20  ;;  %v345_v52 = vmul.f32 %v282_v56, %v4486_v34 }
  0x76   :  { %1341 = vperm.xlu0 %3393, %v4478_v51   ;;  %v529_v51 = vsub.f32 1.0, %v466_v57  ;;  %v4599_v57 = vmul.f32 %v158_v50, %v4540_v0  ;;  %v4603_v42 = vpop.eup %3521  ;;  %v4610_v17 = vmul.f32 0.1, %v4007_v63  ;;  %v656_v50 = vadd.f32 %v593_v45, %v530_v36 }
  0x77   :  { %vm406_vm10 = vcmp.lt.f32.partialorder %v4411_v16, 1.0  ;;  %v161_v46 = vmul.f32 %v4587_v55, %v4587_v55  ;;  %v721_v41 = vmul.f32 10.0, %v4476_v49  ;;  %v657_v63 = vadd.f32 %v594_v43, %v531_v4 }
  0x78   :  { %v655_v12 = vadd.f32 %v592_v10, %v529_v51  ;;  %v658_v5 = vadd.f32 %v595_v47, %v532_v60  ;;  %v284_v51 = vmul.f32 %v4599_v57, %v4540_v0  ;;  %v4626_v36 = vmul.f32 %v160_v53, %v4575_v3 }
  0x79   :  { %1356 = vperm.xlu1 %3394, %v4488_v9   ;;  %v4594_v9 = vmul.f32 %v157_v35, %v4533_v33  ;;  %v720_v35 = vmul.f32 10.0, %v4471_v40  ;;  %v533_v10 = vsub.f32 1.0, %v470_v39  ;;  %v471_v45 = vmul.f32 6.0, %v345_v52 }
  0x7a   :  { %1351 = vperm.xlu0 %3393, %v4495_v22   ;;  %v159_v22 = vmul.f32 %v4565_v48, %v4565_v48  ;;  %v162_v49 = vmul.f32 %v4610_v17, %v4610_v17  ;;  %vm407_vm11 = vcmp.lt.f32.partialorder %v4451_v27, 1.0  ;;  %v4636_v4 = vmul.f32 %v161_v46, %v4587_v55 }
  0x7b   :  { %v283_v40 = vmul.f32 %v4594_v9, %v4533_v33  ;;  %v4639_v43 = vmul.f32 0.1, %v3999_v61  ;;  %v722_v60 = vmul.f32 10.0, %v4515_v23  ;;  %v784_v53 = vsub.f32 %v658_v5, %v721_v41 }
  0x7c   :  { %v4621_v20 = vmul.f32 %v159_v22, %v4565_v48  ;;  %v781_v22 = vsub.f32 %v655_v12, %v4545_v2  ;;  %v347_v39 = vmul.f32 %v284_v51, %v4540_v0  ;;  %v286_v46 = vmul.f32 %v4626_v36, %v4575_v3 }
  0x7d   :  { %1366 = vperm.xlu1 %3394, %v4506_v15   ;;  %v780_v15 = vsub.f32 %v654_v18, %v4536_v19  ;;  %v596_v19 = vmul.f32 15.0, %v281_v37  ;;  %v782_v18 = vsub.f32 %v656_v50, %v4560_v62  ;;  %v346_v47 = vmul.f32 %v283_v40, %v4533_v33 }
  0x7e   :  { %1361 = vperm.xlu0 %3393, %v4519_v8   ;;  %v285_v2 = vmul.f32 %v4621_v20, %v4565_v48  ;;  %v783_v62 = vsub.f32 %v657_v63, %v720_v35  ;;  %v534_v7 = vsub.f32 1.0, %v471_v45  ;;  %v4654_v52 = vmul.f32 %v162_v49, %v4610_v17 }
  0x7f   :  { %v4643_v37 = vsel %vm402_vm6, %v780_v15, 0.0  ;;  %v659_v61 = vadd.f32 %v596_v19, %v533_v10  ;;  %v597_v15 = vmul.f32 15.0, %v282_v56  ;;  %v4659_v23 = vsel %vm403_vm7, %v781_v22, 0.0 }
  0x80   :  { %6684 = vst [vmem:[#allocation64_spill] sm:$0xff] %v4659_v23  ;;  %v4663_v41 = vsel %vm404_vm8, %v782_v18, 0.0  ;;  %v287_v5 = vmul.f32 %v4636_v4, %v4587_v55  ;;  %v163_v35 = vmul.f32 %v4639_v43, %v4639_v43  ;;  %vm408_vm12 = vcmp.lt.f32.partialorder %v4486_v34, 1.0 }
  0x81   :  { %1376 = vperm.xlu1 %3394, %v4524_v59   ;;  %6685 = vst [vmem:[#allocation65_spill] sm:$0xff] %v4663_v41  ;;  %v723_v56 = vmul.f32 10.0, %v4550_v21  ;;  %v472_v12 = vmul.f32 6.0, %v346_v47  ;;  %v348_v50 = vmul.f32 %v285_v2, %v4565_v48  ;;  %v4674_v31 = vsel %vm405_vm9, %v783_v62, 0.0 }
  0x82   :  { %1371 = vperm.xlu0 %3393, %v4542_v44   ;;  %6686 = vst [vmem:[#allocation66_spill] sm:$0xff] %v4674_v31  ;;  %v4678_v32 = vsel %vm406_vm10, %v784_v53, 0.0  ;;  %v473_v63 = vmul.f32 6.0, %v347_v39  ;;  %v349_v10 = vmul.f32 %v286_v46, %v4575_v3  ;;  %v785_v19 = vsub.f32 %v659_v61, %v722_v60 }
  0x83   :  { %6687 = vst [vmem:[#allocation67_spill] sm:$0xff] %v4678_v32  ;;  %v660_v45 = vadd.f32 %v597_v15, %v534_v7  ;;  %v288_v21 = vmul.f32 %v4654_v52, %v4610_v17  ;;  %v4685_v49 = vmul.f32 0.1, %v4025_v13  ;;  %v4689_v38 = vmul.f32 10.0, %v4594_v9 }
  0x84   :  { %v4692_v16 = vmul.f32 10.0, %v4599_v57  ;;  %v350_v22 = vmul.f32 %v287_v5, %v4587_v55  ;;  %v4696_v18 = vmul.f32 %v163_v35, %v4639_v43  ;;  %v535_v60 = vsub.f32 1.0, %v472_v12 }
  0x85   :  { %1386 = vperm.xlu1 %3394, %v4557_v14   ;;  %v598_v47 = vmul.f32 15.0, %v283_v40  ;;  %v474_v62 = vmul.f32 6.0, %v348_v50  ;;  %v4699_v53 = vmul.f32 0.1, %v4017_v11  ;;  %vm409_vm13 = vcmp.lt.f32.partialorder %v4533_v33, 1.0  ;;  %v6689_v50 = vld [vmem:[#allocation17_spill] sm:$0xff] }
  0x86   :  { %1381 = vperm.xlu0 %3393, %v4577_v28   ;;  %v536_v13 = vsub.f32 1.0, %v473_v63  ;;  %v599_v39 = vmul.f32 15.0, %v284_v51  ;;  %v475_v9 = vmul.f32 6.0, %v349_v10  ;;  %v4703_v61 = vmul.f32 0.1, %v4043_v25 }
  0x87   :  { %v4708_v57 = vsel %vm407_vm11, %v785_v19, 0.0  ;;  %v786_v7 = vsub.f32 %v660_v45, %v723_v56  ;;  %vm410_vm14 = vcmp.lt.f32.partialorder %v4540_v0, 1.0  ;;  %v351_v11 = vmul.f32 %v288_v21, %v4610_v17  ;;  %v3775_v0 = vld [vmem:[%s6533_s0 + $0xc8] sm:$0xff] }
  0x88   :  { %6688 = vst [vmem:[#allocation68_spill] sm:$0xff] %v4708_v57  ;;  %v164_v40 = vmul.f32 %v4685_v49, %v4685_v49  ;;  %v600_v51 = vmul.f32 15.0, %v285_v2  ;;  %v4716_v25 = vmul.f32 10.0, %v4621_v20  ;;  %v476_v15 = vmul.f32 6.0, %v350_v22 }
  0x89   :  { %1396 = vperm.xlu1 %3394, %v4583_v26   ;;  %v289_v27 = vmul.f32 %v4696_v18, %v4639_v43  ;;  %v661_v35 = vadd.f32 %v598_v47, %v535_v60  ;;  %v537_v12 = vsub.f32 1.0, %v474_v62  ;;  %v165_v56 = vmul.f32 %v4699_v53, %v4699_v53 }
  0x8a   :  { %1391 = vperm.xlu0 %3393, %v4589_v24   ;;  %v4723_v63 = vmul.f32 0.1, %v6689_v50  ;;  %v662_v19 = vadd.f32 %v599_v39, %v536_v13  ;;  %vm411_vm15 = vcmp.lt.f32.partialorder %v4565_v48, 1.0  ;;  %v538_v2 = vsub.f32 1.0, %v475_v9  ;;  %v6693_v9 = vld [vmem:[#allocation21_spill] sm:$0xff] }
  0x8b   :  { %v601_v20 = vmul.f32 15.0, %v286_v46  ;;  %v166_v45 = vmul.f32 %v4703_v61, %v4703_v61  ;;  %v4735_v60 = vsel %vm408_vm12, %v786_v7, 0.0  ;;  %vm412_vm0 = vcmp.lt.f32.partialorder %v4575_v3, 1.0 }
  0x8c   :  { %6692 = vst [vmem:[#allocation70_spill] sm:$0xff] %v4735_v60  ;;  %v477_v47 = vmul.f32 6.0, %v351_v11  ;;  %v227_v62 = vmul.f32 %v164_v40, %v4685_v49  ;;  %v539_v13 = vsub.f32 1.0, %v476_v15  ;;  %v602_v46 = vmul.f32 15.0, %v287_v5 }
  0x8d   :  { %1733 = vperm.xlu1 %3394, %v4448_v54   ;;  %v352_v39 = vmul.f32 %v289_v27, %v4639_v43  ;;  %v4742_v50 = vmul.f32 0.1, %v6693_v9  ;;  %v228_v34 = vmul.f32 %v165_v56, %v4699_v53  ;;  %v167_v7 = vmul.f32 %v4723_v63, %v4723_v63 }
  0x8e   :  { %1401 = vperm.xlu0 %3393, %v4603_v42   ;;  %v788_v40 = vsub.f32 %v662_v19, %v4692_v16  ;;  %v727_v5 = vmul.f32 10.0, %v4626_v36  ;;  %v4753_v15 = vmul.f32 %v166_v45, %v4703_v61  ;;  %vm413_vm1 = vcmp.lt.f32.partialorder %v4587_v55, 1.0  ;;  %v3778_v55 = vld [vmem:[%s6533_s0 + $0xd8] sm:$0xff] }
  0x8f   :  { %v728_v16 = vmul.f32 10.0, %v4636_v4  ;;  %vm414_vm2 = vcmp.lt.f32.partialorder %v4610_v17, 1.0  ;;  %v478_v36 = vmul.f32 6.0, %v352_v39  ;;  %v168_v56 = vmul.f32 %v4742_v50, %v4742_v50 }
  0x90   :  { %v4725_v10 = vpop.permute.xlu1 %1101  ;;  %v4778_v4 = vsel %vm410_vm14, %v788_v40, 0.0  ;;  %v4783_v33 = vmul.f32 %v4753_v15, %v4703_v61  ;;  %v4792_v39 = vmul.f32 0.1, %v3775_v0  ;;  %v3776_v40 = vld [vmem:[%s6533_s0 + $0xd0] sm:$0xff]  ;;  %vm415_vm3 = vcmp.lt.f32.partialorder %v4639_v43, 1.0 }
  0x91   :  { %6690 = vst [vmem:[#allocation17_spill] sm:$0xff] %v4725_v10  ;;  %v4730_v22 = vpop.permute.xlu0 %1091  ;;  %1743 = vperm.xlu1 %3394, %v4467_v29   ;;  %v787_v10 = vsub.f32 %v661_v35, %v4689_v38  ;;  %v540_v38 = vsub.f32 1.0, %v477_v47  ;;  %v290_v35 = vmul.f32 %v227_v62, %v4685_v49  ;;  %6698 = vst [vmem:[#allocation74_spill] sm:$0xff] %v4778_v4  ;;  %v4830_v3 = vmul.f32 10.0, %v227_v62 }
  0x92   :  { %6691 = vst [vmem:[#allocation69_spill] sm:$0xff] %v4730_v22  ;;  %1738 = vperm.xlu0 %3393, %v4512_v58   ;;  %v663_v22 = vadd.f32 %v600_v51, %v537_v12  ;;  %v664_v58 = vadd.f32 %v601_v20, %v538_v2  ;;  %v603_v51 = vmul.f32 15.0, %v288_v21  ;;  %v665_v12 = vadd.f32 %v602_v46, %v539_v13 }
  0x93   :  { %v4767_v19 = vsel %vm409_vm13, %v787_v10, 0.0  ;;  %v291_v21 = vmul.f32 %v228_v34, %v4699_v53  ;;  %v4772_v20 = vmul.f32 %v167_v7, %v4723_v63  ;;  %v729_v13 = vmul.f32 10.0, %v4654_v52 }
  0x94   :  { %v4748_v11 = vpop.permute.xlu1 %1106  ;;  %6696 = vst [vmem:[#allocation72_spill] sm:$0xff] %v4767_v19  ;;  %v789_v2 = vsub.f32 %v663_v22, %v4716_v25  ;;  %v790_v47 = vsub.f32 %v664_v58, %v727_v5  ;;  %v666_v25 = vadd.f32 %v603_v51, %v540_v38  ;;  %v604_v22 = vmul.f32 15.0, %v289_v27 }
  0x95   :  { %6694 = vst [vmem:[#allocation21_spill] sm:$0xff] %v4748_v11  ;;  %v4755_v9 = vpop.permute.xlu0 %1096  ;;  %1753 = vperm.xlu1 %3394, %v4555_v30   ;;  %v353_v46 = vmul.f32 %v290_v35, %v4685_v49  ;;  %v791_v58 = vsub.f32 %v665_v12, %v728_v16  ;;  %v541_v52 = vsub.f32 1.0, %v478_v36  ;;  %v4796_v7 = vmul.f32 %v168_v56, %v4742_v50  ;;  %v3777_v56 = vld [vmem:[%s6533_s0 + $0xe0] sm:$0xff] }
  0x96   :  { %6695 = vst [vmem:[#allocation71_spill] sm:$0xff] %v4755_v9  ;;  %1748 = vperm.xlu0 %3393, %v4529_v6   ;;  %v4801_v27 = vmul.f32 0.1, %v3776_v40  ;;  %v4805_v5 = vsel %vm411_vm15, %v789_v2, 0.0  ;;  %v354_v38 = vmul.f32 %v291_v21, %v4699_v53  ;;  %v4811_v51 = vmul.f32 %v4772_v20, %v4723_v63 }
  0x97   :  { %v4817_v16 = vsel %vm412_vm0, %v790_v47, 0.0  ;;  %v730_v36 = vmul.f32 10.0, %v4696_v18  ;;  %v355_v48 = vmul.f32 %v4783_v33, %v4703_v61  ;;  %v4825_v2 = vmul.f32 0.1, %v3777_v56 }
  0x98   :  { %v4774_v45 = vpop.permute.xlu1 %1116  ;;  %6701 = vst [vmem:[#allocation77_spill] sm:$0xff] %v4817_v16  ;;  %v792_v40 = vsub.f32 %v666_v25, %v729_v13  ;;  %v169_v18 = vmul.f32 %v4792_v39, %v4792_v39  ;;  %v4837_v47 = vsel %vm413_vm1, %v791_v58, 0.0  ;;  %v4841_v56 = vmul.f32 %v4796_v7, %v4742_v50 }
  0x99   :  { %6697 = vst [vmem:[#allocation73_spill] sm:$0xff] %v4774_v45  ;;  %v4785_v10 = vpop.permute.xlu0 %1111  ;;  %1763 = vperm.xlu1 %3394, %v4643_v37   ;;  %6703 = vst [vmem:[#allocation79_spill] sm:$0xff] %v4837_v47  ;;  %v170_v13 = vmul.f32 %v4801_v27, %v4801_v27  ;;  %v480_v25 = vmul.f32 6.0, %v354_v38  ;;  %v4845_v62 = vmul.f32 10.0, %v228_v34  ;;  %v4852_v58 = vmul.f32 0.1, %v3778_v55 }
  0x9a   :  { %6699 = vst [vmem:[#allocation75_spill] sm:$0xff] %v4785_v10  ;;  %1758 = vperm.xlu0 %3393, %v4569_v1   ;;  %v667_v10 = vadd.f32 %v604_v22, %v541_v52  ;;  %v605_v52 = vmul.f32 15.0, %v290_v35  ;;  %v172_v45 = vmul.f32 %v4825_v2, %v4825_v2  ;;  %v3779_v34 = vld [vmem:[%s6533_s0 + $0xe8] sm:$0xff]  ;;  %v4868_v55 = vsel %vm414_vm2, %v792_v40, 0.0 }
  0x9b   :  { %v4861_v38 = vmul.f32 0.1, %v3779_v34  ;;  %6706 = vst [vmem:[#allocation82_spill] sm:$0xff] %v4868_v55  ;;  %v4871_v35 = vmul.f32 %v169_v18, %v4792_v39  ;;  %vm416_vm4 = vcmp.lt.f32.partialorder %v4685_v49, 1.0  ;;  %v357_v17 = vmul.f32 %v4841_v56, %v4742_v50 }
  0x9c   :  { %v4813_v12 = vpop.permute.xlu1 %1126  ;;  %v793_v34 = vsub.f32 %v667_v10, %v730_v36  ;;  %v543_v40 = vsub.f32 1.0, %v480_v25  ;;  %v4886_v18 = vmul.f32 10.0, %v4753_v15  ;;  %vm417_vm5 = vcmp.lt.f32.partialorder %v4699_v53, 1.0 }
  0x9d   :  { %6700 = vst [vmem:[#allocation76_spill] sm:$0xff] %v4813_v12  ;;  %v4827_v0 = vpop.permute.xlu0 %1121  ;;  %1773 = vperm.xlu1 %3394, %v4663_v41   ;;  %v479_v12 = vmul.f32 6.0, %v353_v46  ;;  %v356_v46 = vmul.f32 %v4811_v51, %v4723_v63  ;;  %v4895_v36 = vmul.f32 %v172_v45, %v4825_v2  ;;  %vm418_vm6 = vcmp.lt.f32.partialorder %v4703_v61, 1.0  ;;  %v3781_v45 = vld [vmem:[%s6533_s0 + $0xf8] sm:$0xff] }
  0x9e   :  { %6702 = vst [vmem:[#allocation78_spill] sm:$0xff] %v4827_v0  ;;  %1768 = vperm.xlu0 %3393, %v4659_v23   ;;  %v481_v0 = vmul.f32 6.0, %v355_v48  ;;  %v3780_v48 = vld [vmem:[%s6533_s0 + $0xf0] sm:$0xff]  ;;  %vm419_vm7 = vcmp.lt.f32.partialorder %v4723_v63, 1.0  ;;  %vm420_vm8 = vcmp.lt.f32.partialorder %v4742_v50, 1.0  ;;  %vm421_vm9 = vcmp.lt.f32.partialorder %v4792_v39, 1.0 }
  0x9f   :  { %v4876_v9 = vmul.f32 0.1, %v3780_v48  ;;  %v171_v48 = vmul.f32 %v4852_v58, %v4852_v58  ;;  %v298_v1 = vmul.f32 %v4895_v36, %v4825_v2  ;;  %vm422_vm10 = vcmp.lt.f32.partialorder %v4801_v27, 1.0  ;;  %v3784_v63 = vld [vmem:[%s6533_s0 + $0x110] sm:$0xff] }
  0xa0   :  { %v4854_v22 = vpop.permute.xlu1 %1136  ;;  %v544_v10 = vsub.f32 1.0, %v481_v0  ;;  %v4912_v0 = vmul.f32 0.1, %v3781_v45  ;;  %v608_v45 = vmul.f32 15.0, %v4811_v51  ;;  %vm424_vm11 = vcmp.lt.f32.partialorder %v4825_v2, 1.0 }
  0xa1   :  { %6704 = vst [vmem:[#allocation80_spill] sm:$0xff] %v4854_v22  ;;  %v4863_v11 = vpop.permute.xlu0 %1131  ;;  %1783 = vperm.xlu1 %3394, %v4678_v32   ;;  %v542_v22 = vsub.f32 1.0, %v479_v12  ;;  %v4883_v12 = vmul.f32 %v170_v13, %v4801_v27  ;;  %v482_v32 = vmul.f32 6.0, %v356_v46  ;;  %v173_v13 = vmul.f32 %v4861_v38, %v4861_v38 }
  0xa2   :  { %6705 = vst [vmem:[#allocation81_spill] sm:$0xff] %v4863_v11  ;;  %1778 = vperm.xlu0 %3393, %v4674_v31   ;;  %v606_v11 = vmul.f32 15.0, %v291_v21  ;;  %v607_v21 = vmul.f32 15.0, %v4783_v33  ;;  %v4905_v46 = vmul.f32 %v4871_v35, %v4792_v39  ;;  %v174_v33 = vmul.f32 %v4876_v9, %v4876_v9 }
  0xa3   :  { %v668_v15 = vadd.f32 %v605_v52, %v542_v22  ;;  %v4917_v22 = vsel %vm415_vm3, %v793_v34, 0.0  ;;  %v483_v52 = vmul.f32 6.0, %v357_v17  ;;  %v545_v41 = vsub.f32 1.0, %v482_v32 }
  0xa4   :  { %v4890_v23 = vpop.permute.xlu1 %1146  ;;  %6709 = vst [vmem:[#allocation85_spill] sm:$0xff] %v4917_v22  ;;  %v669_v31 = vadd.f32 %v606_v11, %v543_v40  ;;  %v670_v34 = vadd.f32 %v607_v21, %v544_v10  ;;  %v734_v17 = vmul.f32 10.0, %v4772_v20  ;;  %v358_v51 = vmul.f32 %v4905_v46, %v4792_v39 }
  0xa5   :  { %6707 = vst [vmem:[#allocation83_spill] sm:$0xff] %v4890_v23  ;;  %v4899_v25 = vpop.permute.xlu0 %1141  ;;  %1793 = vperm.xlu1 %3394, %v4735_v60   ;;  %v3782_v23 = vld [vmem:[%s6533_s0 + $0x100] sm:$0xff]  ;;  %v794_v32 = vsub.f32 %v668_v15, %v4830_v3  ;;  %v4946_v40 = vmul.f32 %v174_v33, %v4876_v9  ;;  %v175_v20 = vmul.f32 %v4912_v0, %v4912_v0  ;;  %v609_v10 = vmul.f32 15.0, %v4841_v56 }
  0xa6   :  { %6708 = vst [vmem:[#allocation84_spill] sm:$0xff] %v4899_v25  ;;  %1788 = vperm.xlu0 %3393, %v4708_v57   ;;  %v296_v25 = vmul.f32 %v4883_v12, %v4801_v27  ;;  %v4924_v60 = vmul.f32 0.1, %v3782_v23  ;;  %v4928_v57 = vmul.f32 %v171_v48, %v4852_v58  ;;  %v4937_v23 = vmul.f32 %v173_v13, %v4861_v38 }
  0xa7   :  { %v546_v48 = vsub.f32 1.0, %v483_v52  ;;  %v795_v3 = vsub.f32 %v669_v31, %v4845_v62  ;;  %v671_v15 = vadd.f32 %v608_v45, %v545_v41  ;;  %v796_v56 = vsub.f32 %v670_v34, %v4886_v18 }
  0xa8   :  { %v4930_v43 = vpop.permute.xlu1 %1156  ;;  %v359_v21 = vmul.f32 %v296_v25, %v4801_v27  ;;  %v176_v13 = vmul.f32 %v4924_v60, %v4924_v60  ;;  %v297_v33 = vmul.f32 %v4928_v57, %v4852_v58  ;;  %v4970_v41 = vmul.f32 %v4937_v23, %v4861_v38  ;;  %v3786_v27 = vld [vmem:[%s6533_s0 + $0x120] sm:$0xff] }
  0xa9   :  { %6710 = vst [vmem:[#allocation86_spill] sm:$0xff] %v4930_v43  ;;  %v4939_v11 = vpop.permute.xlu0 %1151  ;;  %1803 = vperm.xlu1 %3394, %v4778_v4   ;;  %v4977_v62 = vsel %vm416_vm4, %v794_v32, 0.0  ;;  %v484_v45 = vmul.f32 6.0, %v358_v51  ;;  %v300_v18 = vmul.f32 %v4946_v40, %v4876_v9  ;;  %v4982_v34 = vmul.f32 %v175_v20, %v4912_v0 }
  0xaa   :  { %6711 = vst [vmem:[#allocation87_spill] sm:$0xff] %v4939_v11  ;;  %1798 = vperm.xlu0 %3393, %v4767_v19   ;;  %v3783_v11 = vld [vmem:[%s6533_s0 + $0x108] sm:$0xff]  ;;  %v361_v19 = vmul.f32 %v298_v1, %v4825_v2  ;;  %6714 = vst [vmem:[#allocation90_spill] sm:$0xff] %v4977_v62  ;;  %v485_v4 = vmul.f32 6.0, %v359_v21  ;;  %v4991_v49 = vsel %vm417_vm5, %v795_v3, 0.0  ;;  %v797_v32 = vsub.f32 %v671_v15, %v734_v17 }
  0xab   :  { %v4961_v43 = vmul.f32 0.1, %v3783_v11  ;;  %v672_v11 = vadd.f32 %v609_v10, %v546_v48  ;;  %v360_v51 = vmul.f32 %v297_v33, %v4852_v58  ;;  %v5000_v48 = vsel %vm418_vm6, %v796_v56, 0.0 }
  0xac   :  { %v4963_v52 = vpop.permute.xlu1 %1166  ;;  %v487_v10 = vmul.f32 6.0, %v361_v19  ;;  %v362_v53 = vmul.f32 %v4970_v41, %v4861_v38  ;;  %v547_v17 = vsub.f32 1.0, %v484_v45  ;;  %v363_v3 = vmul.f32 %v300_v18, %v4876_v9 }
  0xad   :  { %6712 = vst [vmem:[#allocation88_spill] sm:$0xff] %v4963_v52  ;;  %v4972_v31 = vpop.permute.xlu0 %1161  ;;  %1813 = vperm.xlu1 %3394, %v4817_v16   ;;  %v735_v52 = vmul.f32 10.0, %v4796_v7  ;;  %v177_v20 = vmul.f32 %v4961_v43, %v4961_v43  ;;  %v5003_v7 = vmul.f32 10.0, %v4871_v35  ;;  %v5014_v61 = vmul.f32 %v4982_v34, %v4912_v0 }
  0xae   :  { %6713 = vst [vmem:[#allocation89_spill] sm:$0xff] %v4972_v31  ;;  %1808 = vperm.xlu0 %3393, %v4805_v5   ;;  %v4987_v31 = vmul.f32 %v176_v13, %v4924_v60  ;;  %v610_v13 = vmul.f32 15.0, %v4905_v46  ;;  %v548_v19 = vsub.f32 1.0, %v485_v4  ;;  %v611_v15 = vmul.f32 15.0, %v296_v25 }
  0xaf   :  { %v798_v35 = vsub.f32 %v672_v11, %v735_v52  ;;  %v5023_v45 = vsel %vm419_vm7, %v797_v32, 0.0  ;;  %v737_v46 = vmul.f32 10.0, %v4883_v12  ;;  %v550_v25 = vsub.f32 1.0, %v487_v10 }
  0xb0   :  { %v4996_v16 = vpop.permute.xlu1 %1176  ;;  %v5019_v56 = vmul.f32 %v4987_v31, %v4924_v60  ;;  %v613_v52 = vmul.f32 15.0, %v298_v1  ;;  %v488_v11 = vmul.f32 6.0, %v362_v53  ;;  %v5036_v32 = vmul.f32 0.1, %v3784_v63 }
  0xb1   :  { %6715 = vst [vmem:[#allocation91_spill] sm:$0xff] %v4996_v16  ;;  %v5007_v21 = vpop.permute.xlu0 %1171  ;;  %1823 = vperm.xlu1 %3394, %v4868_v55   ;;  %v5029_v16 = vmul.f32 %v177_v20, %v4961_v43  ;;  %v673_v12 = vadd.f32 %v610_v13, %v547_v17  ;;  %v489_v20 = vmul.f32 6.0, %v363_v3  ;;  %v364_v10 = vmul.f32 %v5014_v61, %v4912_v0 }
  0xb2   :  { %6716 = vst [vmem:[#allocation92_spill] sm:$0xff] %v5007_v21  ;;  %1818 = vperm.xlu0 %3393, %v4837_v47   ;;  %v486_v21 = vmul.f32 6.0, %v360_v51  ;;  %v5042_v51 = vmul.f32 10.0, %v4928_v57  ;;  %v5049_v1 = vsel %vm420_vm8, %v798_v35, 0.0  ;;  %v674_v53 = vadd.f32 %v611_v15, %v548_v19 }
  0xb3   :  { %v365_v63 = vmul.f32 %v5019_v56, %v4924_v60  ;;  %v612_v13 = vmul.f32 15.0, %v297_v33  ;;  %v303_v57 = vmul.f32 %v5029_v16, %v4961_v43  ;;  %v178_v3 = vmul.f32 %v5036_v32, %v5036_v32 }
  0xb4   :  { %v5031_v4 = vpop.permute.xlu1 %1186  ;;  %v549_v17 = vsub.f32 1.0, %v486_v21  ;;  %vm423_vm12 = vcmp.lt.f32.partialorder %v4852_v58, 1.0  ;;  %v676_v50 = vadd.f32 %v613_v52, %v550_v25  ;;  %v739_v35 = vmul.f32 10.0, %v4895_v36 }
  0xb5   :  { %6717 = vst [vmem:[#allocation93_spill] sm:$0xff] %v5031_v4  ;;  %v5038_v47 = vpop.permute.xlu0 %1181  ;;  %1833 = vperm.xlu1 %3394, %v4977_v62   ;;  %v551_v19 = vsub.f32 1.0, %v488_v11  ;;  %v614_v15 = vmul.f32 15.0, %v4970_v41  ;;  %v552_v33 = vsub.f32 1.0, %v489_v20  ;;  %v615_v21 = vmul.f32 15.0, %v300_v18 }
  0xb6   :  { %6718 = vst [vmem:[#allocation94_spill] sm:$0xff] %v5038_v47  ;;  %1828 = vperm.xlu0 %3393, %v4917_v22   ;;  %v490_v22 = vmul.f32 6.0, %v364_v10  ;;  %v241_v62 = vmul.f32 %v178_v3, %v5036_v32  ;;  %v800_v55 = vsub.f32 %v674_v53, %v737_v46  ;;  %vm425_vm13 = vcmp.lt.f32.partialorder %v4861_v38, 1.0 }
  0xb7   :  { %v491_v36 = vmul.f32 6.0, %v365_v63  ;;  %v675_v25 = vadd.f32 %v612_v13, %v549_v17  ;;  %v740_v41 = vmul.f32 10.0, %v4937_v23  ;;  %v366_v52 = vmul.f32 %v303_v57, %v4961_v43 }
  0xb8   :  { %v5058_v47 = vpop.permute.xlu1 %1196  ;;  %v304_v11 = vmul.f32 %v241_v62, %v5036_v32  ;;  %v802_v18 = vsub.f32 %v676_v50, %v739_v35  ;;  %v677_v10 = vadd.f32 %v614_v15, %v551_v19  ;;  %v741_v3 = vmul.f32 10.0, %v4946_v40 }
  0xb9   :  { %6719 = vst [vmem:[#allocation95_spill] sm:$0xff] %v5058_v47  ;;  %v5063_v4 = vpop.permute.xlu0 %1191  ;;  %1843 = vperm.xlu1 %3394, %v5000_v48   ;;  %v799_v47 = vsub.f32 %v673_v12, %v5003_v7  ;;  %v3785_v7 = vld [vmem:[%s6533_s0 + $0x118] sm:$0xff]  ;;  %v678_v23 = vadd.f32 %v615_v21, %v552_v33  ;;  %v553_v53 = vsub.f32 1.0, %v490_v22  ;;  %v616_v63 = vmul.f32 15.0, %v5014_v61 }
  0xba   :  { %6720 = vst [vmem:[#allocation96_spill] sm:$0xff] %v5063_v4  ;;  %1838 = vperm.xlu0 %3393, %v4991_v49   ;;  %v5079_v46 = vmul.f32 0.1, %v3785_v7  ;;  %v367_v17 = vmul.f32 %v304_v11, %v5036_v32  ;;  %v5093_v13 = vsel %vm422_vm10, %v800_v55, 0.0  ;;  %v554_v50 = vsub.f32 1.0, %v491_v36 }
  0xbb   :  { %v5089_v40 = vsel %vm421_vm9, %v799_v47, 0.0  ;;  %v617_v35 = vmul.f32 15.0, %v5019_v56  ;;  %v801_v19 = vsub.f32 %v675_v25, %v5042_v51  ;;  %v492_v22 = vmul.f32 6.0, %v366_v52 }
  0xbc   :  { %v5073_v20 = vpop.permute.xlu1 %1206  ;;  %v493_v15 = vmul.f32 6.0, %v367_v17  ;;  %v179_v61 = vmul.f32 %v5079_v46, %v5079_v46  ;;  %v5103_v39 = vsel %vm424_vm11, %v802_v18, 0.0  ;;  %v803_v47 = vsub.f32 %v677_v10, %v740_v41 }
  0xbd   :  { %6721 = vst [vmem:[#allocation97_spill] sm:$0xff] %v5073_v20  ;;  %v5081_v12 = vpop.permute.xlu0 %1201  ;;  %1853 = vperm.xlu1 %3394, %v5049_v1   ;;  %vm426_vm14 = vcmp.lt.f32.partialorder %v4876_v9, 1.0  ;;  %v5109_v55 = vmul.f32 0.1, %v3786_v27  ;;  %v804_v51 = vsub.f32 %v678_v23, %v741_v3  ;;  %v679_v21 = vadd.f32 %v616_v63, %v553_v53 }
  0xbe   :  { %6722 = vst [vmem:[#allocation98_spill] sm:$0xff] %v5081_v12  ;;  %1848 = vperm.xlu0 %3393, %v5023_v45   ;;  %v742_v36 = vmul.f32 10.0, %v4982_v34  ;;  %v743_v2 = vmul.f32 10.0, %v4987_v31  ;;  %v680_v25 = vadd.f32 %v617_v35, %v554_v50  ;;  %v556_v41 = vsub.f32 1.0, %v493_v15 }
  0xbf   :  { %v619_v52 = vmul.f32 15.0, %v304_v11  ;;  %v242_v18 = vmul.f32 %v179_v61, %v5079_v46  ;;  %v5120_v10 = vsel %vm423_vm12, %v801_v19, 0.0  ;;  %v555_v7 = vsub.f32 1.0, %v492_v22 }
  0xc0   :  { %v5099_v33 = vpop.permute.xlu1 %1216  ;;  %v618_v17 = vmul.f32 15.0, %v303_v57  ;;  %v180_v31 = vmul.f32 %v5109_v55, %v5109_v55  ;;  %v5132_v11 = vsel %vm425_vm13, %v803_v47, 0.0  ;;  %v5136_v58 = vsel %vm426_vm14, %v804_v51, 0.0 }
  0xc1   :  { %6723 = vst [vmem:[#allocation99_spill] sm:$0xff] %v5099_v33  ;;  %v5111_v56 = vpop.permute.xlu0 %1211  ;;  %1863 = vperm.xlu1 %3394, %v5093_v13   ;;  %v305_v3 = vmul.f32 %v242_v18, %v5079_v46  ;;  %v805_v57 = vsub.f32 %v679_v21, %v742_v36  ;;  %v806_v23 = vsub.f32 %v680_v25, %v743_v2  ;;  %v745_v63 = vmul.f32 10.0, %v241_v62  ;;  %v3787_v25 = vld [vmem:[%s6533_s0 + $0x128] sm:$0xff] }
  0xc2   :  { %6724 = vst [vmem:[#allocation100_spill] sm:$0xff] %v5111_v56  ;;  %1858 = vperm.xlu0 %3393, %v5089_v40   ;;  %v682_v53 = vadd.f32 %v619_v52, %v556_v41  ;;  %vm427_vm15 = vcmp.lt.f32.partialorder %v4912_v0, 1.0  ;;  %vm428_vm0 = vcmp.lt.f32.partialorder %v4924_v60, 1.0  ;;  %v681_v35 = vadd.f32 %v618_v17, %v555_v7 }
  0xc3   :  { %v368_v50 = vmul.f32 %v305_v3, %v5079_v46  ;;  %v744_v38 = vmul.f32 10.0, %v5029_v16  ;;  %v620_v22 = vmul.f32 15.0, %v305_v3  ;;  %v243_v15 = vmul.f32 %v180_v31, %v5109_v55 }
  0xc4   :  { %v5122_v27 = vpop.permute.xlu1 %1226  ;;  %v5150_v62 = vsel %vm427_vm15, %v805_v57, 0.0  ;;  %v5152_v0 = vsel %vm428_vm0, %v806_v23, 0.0  ;;  %v808_v60 = vsub.f32 %v682_v53, %v745_v63  ;;  %vm430_vm1 = vcmp.lt.f32.partialorder %v5036_v32, 1.0 }
  0xc5   :  { %6725 = vst [vmem:[#allocation101_spill] sm:$0xff] %v5122_v27  ;;  %v5127_v34 = vpop.permute.xlu0 %1221  ;;  %1873 = vperm.xlu1 %3394, %v5103_v39   ;;  %v494_v9 = vmul.f32 6.0, %v368_v50  ;;  %v807_v51 = vsub.f32 %v681_v35, %v744_v38  ;;  %v746_v16 = vmul.f32 10.0, %v242_v18  ;;  %v306_v21 = vmul.f32 %v243_v15, %v5109_v55 }
  0xc6   :  { %6726 = vst [vmem:[#allocation102_spill] sm:$0xff] %v5127_v34  ;;  %1868 = vperm.xlu0 %3393, %v5120_v10   ;;  %vm429_vm2 = vcmp.lt.f32.partialorder %v4961_v43, 1.0  ;;  %v118_v41 = vmul.f32 0.1, %v3787_v25  ;;  %v5167_v32 = vsel %vm430_vm1, %v808_v60, 0.0  ;;  %vm431_vm3 = vcmp.lt.f32.partialorder %v5079_v46, 1.0 }
  0xc7   :  { %v557_v47 = vsub.f32 1.0, %v494_v9  ;;  %v369_v7 = vmul.f32 %v306_v21, %v5109_v55  ;;  %v5169_v18 = vsel %vm429_vm2, %v807_v51, 0.0  ;;  %v621_v3 = vmul.f32 15.0, %v306_v21 }
  0xc8   :  { %v5143_v19 = vpop.permute.xlu1 %1236  ;;  %v181_v57 = vmul.f32 %v118_v41, %v118_v41  ;;  %v747_v63 = vmul.f32 10.0, %v243_v15  ;;  %vm432_vm4 = vcmp.lt.f32.partialorder %v5109_v55, 1.0  ;;  %vm433_vm5 = vcmp.lt.f32.partialorder %v118_v41, 1.0 }
  0xc9   :  { %6727 = vst [vmem:[#allocation103_spill] sm:$0xff] %v5143_v19  ;;  %v5146_v61 = vpop.permute.xlu0 %1231  ;;  %1883 = vperm.xlu1 %3394, %v5136_v58   ;;  %v683_v2 = vadd.f32 %v620_v22, %v557_v47  ;;  %v495_v43 = vmul.f32 6.0, %v369_v7  ;;  %v3789_v7 = vld [vmem:[%s6533_s0 + $0x138] sm:$0xff] }
  0xca   :  { %6728 = vst [vmem:[#allocation104_spill] sm:$0xff] %v5146_v61  ;;  %1878 = vperm.xlu0 %3393, %v5132_v11   ;;  %v244_v50 = vmul.f32 %v181_v57, %v118_v41 }
  0xcb   :  { %v809_v17 = vsub.f32 %v683_v2, %v746_v16  ;;  %v558_v53 = vsub.f32 1.0, %v495_v43  ;;  %v3788_v2 = vld [vmem:[%s6533_s0 + $0x130] sm:$0xff] }
  0xcc   :  { %v5156_v36 = vpop.permute.xlu1 %1246  ;;  %v307_v22 = vmul.f32 %v244_v50, %v118_v41  ;;  %v119_v55 = vmul.f32 0.1, %v3788_v2 }
  0xcd   :  { %6729 = vst [vmem:[#allocation105_spill] sm:$0xff] %v5156_v36  ;;  %v5162_v52 = vpop.permute.xlu0 %1241  ;;  %1893 = vperm.xlu1 %3394, %v5152_v0   ;;  %v5178_v35 = vsel %vm431_vm3, %v809_v17, 0.0  ;;  %v684_v38 = vadd.f32 %v621_v3, %v558_v53  ;;  %v120_v17 = vmul.f32 0.1, %v3789_v7  ;;  %v748_v3 = vmul.f32 10.0, %v244_v50 }
  0xce   :  { %6730 = vst [vmem:[#allocation106_spill] sm:$0xff] %v5162_v52  ;;  %1888 = vperm.xlu0 %3393, %v5150_v62   ;;  %v370_v47 = vmul.f32 %v307_v22, %v118_v41  ;;  %v622_v21 = vmul.f32 15.0, %v307_v22  ;;  %v182_v57 = vmul.f32 %v119_v55, %v119_v55  ;;  %v3790_v41 = vld [vmem:[%s6533_s0 + $0x140] sm:$0xff]  ;;  %vm434_vm6 = vcmp.lt.f32.partialorder %v119_v55, 1.0 }
  0xcf   :  { %v810_v46 = vsub.f32 %v684_v38, %v747_v63  ;;  %v183_v38 = vmul.f32 %v120_v17, %v120_v17  ;;  %vm435_vm7 = vcmp.lt.f32.partialorder %v120_v17, 1.0 }
  0xd0   :  { %v5171_v31 = vpop.permute.xlu1 %1256  ;;  %v496_v16 = vmul.f32 6.0, %v370_v47  ;;  %v245_v22 = vmul.f32 %v182_v57, %v119_v55  ;;  %v5213_v57 = vmul.f32 0.1, %v3790_v41  ;;  %v3791_v41 = vld [vmem:[%s6533_s0 + $0x148] sm:$0xff] }
  0xd1   :  { %6731 = vst [vmem:[#allocation107_spill] sm:$0xff] %v5171_v31  ;;  %v5174_v23 = vpop.permute.xlu0 %1251  ;;  %1903 = vperm.xlu1 %3394, %v5167_v32   ;;  %v5186_v51 = vsel %vm432_vm4, %v810_v46, 0.0 }
  0xd2   :  { %6732 = vst [vmem:[#allocation108_spill] sm:$0xff] %v5174_v23  ;;  %1898 = vperm.xlu0 %3393, %v5169_v18   ;;  %v559_v43 = vsub.f32 1.0, %v496_v16  ;;  %v308_v2 = vmul.f32 %v245_v22, %v119_v55  ;;  %vm436_vm8 = vcmp.lt.f32.partialorder %v5213_v57, 1.0 }
  0xd4   :  { %v5180_v9 = vpop.permute.xlu1 %1266  ;;  %v685_v53 = vadd.f32 %v622_v21, %v559_v43  ;;  %v371_v16 = vmul.f32 %v308_v2, %v119_v55  ;;  %v623_v43 = vmul.f32 15.0, %v308_v2 }
  0xd5   :  { %6733 = vst [vmem:[#allocation109_spill] sm:$0xff] %v5180_v9  ;;  %v5183_v60 = vpop.permute.xlu0 %1261  ;;  %1913 = vperm.xlu1 %3394, %v5186_v51   ;;  %v5225_v9 = vmul.f32 0.1, %v3791_v41 }
  0xd6   :  { %6734 = vst [vmem:[#allocation110_spill] sm:$0xff] %v5183_v60  ;;  %1908 = vperm.xlu0 %3393, %v5178_v35   ;;  %v811_v47 = vsub.f32 %v685_v53, %v748_v3  ;;  %v497_v7 = vmul.f32 6.0, %v371_v16 }
  0xd7   :  { %vm437_vm9 = vcmp.lt.f32.partialorder %v5225_v9, 1.0 }
  0xd8   :  { %v5189_v15 = vpop.permute.xlu1 %1276 }
  0xd9   :  { %6735 = vst [vmem:[#allocation111_spill] sm:$0xff] %v5189_v15  ;;  %v5194_v25 = vpop.permute.xlu0 %1271  ;;  %v5203_v15 = vsel %vm433_vm5, %v811_v47, 0.0  ;;  %v749_v47 = vmul.f32 10.0, %v245_v22  ;;  %v3792_v22 = vld [vmem:[%s6533_s0 + $0x150] sm:$0xff] }
  0xda   :  { %6736 = vst [vmem:[#allocation112_spill] sm:$0xff] %v5194_v25  ;;  %v246_v25 = vmul.f32 %v183_v38, %v120_v17  ;;  %1918 = vperm.xlu0 %3393, %v5203_v15   ;;  %v560_v38 = vsub.f32 1.0, %v497_v7  ;;  %v5230_v23 = vmul.f32 0.1, %v3792_v22 }
  0xdc   :  { %v5199_v63 = vpop.permute.xlu1 %1286  ;;  %v309_v21 = vmul.f32 %v246_v25, %v120_v17  ;;  %v686_v16 = vadd.f32 %v623_v43, %v560_v38  ;;  %v750_v7 = vmul.f32 10.0, %v246_v25  ;;  %v185_v43 = vmul.f32 %v5225_v9, %v5225_v9 }
  0xdd   :  { %6737 = vst [vmem:[#allocation113_spill] sm:$0xff] %v5199_v63  ;;  %v5201_v46 = vpop.permute.xlu0 %1281  ;;  %vm438_vm10 = vcmp.lt.f32.partialorder %v5230_v23, 1.0 }
  0xde   :  { %6738 = vst [vmem:[#allocation114_spill] sm:$0xff] %v5201_v46  ;;  %v372_v3 = vmul.f32 %v309_v21, %v120_v17  ;;  %v624_v63 = vmul.f32 15.0, %v309_v21  ;;  %v812_v21 = vsub.f32 %v686_v16, %v749_v47  ;;  %v186_v47 = vmul.f32 %v5230_v23, %v5230_v23 }
  0xe0   :  { %v5205_v60 = vpop.permute.xlu1 %1296  ;;  %v5239_v55 = vsel %vm434_vm6, %v812_v21, 0.0  ;;  %v249_v17 = vmul.f32 %v186_v47, %v5230_v23  ;;  %v3794_v47 = vld [vmem:[%s6533_s0 + $0x160] sm:$0xff] }
  0xe1   :  { %6739 = vst [vmem:[#allocation115_spill] sm:$0xff] %v5205_v60  ;;  %v5208_v50 = vpop.permute.xlu0 %1291  ;;  %v184_v60 = vmul.f32 %v5213_v57, %v5213_v57  ;;  %1923 = vperm.xlu1 %3394, %v5239_v55   ;;  %v5265_v31 = vmul.f32 0.1, %v3794_v47 }
  0xe2   :  { %6740 = vst [vmem:[#allocation116_spill] sm:$0xff] %v5208_v50  ;;  %v498_v50 = vmul.f32 6.0, %v372_v3  ;;  %v753_v19 = vmul.f32 10.0, %v249_v17 }
  0xe3   :  { %v247_v2 = vmul.f32 %v184_v60, %v5213_v57  ;;  %v188_v47 = vmul.f32 %v5265_v31, %v5265_v31  ;;  %vm440_vm12 = vcmp.lt.f32.partialorder %v5265_v31, 1.0 }
  0xe4   :  { %v5215_v53 = vpop.permute.xlu1 %1306 }
  0xe5   :  { %6741 = vst [vmem:[#allocation117_spill] sm:$0xff] %v5215_v53  ;;  %v5219_v46 = vpop.permute.xlu0 %1301  ;;  %v561_v53 = vsub.f32 1.0, %v498_v50  ;;  %v310_v60 = vmul.f32 %v247_v2, %v5213_v57  ;;  %v248_v50 = vmul.f32 %v185_v43, %v5225_v9  ;;  %v751_v43 = vmul.f32 10.0, %v247_v2 }
  0xe6   :  { %6742 = vst [vmem:[#allocation118_spill] sm:$0xff] %v5219_v46 }
  0xe7   :  { %v687_v41 = vadd.f32 %v624_v63, %v561_v53  ;;  %v373_v25 = vmul.f32 %v310_v60, %v5213_v57  ;;  %v625_v46 = vmul.f32 15.0, %v310_v60  ;;  %v3793_v60 = vld [vmem:[%s6533_s0 + $0x158] sm:$0xff] }
  0xe8   :  { %v5232_v3 = vpop.permute.xlu1 %1316 }
  0xe9   :  { %6743 = vst [vmem:[#allocation119_spill] sm:$0xff] %v5232_v3  ;;  %v5237_v38 = vpop.permute.xlu0 %1311  ;;  %v813_v22 = vsub.f32 %v687_v41, %v750_v7  ;;  %v499_v3 = vmul.f32 6.0, %v373_v25  ;;  %v312_v41 = vmul.f32 %v249_v17, %v5230_v23  ;;  %v5260_v25 = vmul.f32 0.1, %v3793_v60 }
  0xea   :  { %6744 = vst [vmem:[#allocation120_spill] sm:$0xff] %v5237_v38  ;;  %v311_v38 = vmul.f32 %v248_v50, %v5225_v9 }
  0xeb   :  { %v5251_v53 = vsel %vm435_vm7, %v813_v22, 0.0  ;;  %v562_v21 = vsub.f32 1.0, %v499_v3  ;;  %v375_v52 = vmul.f32 %v312_v41, %v5230_v23  ;;  %v187_v60 = vmul.f32 %v5260_v25, %v5260_v25 }
  0xec   :  { %v5246_v16 = vpop.permute.xlu1 %1326  ;;  %1928 = vperm.xlu0 %3393, %v5251_v53   ;;  %v374_v7 = vmul.f32 %v311_v38, %v5225_v9  ;;  %v626_v22 = vmul.f32 15.0, %v311_v38  ;;  %v752_v38 = vmul.f32 10.0, %v248_v50  ;;  %v627_v36 = vmul.f32 15.0, %v312_v41 }
  0xed   :  { %6745 = vst [vmem:[#allocation121_spill] sm:$0xff] %v5246_v16  ;;  %v5249_v63 = vpop.permute.xlu0 %1321  ;;  %v688_v16 = vadd.f32 %v625_v46, %v562_v21  ;;  %v250_v61 = vmul.f32 %v187_v60, %v5260_v25  ;;  %v251_v50 = vmul.f32 %v188_v47, %v5265_v31  ;;  %vm439_vm11 = vcmp.lt.f32.partialorder %v5260_v25, 1.0 }
  0xee   :  { %6746 = vst [vmem:[#allocation122_spill] sm:$0xff] %v5249_v63  ;;  %v500_v63 = vmul.f32 6.0, %v374_v7  ;;  %v501_v7 = vmul.f32 6.0, %v375_v52 }
  0xef   :  { %v814_v46 = vsub.f32 %v688_v16, %v751_v43  ;;  %v313_v16 = vmul.f32 %v250_v61, %v5260_v25  ;;  %v754_v47 = vmul.f32 10.0, %v250_v61 }
  0xf0   :  { %v5267_v2 = vpop.permute.xlu1 %1336  ;;  %v563_v21 = vsub.f32 1.0, %v500_v63 }
  0xf1   :  { %6747 = vst [vmem:[#allocation123_spill] sm:$0xff] %v5267_v2  ;;  %v5269_v3 = vpop.permute.xlu0 %1331  ;;  %v5278_v2 = vsel %vm436_vm8, %v814_v46, 0.0  ;;  %v376_v60 = vmul.f32 %v313_v16, %v5260_v25  ;;  %v314_v46 = vmul.f32 %v251_v50, %v5265_v31 }
  0xf2   :  { %6748 = vst [vmem:[#allocation124_spill] sm:$0xff] %v5269_v3  ;;  %v689_v57 = vadd.f32 %v626_v22, %v563_v21  ;;  %1933 = vperm.xlu1 %3394, %v5278_v2   ;;  %v564_v3 = vsub.f32 1.0, %v501_v7  ;;  %v628_v21 = vmul.f32 15.0, %v313_v16 }
  0xf3   :  { %v502_v22 = vmul.f32 6.0, %v376_v60  ;;  %v377_v7 = vmul.f32 %v314_v46, %v5265_v31  ;;  %v629_v16 = vmul.f32 15.0, %v314_v46  ;;  %v3797_v31 = vld [vmem:[%s6533_s0 + $0x178] sm:$0xff] }
  0xf4   :  { %v815_v63 = vsub.f32 %v689_v57, %v752_v38  ;;  %v5286_v43 = vpop.permute.xlu1 %1346  ;;  %v690_v41 = vadd.f32 %v627_v36, %v564_v3  ;;  %v3795_v36 = vld [vmem:[%s6533_s0 + $0x168] sm:$0xff]  ;;  %v3796_v38 = vld [vmem:[%s6533_s0 + $0x170] sm:$0xff] }
  0xf5   :  { %v5284_v52 = vpop.permute.xlu0 %1341  ;;  %6750 = vst [vmem:[#allocation126_spill] sm:$0xff] %v5286_v43  ;;  %v5298_v3 = vmul.f32 0.1, %v3795_v36  ;;  %v5303_v57 = vmul.f32 0.1, %v3796_v38  ;;  %v755_v43 = vmul.f32 10.0, %v251_v50 }
  0xf6   :  { %6749 = vst [vmem:[#allocation125_spill] sm:$0xff] %v5284_v52  ;;  %v5290_v9 = vsel %vm437_vm9, %v815_v63, 0.0  ;;  %v816_v17 = vsub.f32 %v690_v41, %v753_v19  ;;  %v565_v19 = vsub.f32 1.0, %v502_v22  ;;  %v503_v63 = vmul.f32 6.0, %v377_v7 }
  0xf7   :  { %1938 = vperm.xlu0 %3393, %v5290_v9   ;;  %v189_v61 = vmul.f32 %v5298_v3, %v5298_v3  ;;  %v190_v38 = vmul.f32 %v5303_v57, %v5303_v57  ;;  %vm441_vm13 = vcmp.lt.f32.partialorder %v5298_v3, 1.0  ;;  %vm442_vm14 = vcmp.lt.f32.partialorder %v5303_v57, 1.0 }
  0xf8   :  { %v5305_v23 = vsel %vm438_vm10, %v816_v17, 0.0  ;;  %v5312_v60 = vpop.permute.xlu1 %1356  ;;  %v691_v36 = vadd.f32 %v628_v21, %v565_v19  ;;  %v566_v52 = vsub.f32 1.0, %v503_v63 }
  0xf9   :  { %v5307_v41 = vpop.permute.xlu0 %1351  ;;  %1943 = vperm.xlu1 %3394, %v5305_v23   ;;  %6752 = vst [vmem:[#allocation128_spill] sm:$0xff] %v5312_v60  ;;  %v252_v17 = vmul.f32 %v189_v61, %v5298_v3  ;;  %v253_v7 = vmul.f32 %v190_v38, %v5303_v57 }
  0xfa   :  { %6751 = vst [vmem:[#allocation127_spill] sm:$0xff] %v5307_v41  ;;  %v817_v46 = vsub.f32 %v691_v36, %v754_v47  ;;  %v692_v22 = vadd.f32 %v629_v16, %v566_v52  ;;  %v5336_v16 = vmul.f32 0.1, %v3797_v31  ;;  %v3798_v36 = vld [vmem:[%s6533_s0 + $0x180] sm:$0xff] }
  0xfb   :  { %v315_v41 = vmul.f32 %v252_v17, %v5298_v3  ;;  %v316_v50 = vmul.f32 %v253_v7, %v5303_v57  ;;  %v5342_v38 = vmul.f32 0.1, %v3798_v36  ;;  %v757_v27 = vmul.f32 10.0, %v253_v7 }
  0xfc   :  { %v5321_v34 = vsel %vm439_vm11, %v817_v46, 0.0  ;;  %v818_v21 = vsub.f32 %v692_v22, %v755_v43  ;;  %v5328_v63 = vpop.permute.xlu1 %1366  ;;  %vm443_vm15 = vcmp.lt.f32.partialorder %v5336_v16, 1.0 }
  0xfd   :  { %6753 = vst [vmem:[#allocation129_spill] sm:$0xff] %v5321_v34  ;;  %v5324_v19 = vpop.permute.xlu0 %1361  ;;  %1948 = vperm.xlu0 %3393, %v5321_v34   ;;  %v378_v25 = vmul.f32 %v315_v41, %v5298_v3  ;;  %6755 = vst [vmem:[#allocation131_spill] sm:$0xff] %v5328_v63  ;;  %v379_v47 = vmul.f32 %v316_v50, %v5303_v57  ;;  %v630_v61 = vmul.f32 15.0, %v315_v41  ;;  %v631_v22 = vmul.f32 15.0, %v316_v50 }
  0xfe   :  { %6754 = vst [vmem:[#allocation130_spill] sm:$0xff] %v5324_v19  ;;  %v5330_v52 = vsel %vm440_vm12, %v818_v21, 0.0  ;;  %v191_v21 = vmul.f32 %v5336_v16, %v5336_v16  ;;  %v756_v63 = vmul.f32 10.0, %v252_v17  ;;  %v192_v31 = vmul.f32 %v5342_v38, %v5342_v38  ;;  %v3799_v17 = vld [vmem:[%s6533_s0 + $0x188] sm:$0xff] }
  0xff   :  { %6756 = vst [vmem:[#allocation132_spill] sm:$0xff] %v5330_v52  ;;  %1953 = vperm.xlu1 %3394, %v5330_v52   ;;  %v504_v43 = vmul.f32 6.0, %v378_v25  ;;  %v505_v46 = vmul.f32 6.0, %v379_v47  ;;  %vm444_vm0 = vcmp.lt.f32.partialorder %v5342_v38, 1.0 }
 0x100   :  { %v254_v41 = vmul.f32 %v191_v21, %v5336_v16  ;;  %v255_v36 = vmul.f32 %v192_v31, %v5342_v38  ;;  %v5352_v33 = vpop.permute.xlu1 %1376 }
 0x101   :  { %v567_v19 = vsub.f32 1.0, %v504_v43  ;;  %v568_v60 = vsub.f32 1.0, %v505_v46  ;;  %v5349_v25 = vpop.permute.xlu0 %1371  ;;  %6758 = vst [vmem:[#allocation134_spill] sm:$0xff] %v5352_v33  ;;  %v5359_v43 = vmul.f32 0.1, %v3799_v17 }
 0x102   :  { %6757 = vst [vmem:[#allocation133_spill] sm:$0xff] %v5349_v25  ;;  %v317_v47 = vmul.f32 %v254_v41, %v5336_v16  ;;  %v758_v33 = vmul.f32 10.0, %v254_v41 }
 0x103   :  { %v693_v56 = vadd.f32 %v630_v61, %v567_v19  ;;  %v694_v50 = vadd.f32 %v631_v22, %v568_v60  ;;  %v318_v19 = vmul.f32 %v255_v36, %v5342_v38  ;;  %v3800_v61 = vld [vmem:[%s6533_s0 + $0x190] sm:$0xff]  ;;  %v193_v31 = vmul.f32 %v5359_v43, %v5359_v43 }
 0x104   :  { %v5366_v46 = vmul.f32 0.1, %v3800_v61  ;;  %v380_v60 = vmul.f32 %v317_v47, %v5336_v16  ;;  %v5382_v61 = vpop.permute.xlu1 %1386  ;;  %v3801_v16 = vld [vmem:[%s6533_s0 + $0x198] sm:$0xff]  ;;  %vm445_vm1 = vcmp.lt.f32.partialorder %v5359_v43, 1.0 }
 0x105   :  { %v819_v7 = vsub.f32 %v693_v56, %v756_v63  ;;  %v820_v3 = vsub.f32 %v694_v50, %v757_v27  ;;  %v381_v21 = vmul.f32 %v318_v19, %v5342_v38  ;;  %v632_v63 = vmul.f32 15.0, %v317_v47  ;;  %v5377_v17 = vpop.permute.xlu0 %1381  ;;  %6762 = vst [vmem:[#allocation138_spill] sm:$0xff] %v5382_v61 }
 0x106   :  { %v506_v57 = vmul.f32 6.0, %v380_v60  ;;  %6761 = vst [vmem:[#allocation137_spill] sm:$0xff] %v5377_v17  ;;  %v633_v50 = vmul.f32 15.0, %v318_v19  ;;  %v759_v47 = vmul.f32 10.0, %v255_v36  ;;  %vm446_vm2 = vcmp.lt.f32.partialorder %v5366_v46, 1.0 }
 0x107   :  { %v5369_v22 = vsel %vm441_vm13, %v819_v7, 0.0  ;;  %v5373_v56 = vsel %vm442_vm14, %v820_v3, 0.0  ;;  %v507_v27 = vmul.f32 6.0, %v381_v21  ;;  %v194_v7 = vmul.f32 %v5366_v46, %v5366_v46 }
 0x108   :  { %6759 = vst [vmem:[#allocation135_spill] sm:$0xff] %v5369_v22  ;;  %1958 = vperm.xlu0 %3393, %v5369_v22   ;;  %6760 = vst [vmem:[#allocation136_spill] sm:$0xff] %v5373_v56  ;;  %1963 = vperm.xlu1 %3394, %v5373_v56   ;;  %v569_v25 = vsub.f32 1.0, %v506_v57  ;;  %v256_v3 = vmul.f32 %v193_v31, %v5359_v43 }
 0x109   :  { %v570_v60 = vsub.f32 1.0, %v507_v27  ;;  %v257_v12 = vmul.f32 %v194_v7, %v5366_v46  ;;  %v5391_v41 = vpop.permute.xlu0 %1391  ;;  %v5394_v27 = vpop.permute.xlu1 %1396 }
 0x10a   :  { %v695_v20 = vadd.f32 %v632_v63, %v569_v25  ;;  %v319_v17 = vmul.f32 %v256_v3, %v5359_v43  ;;  %6763 = vst [vmem:[#allocation139_spill] sm:$0xff] %v5391_v41  ;;  %6764 = vst [vmem:[#allocation140_spill] sm:$0xff] %v5394_v27 }
 0x10b   :  { %v696_v21 = vadd.f32 %v633_v50, %v570_v60  ;;  %v320_v19 = vmul.f32 %v257_v12, %v5366_v46  ;;  %v3802_v60 = vld [vmem:[%s6533_s0 + $0x1a0] sm:$0xff] }
 0x10c   :  { %v821_v4 = vsub.f32 %v695_v20, %v758_v33  ;;  %v382_v57 = vmul.f32 %v319_v17, %v5359_v43  ;;  %v634_v7 = vmul.f32 15.0, %v319_v17  ;;  %v5401_v20 = vmul.f32 0.1, %v3801_v16  ;;  %v3804_v43 = vld [vmem:[%s6533_s0 + $0x1b0] sm:$0xff] }
 0x10d   :  { %v822_v31 = vsub.f32 %v696_v21, %v759_v47  ;;  %v383_v36 = vmul.f32 %v320_v19, %v5366_v46  ;;  %v635_v50 = vmul.f32 15.0, %v320_v19  ;;  %v760_v47 = vmul.f32 10.0, %v256_v3  ;;  %v5417_v41 = vpop.permute.xlu0 %1401 }
 0x10e   :  { %v5396_v25 = vsel %vm443_vm15, %v821_v4, 0.0  ;;  %v508_v63 = vmul.f32 6.0, %v382_v57  ;;  %v5409_v4 = vmul.f32 0.1, %v3802_v60  ;;  %v195_v21 = vmul.f32 %v5401_v20, %v5401_v20  ;;  %6767 = vst [vmem:[#allocation143_spill] sm:$0xff] %v5417_v41 }
 0x10f   :  { %6765 = vst [vmem:[#allocation141_spill] sm:$0xff] %v5396_v25  ;;  %1968 = vperm.xlu0 %3393, %v5396_v25   ;;  %v5404_v33 = vsel %vm444_vm0, %v822_v31, 0.0  ;;  %v509_v38 = vmul.f32 6.0, %v383_v36  ;;  %v761_v16 = vmul.f32 10.0, %v257_v12  ;;  %vm447_vm3 = vcmp.lt.f32.partialorder %v5401_v20, 1.0 }
 0x110   :  { %6766 = vst [vmem:[#allocation142_spill] sm:$0xff] %v5404_v33  ;;  %1973 = vperm.xlu1 %3394, %v5404_v33   ;;  %v571_v17 = vsub.f32 1.0, %v508_v63  ;;  %v196_v31 = vmul.f32 %v5409_v4, %v5409_v4  ;;  %v258_v19 = vmul.f32 %v195_v21, %v5401_v20  ;;  %v5421_v63 = vpop.permute.xlu1 %1733  ;;  %vm448_vm4 = vcmp.lt.f32.partialorder %v5409_v4, 1.0 }
 0x111   :  { %v572_v57 = vsub.f32 1.0, %v509_v38  ;;  %6768 = vst [vmem:[#allocation144_spill] sm:$0xff] %v5421_v63  ;;  %vm3243_vm15 = vcmask 523264  }
 0x112   :  { %v697_v36 = vadd.f32 %v634_v7, %v571_v17  ;;  %v259_v27 = vmul.f32 %v196_v31, %v5409_v4  ;;  %v321_v12 = vmul.f32 %v258_v19, %v5401_v20  ;;  %v3803_v7 = vld [vmem:[%s6533_s0 + $0x1a8] sm:$0xff]  ;;  %v762_v63 = vmul.f32 10.0, %v258_v19 }
 0x113   :  { %v698_v60 = vadd.f32 %v635_v50, %v572_v57  ;;  %v5428_v38 = vmul.f32 0.1, %v3803_v7  ;;  %v5434_v50 = vmul.f32 0.1, %v3804_v43  ;;  %v5446_v7 = vpop.permute.xlu0 %1738 }
 0x114   :  { %v823_v3 = vsub.f32 %v697_v36, %v760_v47  ;;  %v322_v21 = vmul.f32 %v259_v27, %v5409_v4  ;;  %v384_v46 = vmul.f32 %v321_v12, %v5401_v20  ;;  %v636_v36 = vmul.f32 15.0, %v321_v12  ;;  %6771 = vst [vmem:[#allocation147_spill] sm:$0xff] %v5446_v7  ;;  %v5450_v61 = vpop.permute.xlu1 %1743 }
 0x115   :  { %v824_v17 = vsub.f32 %v698_v60, %v761_v16  ;;  %v197_v60 = vmul.f32 %v5428_v38, %v5428_v38  ;;  %v198_v41 = vmul.f32 %v5434_v50, %v5434_v50  ;;  %6772 = vst [vmem:[#allocation148_spill] sm:$0xff] %v5450_v61  ;;  %vm449_vm5 = vcmp.lt.f32.partialorder %v5428_v38, 1.0 }
 0x116   :  { %v5436_v47 = vsel %vm445_vm1, %v823_v3, 0.0  ;;  %v385_v31 = vmul.f32 %v322_v21, %v5409_v4  ;;  %v510_v16 = vmul.f32 6.0, %v384_v46  ;;  %v637_v3 = vmul.f32 15.0, %v322_v21 }
 0x117   :  { %6769 = vst [vmem:[#allocation145_spill] sm:$0xff] %v5436_v47  ;;  %1978 = vperm.xlu0 %3393, %v5436_v47   ;;  %v5440_v57 = vsel %vm446_vm2, %v824_v17, 0.0  ;;  %v260_v47 = vmul.f32 %v197_v60, %v5428_v38  ;;  %v261_v12 = vmul.f32 %v198_v41, %v5434_v50  ;;  %v5459_v19 = vpop.permute.xlu0 %1748  ;;  %vm450_vm6 = vcmp.lt.f32.partialorder %v5434_v50, 1.0 }
 0x118   :  { %6770 = vst [vmem:[#allocation146_spill] sm:$0xff] %v5440_v57  ;;  %1983 = vperm.xlu1 %3394, %v5440_v57   ;;  %v511_v43 = vmul.f32 6.0, %v385_v31  ;;  %v573_v17 = vsub.f32 1.0, %v510_v16  ;;  %v763_v57 = vmul.f32 10.0, %v259_v27  ;;  %6773 = vst [vmem:[#allocation149_spill] sm:$0xff] %v5459_v19 }
 0x119   :  { %v323_v33 = vmul.f32 %v260_v47, %v5428_v38  ;;  %v324_v21 = vmul.f32 %v261_v12, %v5434_v50 }
 0x11a   :  { %v574_v25 = vsub.f32 1.0, %v511_v43  ;;  %v699_v46 = vadd.f32 %v636_v36, %v573_v17  ;;  %v5462_v43 = vpop.permute.xlu1 %1753 }
 0x11b   :  { %v386_v16 = vmul.f32 %v323_v33, %v5428_v38  ;;  %v387_v27 = vmul.f32 %v324_v21, %v5434_v50  ;;  %6774 = vst [vmem:[#allocation150_spill] sm:$0xff] %v5462_v43  ;;  %v638_v17 = vmul.f32 15.0, %v323_v33  ;;  %v5485_v43 = vpop.permute.xlu0 %1758  ;;  %v3808_v38 = vld [vmem:[%s6533_s0 + $0x1d0] sm:$0xff] }
 0x11c   :  { %v700_v31 = vadd.f32 %v637_v3, %v574_v25  ;;  %v825_v7 = vsub.f32 %v699_v46, %v762_v63  ;;  %v3805_v25 = vld [vmem:[%s6533_s0 + $0x1b8] sm:$0xff]  ;;  %v3806_v3 = vld [vmem:[%s6533_s0 + $0x1c0] sm:$0xff]  ;;  %v764_v46 = vmul.f32 10.0, %v260_v47  ;;  %6777 = vst [vmem:[#allocation153_spill] sm:$0xff] %v5485_v43 }
 0x11d   :  { %v512_v36 = vmul.f32 6.0, %v386_v16  ;;  %v5469_v20 = vmul.f32 0.1, %v3805_v25  ;;  %v513_v63 = vmul.f32 6.0, %v387_v27  ;;  %v765_v25 = vmul.f32 10.0, %v261_v12 }
 0x11e   :  { %v826_v60 = vsub.f32 %v700_v31, %v763_v57  ;;  %v5464_v41 = vsel %vm447_vm3, %v825_v7, 0.0  ;;  %v639_v57 = vmul.f32 15.0, %v324_v21  ;;  %v5477_v7 = vmul.f32 0.1, %v3806_v3 }
 0x11f   :  { %6775 = vst [vmem:[#allocation151_spill] sm:$0xff] %v5464_v41  ;;  %1988 = vperm.xlu0 %3393, %v5464_v41   ;;  %v575_v33 = vsub.f32 1.0, %v512_v36  ;;  %v199_v31 = vmul.f32 %v5469_v20, %v5469_v20  ;;  %v576_v16 = vsub.f32 1.0, %v513_v63  ;;  %v5489_v36 = vpop.permute.xlu1 %1763  ;;  %vm451_vm7 = vcmp.lt.f32.partialorder %v5469_v20, 1.0 }
 0x120   :  { %v5472_v4 = vsel %vm448_vm4, %v826_v60, 0.0  ;;  %v200_v60 = vmul.f32 %v5477_v7, %v5477_v7  ;;  %6778 = vst [vmem:[#allocation154_spill] sm:$0xff] %v5489_v36  ;;  %vm452_vm8 = vcmp.lt.f32.partialorder %v5477_v7, 1.0 }
 0x121   :  { %6776 = vst [vmem:[#allocation152_spill] sm:$0xff] %v5472_v4  ;;  %1993 = vperm.xlu1 %3394, %v5472_v4   ;;  %v701_v27 = vadd.f32 %v638_v17, %v575_v33  ;;  %v262_v21 = vmul.f32 %v199_v31, %v5469_v20  ;;  %v702_v3 = vadd.f32 %v639_v57, %v576_v16  ;;  %v3807_v17 = vld [vmem:[%s6533_s0 + $0x1c8] sm:$0xff]  ;;  %v5502_v57 = vmul.f32 0.1, %v3808_v38 }
 0x122   :  { %v263_v61 = vmul.f32 %v200_v60, %v5477_v7  ;;  %v5496_v63 = vmul.f32 0.1, %v3807_v17  ;;  %v5514_v17 = vpop.permute.xlu0 %1768 }
 0x123   :  { %v827_v47 = vsub.f32 %v701_v27, %v764_v46  ;;  %v325_v12 = vmul.f32 %v262_v21, %v5469_v20  ;;  %v828_v33 = vsub.f32 %v702_v3, %v765_v25  ;;  %6781 = vst [vmem:[#allocation157_spill] sm:$0xff] %v5514_v17  ;;  %v202_v36 = vmul.f32 %v5502_v57, %v5502_v57  ;;  %v5518_v43 = vpop.permute.xlu1 %1773 }
 0x124   :  { %v326_v31 = vmul.f32 %v263_v61, %v5477_v7  ;;  %v201_v3 = vmul.f32 %v5496_v63, %v5496_v63  ;;  %6782 = vst [vmem:[#allocation158_spill] sm:$0xff] %v5518_v43  ;;  %v766_v19 = vmul.f32 10.0, %v262_v21  ;;  %vm453_vm9 = vcmp.lt.f32.partialorder %v5496_v63, 1.0 }
 0x125   :  { %v5504_v46 = vsel %vm449_vm5, %v827_v47, 0.0  ;;  %v388_v50 = vmul.f32 %v325_v12, %v5469_v20  ;;  %v5508_v16 = vsel %vm450_vm6, %v828_v33, 0.0  ;;  %v640_v27 = vmul.f32 15.0, %v325_v12 }
 0x126   :  { %6779 = vst [vmem:[#allocation155_spill] sm:$0xff] %v5504_v46  ;;  %1998 = vperm.xlu0 %3393, %v5504_v46   ;;  %6780 = vst [vmem:[#allocation156_spill] sm:$0xff] %v5508_v16  ;;  %v389_v60 = vmul.f32 %v326_v31, %v5477_v7  ;;  %2003 = vperm.xlu1 %3394, %v5508_v16   ;;  %v641_v47 = vmul.f32 15.0, %v326_v31  ;;  %v264_v46 = vmul.f32 %v201_v3, %v5496_v63  ;;  %v5527_v21 = vpop.permute.xlu0 %1778 }
 0x127   :  { %v514_v25 = vmul.f32 6.0, %v388_v50  ;;  %v767_v16 = vmul.f32 10.0, %v263_v61  ;;  %v265_v12 = vmul.f32 %v202_v36, %v5502_v57  ;;  %6783 = vst [vmem:[#allocation159_spill] sm:$0xff] %v5527_v21  ;;  %vm454_vm10 = vcmp.lt.f32.partialorder %v5502_v57, 1.0 }
 0x128   :  { %v515_v38 = vmul.f32 6.0, %v389_v60  ;;  %v327_v4 = vmul.f32 %v264_v46, %v5496_v63 }
 0x129   :  { %v577_v33 = vsub.f32 1.0, %v514_v25  ;;  %v328_v31 = vmul.f32 %v265_v12, %v5502_v57 }
 0x12a   :  { %v578_v41 = vsub.f32 1.0, %v515_v38  ;;  %v390_v25 = vmul.f32 %v327_v4, %v5496_v63  ;;  %v5530_v38 = vpop.permute.xlu1 %1783  ;;  %v3812_v63 = vld [vmem:[%s6533_s0 + $0x1f0] sm:$0xff] }
 0x12b   :  { %v703_v50 = vadd.f32 %v640_v27, %v577_v33  ;;  %v391_v61 = vmul.f32 %v328_v31, %v5502_v57  ;;  %6784 = vst [vmem:[#allocation160_spill] sm:$0xff] %v5530_v38  ;;  %v642_v33 = vmul.f32 15.0, %v327_v4 }
 0x12c   :  { %v704_v60 = vadd.f32 %v641_v47, %v578_v41  ;;  %v516_v27 = vmul.f32 6.0, %v390_v25  ;;  %v3809_v41 = vld [vmem:[%s6533_s0 + $0x1d8] sm:$0xff]  ;;  %v3810_v47 = vld [vmem:[%s6533_s0 + $0x1e0] sm:$0xff] }
 0x12d   :  { %v829_v17 = vsub.f32 %v703_v50, %v766_v19  ;;  %v5537_v19 = vmul.f32 0.1, %v3809_v41  ;;  %v517_v7 = vmul.f32 6.0, %v391_v61  ;;  %v768_v50 = vmul.f32 10.0, %v264_v46  ;;  %v5549_v61 = vpop.permute.xlu0 %1788 }
 0x12e   :  { %v830_v3 = vsub.f32 %v704_v60, %v767_v16  ;;  %v643_v16 = vmul.f32 15.0, %v328_v31  ;;  %v579_v4 = vsub.f32 1.0, %v516_v27  ;;  %v769_v41 = vmul.f32 10.0, %v265_v12  ;;  %6787 = vst [vmem:[#allocation163_spill] sm:$0xff] %v5549_v61  ;;  %v3811_v12 = vld [vmem:[%s6533_s0 + $0x1e8] sm:$0xff] }
 0x12f   :  { %v5532_v36 = vsel %vm451_vm7, %v829_v17, 0.0  ;;  %v141_v17 = vmul.f32 0.1, %v3810_v47  ;;  %v203_v60 = vmul.f32 %v5537_v19, %v5537_v19  ;;  %v580_v25 = vsub.f32 1.0, %v517_v7  ;;  %v5552_v47 = vpop.permute.xlu1 %1793 }
 0x130   :  { %6785 = vst [vmem:[#allocation161_spill] sm:$0xff] %v5532_v36  ;;  %2008 = vperm.xlu0 %3393, %v5532_v36   ;;  %v5540_v20 = vsel %vm452_vm8, %v830_v3, 0.0  ;;  %v705_v43 = vadd.f32 %v642_v33, %v579_v4  ;;  %6788 = vst [vmem:[#allocation164_spill] sm:$0xff] %v5552_v47  ;;  %v142_v27 = vmul.f32 0.1, %v3811_v12  ;;  %vm455_vm11 = vcmp.lt.f32.partialorder %v5537_v19, 1.0 }
 0x131   :  { %6786 = vst [vmem:[#allocation162_spill] sm:$0xff] %v5540_v20  ;;  %2013 = vperm.xlu1 %3394, %v5540_v20   ;;  %v204_v38 = vmul.f32 %v141_v17, %v141_v17  ;;  %v266_v3 = vmul.f32 %v203_v60, %v5537_v19  ;;  %v706_v31 = vadd.f32 %v643_v16, %v580_v25  ;;  %v143_v16 = vmul.f32 0.1, %v3812_v63 }
 0x132   :  { %v831_v36 = vsub.f32 %v705_v43, %v768_v50  ;;  %v205_v25 = vmul.f32 %v142_v27, %v142_v27  ;;  %vm456_vm12 = vcmp.lt.f32.partialorder %v141_v17, 1.0  ;;  %vm457_vm13 = vcmp.lt.f32.partialorder %v142_v27, 1.0 }
 0x133   :  { %v267_v21 = vmul.f32 %v204_v38, %v141_v17  ;;  %v329_v46 = vmul.f32 %v266_v3, %v5537_v19  ;;  %v832_v33 = vsub.f32 %v706_v31, %v769_v41  ;;  %v5569_v41 = vpop.permute.xlu0 %1798  ;;  %v206_v47 = vmul.f32 %v143_v16, %v143_v16  ;;  %v5571_v63 = vpop.permute.xlu1 %1803 }
 0x134   :  { %v5562_v38 = vsel %vm453_vm9, %v831_v36, 0.0  ;;  %6791 = vst [vmem:[#allocation167_spill] sm:$0xff] %v5569_v41  ;;  %6792 = vst [vmem:[#allocation168_spill] sm:$0xff] %v5571_v63  ;;  %v770_v61 = vmul.f32 10.0, %v266_v3  ;;  %v268_v20 = vmul.f32 %v205_v25, %v142_v27  ;;  %vm458_vm14 = vcmp.lt.f32.partialorder %v143_v16, 1.0 }
 0x135   :  { %v330_v7 = vmul.f32 %v267_v21, %v141_v17  ;;  %6789 = vst [vmem:[#allocation165_spill] sm:$0xff] %v5562_v38  ;;  %v392_v43 = vmul.f32 %v329_v46, %v5537_v19  ;;  %2018 = vperm.xlu0 %3393, %v5562_v38   ;;  %v5566_v57 = vsel %vm454_vm10, %v832_v33, 0.0  ;;  %v644_v60 = vmul.f32 15.0, %v329_v46 }
 0x136   :  { %6790 = vst [vmem:[#allocation166_spill] sm:$0xff] %v5566_v57  ;;  %2023 = vperm.xlu1 %3394, %v5566_v57   ;;  %v771_v38 = vmul.f32 10.0, %v267_v21  ;;  %v269_v33 = vmul.f32 %v206_v47, %v143_v16  ;;  %v331_v34 = vmul.f32 %v268_v20, %v142_v27 }
 0x137   :  { %v393_v4 = vmul.f32 %v330_v7, %v141_v17  ;;  %v518_v50 = vmul.f32 6.0, %v392_v43  ;;  %v645_v12 = vmul.f32 15.0, %v330_v7  ;;  %v5576_v63 = vpop.permute.xlu1 %1813  ;;  %v772_v17 = vmul.f32 10.0, %v268_v20 }
 0x138   :  { %v332_v46 = vmul.f32 %v269_v33, %v143_v16  ;;  %v394_v41 = vmul.f32 %v331_v34, %v142_v27  ;;  %6794 = vst [vmem:[#allocation170_spill] sm:$0xff] %v5576_v63  ;;  %v646_v21 = vmul.f32 15.0, %v331_v34  ;;  %v6799_v27 = vld [vmem:[#allocation6_spill] sm:$0xff] }
 0x139   :  { %v519_v31 = vmul.f32 6.0, %v393_v4  ;;  %v581_v36 = vsub.f32 1.0, %v518_v50  ;;  %v5574_v4 = vpop.permute.xlu0 %1808 }
 0x13a   :  { %6793 = vst [vmem:[#allocation169_spill] sm:$0xff] %v5574_v4  ;;  %v395_v52 = vmul.f32 %v332_v46, %v143_v16  ;;  %v520_v50 = vmul.f32 6.0, %v394_v41 }
 0x13b   :  { %v582_v22 = vsub.f32 1.0, %v519_v31  ;;  %v707_v56 = vadd.f32 %v644_v60, %v581_v36  ;;  %v773_v60 = vmul.f32 10.0, %v269_v33  ;;  %v5586_v31 = vpop.permute.xlu1 %1823  ;;  %v3840_v33 = vmov 1  }
 0x13c   :  { %v521_v19 = vmul.f32 6.0, %v395_v52  ;;  %6796 = vst [vmem:[#allocation172_spill] sm:$0xff] %v5586_v31 }
 0x13d   :  { %v708_v43 = vadd.f32 %v645_v12, %v582_v22  ;;  %v833_v57 = vsub.f32 %v707_v56, %v770_v61  ;;  %v647_v22 = vmul.f32 15.0, %v332_v46  ;;  %v583_v56 = vsub.f32 1.0, %v520_v50  ;;  %v5584_v25 = vpop.permute.xlu0 %1818  ;;  %v6804_v50 = vld [vmem:[#allocation5_spill] sm:$0xff] }
 0x13e   :  { %v584_v61 = vsub.f32 1.0, %v521_v19  ;;  %6795 = vst [vmem:[#allocation171_spill] sm:$0xff] %v5584_v25 }
 0x13f   :  { %v834_v7 = vsub.f32 %v708_v43, %v771_v38  ;;  %v5578_v3 = vsel %vm455_vm11, %v833_v57, 0.0  ;;  %v709_v38 = vadd.f32 %v646_v21, %v583_v56  ;;  %v5596_v36 = vpop.permute.xlu1 %1833  ;;  %v6800_v43 = vld [vmem:[#allocation8_spill] sm:$0xff]  ;;  %v6805_v21 = vld [vmem:[#allocation9_spill] sm:$0xff] }
 0x140   :  { %2028 = vperm.xlu0 %3393, %v5578_v3   ;;  %v710_v57 = vadd.f32 %v647_v22, %v584_v61  ;;  %6798 = vst [vmem:[#allocation174_spill] sm:$0xff] %v5596_v36  ;;  %v6807_v22 = vld [vmem:[#allocation10_spill] sm:$0xff]  ;;  %v6810_v61 = vld [vmem:[#allocation12_spill] sm:$0xff] }
 0x141   :  { %v5581_v47 = vsel %vm456_vm12, %v834_v7, 0.0  ;;  %v835_v34 = vsub.f32 %v709_v38, %v772_v17  ;;  %v5594_v20 = vpop.permute.xlu0 %1828  ;;  %v6803_v7 = vld [vmem:[#allocation7_spill] sm:$0xff]  ;;  %v6918_v36 = vld [vmem:[#allocation142_spill] sm:$0xff] }
 0x142   :  { %2033 = vperm.xlu1 %3394, %v5581_v47   ;;  %v836_v41 = vsub.f32 %v710_v57, %v773_v60  ;;  %6797 = vst [vmem:[#allocation173_spill] sm:$0xff] %v5594_v20  ;;  %v6809_v17 = vld [vmem:[#allocation11_spill] sm:$0xff]  ;;  %v6813_v57 = vld [vmem:[#allocation13_spill] sm:$0xff]  ;;  %v6922_v20 = vld [vmem:[#allocation146_spill] sm:$0xff] }
 0x143   :  { %v5588_v12 = vsel %vm457_vm13, %v835_v34, 0.0  ;;  %v5602_v46 = vpop.permute.xlu1 %1843  ;;  %v6814_v34 = vld [vmem:[#allocation14_spill] sm:$0xff] }
 0x144   :  { %2038 = vperm.xlu0 %3393, %v5588_v12   ;;  %v5591_v52 = vsel %vm458_vm14, %v836_v41, 0.0  ;;  %6802 = vst [vmem:[#allocation8_spill] sm:$0xff] %v5602_v46  ;;  %v6815_v41 = vld [vmem:[#allocation15_spill] sm:$0xff] }
 0x145   :  { %v5600_v16 = vpop.permute.xlu0 %1838  ;;  %v6915_v46 = vld [vmem:[#allocation135_spill] sm:$0xff] }
 0x146   :  { %2043 = vperm.xlu1 %3394, %v5591_v52   ;;  %6801 = vst [vmem:[#allocation6_spill] sm:$0xff] %v5600_v16  ;;  %v6919_v16 = vld [vmem:[#allocation141_spill] sm:$0xff] }
 0x147   :  { %v5610_v56 = vpop.permute.xlu1 %1853 }
 0x148   :  { %3395 = vset.pattern.permute.xlu0 %v3840_v33  ;;  %6808 = vst [vmem:[#allocation5_spill] sm:$0xff] %v5610_v56  ;;  %v6912_v56 = vld [vmem:[#allocation129_spill] sm:$0xff] }
 0x149   :  { %2110 = vperm.xlu0 %3395, %v6799_v27   ;;  %v5607_v19 = vpop.permute.xlu0 %1848  ;;  %v6817_v27 = vld [vmem:[#allocation16_spill] sm:$0xff] }
 0x14a   :  { %3396 = vset.pattern.permute.xlu1 %v3840_v33  ;;  %6806 = vst [vmem:[#allocation7_spill] sm:$0xff] %v5607_v19  ;;  %v1537_v19 = vlaneseq }
 0x14b   :  { %2114 = vperm.xlu1 %3396, %v6800_v43   ;;  %v5616_v38 = vpop.permute.xlu1 %1863 }
 0x14c   :  { %6812 = vst [vmem:[#allocation10_spill] sm:$0xff] %v5616_v38  ;;  %v6910_v38 = vld [vmem:[#allocation85_spill] sm:$0xff] }
 0x14d   :  { %2122 = vperm.xlu0 %3395, %v6803_v7   ;;  %v5614_v60 = vpop.permute.xlu0 %1858  ;;  %v6819_v7 = vld [vmem:[#allocation18_spill] sm:$0xff] }
 0x14e   :  { %6811 = vst [vmem:[#allocation9_spill] sm:$0xff] %v5614_v60 }
 0x14f   :  { %2118 = vperm.xlu1 %3396, %v6804_v50   ;;  %v5624_v43 = vpop.permute.xlu1 %1873  ;;  %v6820_v50 = vld [vmem:[#allocation19_spill] sm:$0xff] }
 0x150   :  { %6818 = vst [vmem:[#allocation12_spill] sm:$0xff] %v5624_v43  ;;  %v6829_v43 = vld [vmem:[#allocation25_spill] sm:$0xff] }
 0x151   :  { %2130 = vperm.xlu0 %3395, %v6805_v21   ;;  %v5621_v33 = vpop.permute.xlu0 %1868 }
 0x152   :  { %6816 = vst [vmem:[#allocation11_spill] sm:$0xff] %v5621_v33 }
 0x153   :  { %2126 = vperm.xlu1 %3396, %v6807_v22   ;;  %v5630_v22 = vpop.permute.xlu1 %1883 }
 0x154   :  { %6822 = vst [vmem:[#allocation14_spill] sm:$0xff] %v5630_v22  ;;  %v6833_v22 = vld [vmem:[#allocation27_spill] sm:$0xff] }
 0x155   :  { %2138 = vperm.xlu0 %3395, %v6809_v17   ;;  %v5628_v21 = vpop.permute.xlu0 %1878  ;;  %v6823_v17 = vld [vmem:[#allocation20_spill] sm:$0xff] }
 0x156   :  { %6821 = vst [vmem:[#allocation13_spill] sm:$0xff] %v5628_v21 }
 0x157   :  { %2134 = vperm.xlu1 %3396, %v6810_v61   ;;  %v6824_v61 = vld [vmem:[#allocation22_spill] sm:$0xff] }
 0x159   :  { %2146 = vperm.xlu0 %3395, %v6813_v57   ;;  %v6825_v57 = vld [vmem:[#allocation23_spill] sm:$0xff] }
 0x15b   :  { %2142 = vperm.xlu1 %3396, %v6814_v34   ;;  %v5635_v34 = vpop.permute.xlu0 %1888 }
 0x15c   :  { %6826 = vst [vmem:[#allocation15_spill] sm:$0xff] %v5635_v34  ;;  %v6837_v34 = vld [vmem:[#allocation30_spill] sm:$0xff] }
 0x15d   :  { %2154 = vperm.xlu0 %3395, %v6815_v41   ;;  %v6827_v41 = vld [vmem:[#allocation24_spill] sm:$0xff] }
 0x15f   :  { %2150 = vperm.xlu1 %3396, %v6817_v27   ;;  %v5638_v27 = vpop.permute.xlu1 %1893 }
 0x160   :  { %6828 = vst [vmem:[#allocation16_spill] sm:$0xff] %v5638_v27  ;;  %v6839_v27 = vld [vmem:[#allocation31_spill] sm:$0xff] }
 0x161   :  { %2162 = vperm.xlu0 %3395, %v6819_v7   ;;  %v6830_v7 = vld [vmem:[#allocation26_spill] sm:$0xff] }
 0x163   :  { %2158 = vperm.xlu1 %3396, %v6820_v50   ;;  %v5642_v50 = vpop.permute.xlu0 %1898  ;;  %v5644_v21 = vpop.permute.xlu1 %1903 }
 0x164   :  { %6831 = vst [vmem:[#allocation18_spill] sm:$0xff] %v5642_v50  ;;  %6832 = vst [vmem:[#allocation19_spill] sm:$0xff] %v5644_v21  ;;  %v6843_v21 = vld [vmem:[#allocation33_spill] sm:$0xff] }
 0x165   :  { %2170 = vperm.xlu0 %3395, %v6823_v17   ;;  %v6834_v17 = vld [vmem:[#allocation28_spill] sm:$0xff] }
 0x167   :  { %2166 = vperm.xlu1 %3396, %v6824_v61   ;;  %v6835_v61 = vld [vmem:[#allocation29_spill] sm:$0xff] }
 0x169   :  { %2178 = vperm.xlu0 %3395, %v6825_v57   ;;  %v5649_v57 = vpop.permute.xlu0 %1908 }
 0x16a   :  { %6836 = vst [vmem:[#allocation20_spill] sm:$0xff] %v5649_v57  ;;  %v6847_v57 = vld [vmem:[#allocation36_spill] sm:$0xff] }
 0x16b   :  { %2174 = vperm.xlu1 %3396, %v6827_v41   ;;  %v5652_v41 = vpop.permute.xlu1 %1913 }
 0x16c   :  { %6838 = vst [vmem:[#allocation22_spill] sm:$0xff] %v5652_v41  ;;  %v6849_v41 = vld [vmem:[#allocation37_spill] sm:$0xff] }
 0x16d   :  { %2186 = vperm.xlu0 %3395, %v6829_v43   ;;  %v6840_v43 = vld [vmem:[#allocation32_spill] sm:$0xff] }
 0x16f   :  { %2182 = vperm.xlu1 %3396, %v6830_v7   ;;  %v5656_v7 = vpop.permute.xlu0 %1918  ;;  %v5658_v50 = vpop.permute.xlu1 %1923 }
 0x170   :  { %6841 = vst [vmem:[#allocation23_spill] sm:$0xff] %v5656_v7  ;;  %6842 = vst [vmem:[#allocation24_spill] sm:$0xff] %v5658_v50  ;;  %v6853_v50 = vld [vmem:[#allocation39_spill] sm:$0xff] }
 0x171   :  { %2194 = vperm.xlu0 %3395, %v6833_v22   ;;  %v6844_v22 = vld [vmem:[#allocation34_spill] sm:$0xff] }
 0x173   :  { %2190 = vperm.xlu1 %3396, %v6834_v17   ;;  %v6845_v17 = vld [vmem:[#allocation35_spill] sm:$0xff] }
 0x175   :  { %2202 = vperm.xlu0 %3395, %v6835_v61   ;;  %v5663_v61 = vpop.permute.xlu0 %1928 }
 0x176   :  { %6846 = vst [vmem:[#allocation25_spill] sm:$0xff] %v5663_v61  ;;  %v6857_v61 = vld [vmem:[#allocation42_spill] sm:$0xff] }
 0x177   :  { %2198 = vperm.xlu1 %3396, %v6837_v34   ;;  %v5666_v34 = vpop.permute.xlu1 %1933 }
 0x178   :  { %6848 = vst [vmem:[#allocation26_spill] sm:$0xff] %v5666_v34  ;;  %v6859_v34 = vld [vmem:[#allocation43_spill] sm:$0xff] }
 0x179   :  { %2210 = vperm.xlu0 %3395, %v6839_v27   ;;  %v6850_v27 = vld [vmem:[#allocation38_spill] sm:$0xff] }
 0x17b   :  { %2206 = vperm.xlu1 %3396, %v6840_v43   ;;  %v5670_v43 = vpop.permute.xlu0 %1938  ;;  %v5672_v7 = vpop.permute.xlu1 %1943 }
 0x17c   :  { %6851 = vst [vmem:[#allocation27_spill] sm:$0xff] %v5670_v43  ;;  %6852 = vst [vmem:[#allocation28_spill] sm:$0xff] %v5672_v7  ;;  %v6863_v7 = vld [vmem:[#allocation45_spill] sm:$0xff] }
 0x17d   :  { %2218 = vperm.xlu0 %3395, %v6843_v21   ;;  %v6854_v21 = vld [vmem:[#allocation40_spill] sm:$0xff] }
 0x17f   :  { %2214 = vperm.xlu1 %3396, %v6844_v22   ;;  %v6855_v22 = vld [vmem:[#allocation41_spill] sm:$0xff] }
 0x181   :  { %2226 = vperm.xlu0 %3395, %v6845_v17   ;;  %v5677_v17 = vpop.permute.xlu0 %1948 }
 0x182   :  { %6856 = vst [vmem:[#allocation29_spill] sm:$0xff] %v5677_v17  ;;  %v6867_v17 = vld [vmem:[#allocation48_spill] sm:$0xff] }
 0x183   :  { %2222 = vperm.xlu1 %3396, %v6847_v57   ;;  %v5680_v57 = vpop.permute.xlu1 %1953 }
 0x184   :  { %6858 = vst [vmem:[#allocation30_spill] sm:$0xff] %v5680_v57  ;;  %v6869_v57 = vld [vmem:[#allocation49_spill] sm:$0xff] }
 0x185   :  { %2234 = vperm.xlu0 %3395, %v6849_v41   ;;  %v6860_v41 = vld [vmem:[#allocation44_spill] sm:$0xff] }
 0x187   :  { %2230 = vperm.xlu1 %3396, %v6850_v27   ;;  %v5684_v27 = vpop.permute.xlu0 %1958  ;;  %v5686_v43 = vpop.permute.xlu1 %1963 }
 0x188   :  { %6861 = vst [vmem:[#allocation31_spill] sm:$0xff] %v5684_v27  ;;  %6862 = vst [vmem:[#allocation32_spill] sm:$0xff] %v5686_v43  ;;  %v6873_v43 = vld [vmem:[#allocation51_spill] sm:$0xff] }
 0x189   :  { %2242 = vperm.xlu0 %3395, %v6853_v50   ;;  %v6864_v50 = vld [vmem:[#allocation46_spill] sm:$0xff] }
 0x18b   :  { %2238 = vperm.xlu1 %3396, %v6854_v21   ;;  %v6865_v21 = vld [vmem:[#allocation47_spill] sm:$0xff] }
 0x18d   :  { %2250 = vperm.xlu0 %3395, %v6855_v22  }
 0x18e   :  { %v5691_v22 = vpop.permute.xlu0 %1968 }
 0x18f   :  { %2246 = vperm.xlu1 %3396, %v6857_v61   ;;  %6866 = vst [vmem:[#allocation33_spill] sm:$0xff] %v5691_v22  ;;  %v5694_v61 = vpop.permute.xlu1 %1973  ;;  %v6877_v22 = vld [vmem:[#allocation54_spill] sm:$0xff] }
 0x190   :  { %6868 = vst [vmem:[#allocation34_spill] sm:$0xff] %v5694_v61  ;;  %v6879_v61 = vld [vmem:[#allocation55_spill] sm:$0xff] }
 0x191   :  { %2258 = vperm.xlu0 %3395, %v6859_v34   ;;  %v6870_v34 = vld [vmem:[#allocation50_spill] sm:$0xff] }
 0x193   :  { %2254 = vperm.xlu1 %3396, %v6860_v41  }
 0x195   :  { %2266 = vperm.xlu0 %3395, %v6863_v7   ;;  %v6874_v7 = vld [vmem:[#allocation52_spill] sm:$0xff] }
 0x196   :  { %v5698_v41 = vpop.permute.xlu0 %1978 }
 0x197   :  { %2262 = vperm.xlu1 %3396, %v6864_v50   ;;  %6871 = vst [vmem:[#allocation35_spill] sm:$0xff] %v5698_v41  ;;  %v5700_v27 = vpop.permute.xlu1 %1983  ;;  %v6875_v50 = vld [vmem:[#allocation53_spill] sm:$0xff] }
 0x198   :  { %6872 = vst [vmem:[#allocation36_spill] sm:$0xff] %v5700_v27  ;;  %v6883_v27 = vld [vmem:[#allocation57_spill] sm:$0xff] }
 0x199   :  { %2274 = vperm.xlu0 %3395, %v6865_v21  }
 0x19b   :  { %2270 = vperm.xlu1 %3396, %v6867_v17  }
 0x19d   :  { %2282 = vperm.xlu0 %3395, %v6869_v57   ;;  %v6880_v57 = vld [vmem:[#allocation56_spill] sm:$0xff] }
 0x19e   :  { %v5705_v21 = vpop.permute.xlu0 %1988 }
 0x19f   :  { %2278 = vperm.xlu1 %3396, %v6870_v34   ;;  %6876 = vst [vmem:[#allocation37_spill] sm:$0xff] %v5705_v21  ;;  %v6887_v21 = vld [vmem:[#allocation60_spill] sm:$0xff] }
 0x1a0   :  { %v5708_v17 = vpop.permute.xlu1 %1993 }
 0x1a1   :  { %2290 = vperm.xlu0 %3395, %v6873_v43   ;;  %6878 = vst [vmem:[#allocation38_spill] sm:$0xff] %v5708_v17  ;;  %v6884_v43 = vld [vmem:[#allocation58_spill] sm:$0xff]  ;;  %v6889_v17 = vld [vmem:[#allocation61_spill] sm:$0xff] }
 0x1a3   :  { %2286 = vperm.xlu1 %3396, %v6874_v7   ;;  %v6885_v7 = vld [vmem:[#allocation59_spill] sm:$0xff] }
 0x1a5   :  { %2298 = vperm.xlu0 %3395, %v6875_v50   ;;  %v5712_v34 = vpop.permute.xlu0 %1998  ;;  %v5714_v41 = vpop.permute.xlu1 %2003 }
 0x1a6   :  { %6881 = vst [vmem:[#allocation39_spill] sm:$0xff] %v5712_v34  ;;  %6882 = vst [vmem:[#allocation40_spill] sm:$0xff] %v5714_v41 }
 0x1a7   :  { %2294 = vperm.xlu1 %3396, %v6877_v22  }
 0x1a9   :  { %2306 = vperm.xlu0 %3395, %v6879_v61  }
 0x1ab   :  { %2302 = vperm.xlu1 %3396, %v6880_v57  }
 0x1ad   :  { %2314 = vperm.xlu0 %3395, %v6883_v27  }
 0x1af   :  { %2310 = vperm.xlu1 %3396, %v6884_v43   ;;  %v5719_v50 = vpop.permute.xlu0 %2008 }
 0x1b0   :  { %6886 = vst [vmem:[#allocation41_spill] sm:$0xff] %v5719_v50  ;;  %v5722_v22 = vpop.permute.xlu1 %2013  ;;  %v6908_v50 = vld [vmem:[#allocation79_spill] sm:$0xff] }
 0x1b1   :  { %2322 = vperm.xlu0 %3395, %v6885_v7   ;;  %6888 = vst [vmem:[#allocation42_spill] sm:$0xff] %v5722_v22  ;;  %v6898_v7 = vld [vmem:[#allocation65_spill] sm:$0xff]  ;;  %v6905_v22 = vld [vmem:[#allocation72_spill] sm:$0xff] }
 0x1b3   :  { %2318 = vperm.xlu1 %3396, %v6887_v21  }
 0x1b4   :  { %v5726_v61 = vpop.permute.xlu0 %2018 }
 0x1b5   :  { %2330 = vperm.xlu0 %3395, %v6889_v17   ;;  %6890 = vst [vmem:[#allocation43_spill] sm:$0xff] %v5726_v61  ;;  %v5728_v57 = vpop.permute.xlu1 %2023 }
 0x1b6   :  { %6891 = vst [vmem:[#allocation44_spill] sm:$0xff] %v5728_v57  ;;  %v6903_v57 = vld [vmem:[#allocation68_spill] sm:$0xff] }
 0x1b7   :  { %2326 = vperm.xlu1 %3396, %v4519_v8  }
 0x1b9   :  { %2338 = vperm.xlu0 %3395, %v4524_v59   ;;  %v6896_v59 = vld [vmem:[#allocation62_spill] sm:$0xff] }
 0x1bb   :  { %2334 = vperm.xlu1 %3396, %v4542_v44  }
 0x1bd   :  { %2346 = vperm.xlu0 %3395, %v4557_v14  }
 0x1bf   :  { %v5733_v27 = vpop.permute.xlu0 %2028  ;;  %2342 = vperm.xlu1 %3396, %v4577_v28  }
 0x1c0   :  { %6892 = vst [vmem:[#allocation45_spill] sm:$0xff] %v5733_v27 }
 0x1c1   :  { %v5736_v21 = vpop.permute.xlu1 %2033  ;;  %2354 = vperm.xlu0 %3395, %v4583_v26  }
 0x1c2   :  { %6893 = vst [vmem:[#allocation46_spill] sm:$0xff] %v5736_v21  ;;  %v6901_v21 = vld [vmem:[#allocation66_spill] sm:$0xff] }
 0x1c3   :  { %2350 = vperm.xlu1 %3396, %v4589_v24   ;;  %v5740_v8 = vpop.permute.xlu0 %2038 }
 0x1c4   :  { %6894 = vst [vmem:[#allocation47_spill] sm:$0xff] %v5740_v8 }
 0x1c5   :  { %v5742_v17 = vpop.permute.xlu1 %2043  ;;  %2677 = vperm.xlu0 %3395, %v4448_v54  }
 0x1c6   :  { %6895 = vst [vmem:[#allocation48_spill] sm:$0xff] %v5742_v17 }
 0x1c7   :  { %2358 = vperm.xlu1 %3396, %v4603_v42   ;;  %v6897_v42 = vld [vmem:[#allocation63_spill] sm:$0xff] }
 0x1c8   :  { %v5746_v44 = vpop.permute.xlu0 %2110 }
 0x1c9   :  { %2685 = vperm.xlu0 %3395, %v4467_v29  }
 0x1ca   :  { %v5748_v14 = vpop.permute.xlu1 %2114 }
 0x1cb   :  { %2681 = vperm.xlu1 %3396, %v6896_v59   ;;  %v6899_v59 = vld [vmem:[#allocation64_spill] sm:$0xff] }
 0x1cc   :  { %v5752_v28 = vpop.permute.xlu0 %2122 }
 0x1cd   :  { %2693 = vperm.xlu0 %3395, %v4555_v30  }
 0x1ce   :  { %v5754_v26 = vpop.permute.xlu1 %2118 }
 0x1cf   :  { %2689 = vperm.xlu1 %3396, %v4529_v6   ;;  %v6900_v6 = vld [vmem:[#allocation67_spill] sm:$0xff] }
 0x1d0   :  { %v5758_v24 = vpop.permute.xlu0 %2130 }
 0x1d1   :  { %2701 = vperm.xlu0 %3395, %v4643_v37  }
 0x1d2   :  { %v5760_v54 = vpop.permute.xlu1 %2126 }
 0x1d3   :  { %2697 = vperm.xlu1 %3396, %v6897_v42   ;;  %v6902_v42 = vld [vmem:[#allocation70_spill] sm:$0xff] }
 0x1d4   :  { %v5764_v43 = vpop.permute.xlu0 %2138 }
 0x1d5   :  { %2709 = vperm.xlu0 %3395, %v6898_v7  }
 0x1d6   :  { %v5766_v29 = vpop.permute.xlu1 %2134 }
 0x1d7   :  { %2705 = vperm.xlu1 %3396, %v6899_v59   ;;  %v6904_v59 = vld [vmem:[#allocation74_spill] sm:$0xff] }
 0x1d8   :  { %v5770_v17 = vpop.permute.xlu0 %2146 }
 0x1d9   :  { %2717 = vperm.xlu0 %3395, %v6900_v6  }
 0x1da   :  { %v5772_v30 = vpop.permute.xlu1 %2142 }
 0x1db   :  { %2713 = vperm.xlu1 %3396, %v6901_v21   ;;  %v6906_v21 = vld [vmem:[#allocation77_spill] sm:$0xff] }
 0x1dc   :  { %v5776_v8 = vpop.permute.xlu0 %2154 }
 0x1dd   :  { %2725 = vperm.xlu0 %3395, %v6902_v42  }
 0x1de   :  { %v5778_v37 = vpop.permute.xlu1 %2150 }
 0x1df   :  { %2721 = vperm.xlu1 %3396, %v6903_v57   ;;  %v6907_v57 = vld [vmem:[#allocation82_spill] sm:$0xff] }
 0x1e0   :  { %v5782_v27 = vpop.permute.xlu0 %2162 }
 0x1e1   :  { %2733 = vperm.xlu0 %3395, %v6904_v59  }
 0x1e2   :  { %v5784_v7 = vpop.permute.xlu1 %2158 }
 0x1e3   :  { %2729 = vperm.xlu1 %3396, %v6905_v22   ;;  %v6909_v22 = vld [vmem:[#allocation90_spill] sm:$0xff] }
 0x1e4   :  { %v5788_v61 = vpop.permute.xlu0 %2170 }
 0x1e5   :  { %2741 = vperm.xlu0 %3395, %v6906_v21  }
 0x1e6   :  { %v5790_v6 = vpop.permute.xlu1 %2166 }
 0x1e7   :  { %2737 = vperm.xlu1 %3396, %v4805_v5  }
 0x1e8   :  { %v5794_v41 = vpop.permute.xlu0 %2178 }
 0x1e9   :  { %2749 = vperm.xlu0 %3395, %v6907_v57  }
 0x1ea   :  { %v5796_v42 = vpop.permute.xlu1 %2174 }
 0x1eb   :  { %2745 = vperm.xlu1 %3396, %v6908_v50  }
 0x1ec   :  { %v5800_v34 = vpop.permute.xlu0 %2186 }
 0x1ed   :  { %2757 = vperm.xlu0 %3395, %v6909_v22  }
 0x1ee   :  { %v5802_v59 = vpop.permute.xlu1 %2182 }
 0x1ef   :  { %2753 = vperm.xlu1 %3396, %v6910_v38  }
 0x1f0   :  { %v5806_v33 = vpop.permute.xlu0 %2194 }
 0x1f1   :  { %2765 = vperm.xlu0 %3395, %v5000_v48  }
 0x1f2   :  { %v5808_v21 = vpop.permute.xlu1 %2190 }
 0x1f3   :  { %2761 = vperm.xlu1 %3396, %v4991_v49  }
 0x1f4   :  { %v5812_v5 = vpop.permute.xlu0 %2202 }
 0x1f5   :  { %2773 = vperm.xlu0 %3395, %v5049_v1  }
 0x1f6   :  { %v5814_v57 = vpop.permute.xlu1 %2198 }
 0x1f7   :  { %2769 = vperm.xlu1 %3396, %v5023_v45  }
 0x1f8   :  { %v5818_v50 = vpop.permute.xlu0 %2210 }
 0x1f9   :  { %2781 = vperm.xlu0 %3395, %v5093_v13  }
 0x1fa   :  { %v5820_v22 = vpop.permute.xlu1 %2206 }
 0x1fb   :  { %2777 = vperm.xlu1 %3396, %v5089_v40  }
 0x1fc   :  { %v5824_v38 = vpop.permute.xlu0 %2218 }
 0x1fd   :  { %2789 = vperm.xlu0 %3395, %v5103_v39  }
 0x1fe   :  { %v5826_v48 = vpop.permute.xlu1 %2214 }
 0x1ff   :  { %2785 = vperm.xlu1 %3396, %v5120_v10  }
 0x200   :  { %v5830_v49 = vpop.permute.xlu0 %2226 }
 0x201   :  { %2797 = vperm.xlu0 %3395, %v5136_v58  }
 0x202   :  { %v5832_v1 = vpop.permute.xlu1 %2222 }
 0x203   :  { %2793 = vperm.xlu1 %3396, %v5132_v11  }
 0x204   :  { %v5836_v45 = vpop.permute.xlu0 %2234 }
 0x205   :  { %2805 = vperm.xlu0 %3395, %v5152_v0  }
 0x206   :  { %v5838_v13 = vpop.permute.xlu1 %2230 }
 0x207   :  { %2801 = vperm.xlu1 %3396, %v5150_v62  }
 0x208   :  { %v5842_v40 = vpop.permute.xlu0 %2242 }
 0x209   :  { %2813 = vperm.xlu0 %3395, %v5167_v32  }
 0x20a   :  { %v5844_v39 = vpop.permute.xlu1 %2238 }
 0x20b   :  { %2809 = vperm.xlu1 %3396, %v5169_v18  }
 0x20c   :  { %v5848_v10 = vpop.permute.xlu0 %2250 }
 0x20d   :  { %2821 = vperm.xlu0 %3395, %v5186_v51  }
 0x20e   :  { %v5850_v58 = vpop.permute.xlu1 %2246 }
 0x20f   :  { %2817 = vperm.xlu1 %3396, %v5178_v35  }
 0x210   :  { %v5854_v11 = vpop.permute.xlu0 %2258 }
 0x211   :  { %2829 = vperm.xlu0 %3395, %v5239_v55  }
 0x212   :  { %v5856_v0 = vpop.permute.xlu1 %2254 }
 0x213   :  { %2825 = vperm.xlu1 %3396, %v5203_v15   ;;  %v6911_v15 = vld [vmem:[#allocation132_spill] sm:$0xff] }
 0x214   :  { %v5860_v62 = vpop.permute.xlu0 %2266 }
 0x215   :  { %2837 = vperm.xlu0 %3395, %v5278_v2  }
 0x216   :  { %v5862_v32 = vpop.permute.xlu1 %2262 }
 0x217   :  { %2833 = vperm.xlu1 %3396, %v5251_v53   ;;  %v6914_v53 = vld [vmem:[#allocation136_spill] sm:$0xff] }
 0x218   :  { %v5866_v18 = vpop.permute.xlu0 %2274 }
 0x219   :  { %2845 = vperm.xlu0 %3395, %v5305_v23  }
 0x21a   :  { %v5868_v51 = vpop.permute.xlu1 %2270 }
 0x21b   :  { %2841 = vperm.xlu1 %3396, %v5290_v9  }
 0x21c   :  { %v5872_v35 = vpop.permute.xlu0 %2282 }
 0x21d   :  { %2853 = vperm.xlu0 %3395, %v6911_v15   ;;  %v1538_v15 = vshrl.u32 %v1537_v19, 7 }
 0x21e   :  { %v5874_v55 = vpop.permute.xlu1 %2278 }
 0x21f   :  { %2849 = vperm.xlu1 %3396, %v6912_v56   ;;  %v5895_v56 = vld [vmem:[%s6534_s1] ss:$0 sm:$0xff]  ;;  %v1539_v19 = vsub.s32 0, %v1538_v15 }
 0x220   :  { %v5878_v60 = vpop.permute.xlu0 %2290  ;;  %v2364_v15 = vsub.f32 %v5752_v28, %v5895_v56 }
 0x221   :  { %6913 = vst [vmem:[#allocation49_spill] sm:$0xff] %v5878_v60  ;;  %2861 = vperm.xlu0 %3395, %v6914_v53   ;;  %v2363_v60 = vsub.f32 %v5754_v26, %v5895_v56 }
 0x222   :  { %v5880_v2 = vpop.permute.xlu1 %2286 }
 0x223   :  { %2857 = vperm.xlu1 %3396, %v6915_v46   ;;  %v16_v46 = vld [vmem:[%s6535_s2] sm:$0x1]  ;;  %s3841_s2 = smov 64  }
 0x224   :  { %v5884_v23 = vpop.permute.xlu0 %2298  ;;  %v17_v63 = vsub.f32 0.0, %v16_v46 }
 0x225   :  { %6916 = vst [vmem:[#allocation50_spill] sm:$0xff] %v5884_v23  ;;  %2869 = vperm.xlu0 %3395, %v6918_v36   ;;  %v2361_v36 = vsub.f32 %v5746_v44, %v5895_v56 }
 0x226   :  { %v5886_v9 = vpop.permute.xlu1 %2294  ;;  %v5916_v44 = vrot.slane %v17_v63, %v1539_v19  ;;  %v2427_v63 = vmul.f32 %v2364_v15, %v2364_v15 }
 0x227   :  { %6917 = vst [vmem:[#allocation51_spill] sm:$0xff] %v5886_v9  ;;  %2865 = vperm.xlu1 %3396, %v6919_v16   ;;  %v6923_v16 = vld [vmem:[#allocation145_spill] sm:$0xff]  ;;  %v2424_v23 = vmul.f32 %v2361_v36, %v2361_v36  ;;  %v6930_v36 = vld [vmem:[#allocation156_spill] sm:$0xff] }
 0x228   :  { %v5890_v31 = vpop.permute.xlu0 %2306 }
 0x229   :  { %6920 = vst [vmem:[#allocation52_spill] sm:$0xff] %v5890_v31  ;;  %2877 = vperm.xlu0 %3395, %v6922_v20   ;;  %v6926_v31 = vld [vmem:[#allocation152_spill] sm:$0xff]  ;;  %v2362_v20 = vsub.f32 %v5748_v14, %v5895_v56  ;;  %v2487_v26 = vmul.f32 %v2424_v23, %v5916_v44  ;;  %v2490_v23 = vmul.f32 %v2427_v63, %v5916_v44 }
 0x22a   :  { %v5900_v53 = vpop.permute.xlu1 %2302  ;;  %v2368_v63 = vsub.f32 %v5764_v43, %v5895_v56 }
 0x22b   :  { %6921 = vst [vmem:[#allocation53_spill] sm:$0xff] %v5900_v53  ;;  %2873 = vperm.xlu1 %3396, %v6923_v16   ;;  %v6927_v53 = vld [vmem:[#allocation151_spill] sm:$0xff]  ;;  %v2365_v16 = vsub.f32 %v5760_v54, %v5895_v56  ;;  %v2425_v14 = vmul.f32 %v2362_v20, %v2362_v20  ;;  %v2550_v9 = vmul.f32 1.442695, %v2487_v26 }
 0x22c   :  { %v5906_v25 = vpop.permute.xlu0 %2314 }
 0x22d   :  { %6924 = vst [vmem:[#allocation54_spill] sm:$0xff] %v5906_v25  ;;  %2885 = vperm.xlu0 %3395, %v6926_v31   ;;  %v6931_v25 = vld [vmem:[#allocation155_spill] sm:$0xff]  ;;  %3523 = vpow2.f32 %v2550_v9 }
 0x22e   :  { %v5908_v4 = vpop.permute.xlu1 %2310 }
 0x22f   :  { %6925 = vst [vmem:[#allocation55_spill] sm:$0xff] %v5908_v4  ;;  %2881 = vperm.xlu1 %3396, %v6927_v53   ;;  %v2426_v53 = vmul.f32 %v2363_v60, %v2363_v60  ;;  %v2428_v4 = vmul.f32 %v2365_v16, %v2365_v16  ;;  %v2488_v60 = vmul.f32 %v2425_v14, %v5916_v44  ;;  %v6937_v16 = vld [vmem:[#allocation166_spill] sm:$0xff] }
 0x230   :  { %v5920_v46 = vpop.permute.xlu0 %2322 }
 0x231   :  { %6928 = vst [vmem:[#allocation56_spill] sm:$0xff] %v5920_v46  ;;  %2893 = vperm.xlu0 %3395, %v6930_v36   ;;  %v6933_v46 = vld [vmem:[#allocation162_spill] sm:$0xff]  ;;  %v2489_v54 = vmul.f32 %v2426_v53, %v5916_v44  ;;  %v2367_v36 = vsub.f32 %v5766_v29, %v5895_v56  ;;  %v2491_v15 = vmul.f32 %v2428_v4, %v5916_v44  ;;  %v6938_v53 = vld [vmem:[#allocation165_spill] sm:$0xff]  ;;  %v2552_v14 = vmul.f32 1.442695, %v2488_v60 }
 0x232   :  { %v5924_v31 = vpop.permute.xlu1 %2318  ;;  %v2370_v60 = vsub.f32 %v5770_v17, %v5895_v56 }
 0x233   :  { %6929 = vst [vmem:[#allocation57_spill] sm:$0xff] %v5924_v31  ;;  %2889 = vperm.xlu1 %3396, %v6931_v25   ;;  %v6934_v31 = vld [vmem:[#allocation161_spill] sm:$0xff]  ;;  %v2366_v25 = vsub.f32 %v5758_v24, %v5895_v56  ;;  %v2554_v26 = vmul.f32 1.442695, %v2489_v54  ;;  %v2430_v29 = vmul.f32 %v2367_v36, %v2367_v36  ;;  %v2558_v4 = vmul.f32 1.442695, %v2491_v15 }
 0x234   :  { %v5929_v19 = vpop.permute.xlu0 %2330  ;;  %v2431_v36 = vmul.f32 %v2368_v63, %v2368_v63 }
 0x235   :  { %6932 = vst [vmem:[#allocation58_spill] sm:$0xff] %v5929_v19  ;;  %2901 = vperm.xlu0 %3395, %v6933_v46   ;;  %v2429_v24 = vmul.f32 %v2366_v25, %v2366_v25  ;;  %3525 = vpow2.f32 %v2554_v26  ;;  %v2493_v9 = vmul.f32 %v2430_v29, %v5916_v44  ;;  %v2372_v26 = vsub.f32 %v5776_v8, %v5895_v56 }
 0x236   :  { %v5931_v28 = vpop.permute.xlu1 %2326  ;;  %3527 = vpow2.f32 %v2552_v14  ;;  %v2494_v17 = vmul.f32 %v2431_v36, %v5916_v44  ;;  %v2377_v36 = vsub.f32 %v5796_v42, %v5895_v56 }
 0x237   :  { %2897 = vperm.xlu1 %3396, %v6934_v31   ;;  %v2369_v31 = vsub.f32 %v5772_v30, %v5895_v56  ;;  %v2371_v30 = vsub.f32 %v5778_v37, %v5895_v56  ;;  %v2492_v43 = vmul.f32 %v2429_v24, %v5916_v44  ;;  %v3524_v29 = vpop.eup %3523 }
 0x238   :  { %v5942_v20 = vpop.permute.xlu0 %2338 }
 0x239   :  { %6935 = vst [vmem:[#allocation59_spill] sm:$0xff] %v5942_v20  ;;  %2909 = vperm.xlu0 %3395, %v6937_v16   ;;  %v2556_v20 = vmul.f32 1.442695, %v2490_v23  ;;  %v2432_v54 = vmul.f32 %v2369_v31, %v2369_v31  ;;  %v2562_v23 = vmul.f32 1.442695, %v2493_v9  ;;  %v2434_v15 = vmul.f32 %v2371_v30, %v2371_v30 }
 0x23a   :  { %v5945_v46 = vpop.permute.xlu1 %2334  ;;  %v2560_v16 = vmul.f32 1.442695, %v2492_v43  ;;  %v2435_v9 = vmul.f32 %v2372_v26, %v2372_v26 }
 0x23b   :  { %6936 = vst [vmem:[#allocation60_spill] sm:$0xff] %v5945_v46  ;;  %2905 = vperm.xlu1 %3396, %v6938_v53   ;;  %3529 = vpow2.f32 %v2556_v20  ;;  %v2495_v37 = vmul.f32 %v2432_v54, %v5916_v44  ;;  %v2433_v20 = vmul.f32 %v2370_v60, %v2370_v60  ;;  %v2375_v53 = vsub.f32 %v5790_v6, %v5895_v56 }
 0x23c   :  { %v5953_v19 = vpop.permute.xlu0 %2346  ;;  %3531 = vpow2.f32 %v2558_v4  ;;  %v2564_v4 = vmul.f32 1.442695, %v2494_v17  ;;  %v2498_v26 = vmul.f32 %v2435_v9, %v5916_v44  ;;  %v2378_v9 = vsub.f32 %v5794_v41, %v5895_v56 }
 0x23d   :  { %2917 = vperm.xlu0 %3395, %v5581_v47   ;;  %3533 = vpow2.f32 %v2562_v23  ;;  %v2496_v8 = vmul.f32 %v2433_v20, %v5916_v44  ;;  %v2438_v43 = vmul.f32 %v2375_v53, %v2375_v53  ;;  %v2440_v53 = vmul.f32 %v2377_v36, %v2377_v36 }
 0x23e   :  { %v5955_v46 = vpop.permute.xlu1 %2342  ;;  %3535 = vpow2.f32 %v2560_v16 }
 0x23f   :  { %2913 = vperm.xlu1 %3396, %v5578_v3   ;;  %v2373_v3 = vsub.f32 %v5784_v7, %v5895_v56  ;;  %v2497_v7 = vmul.f32 %v2434_v15, %v5916_v44  ;;  %v2568_v20 = vmul.f32 1.442695, %v2496_v8  ;;  %v2503_v36 = vmul.f32 %v2440_v53, %v5916_v44 }
 0x240   :  { %v5965_v25 = vpop.permute.xlu0 %2354  ;;  %v2383_v53 = vsub.f32 %v5814_v57, %v5895_v56  ;;  %v2385_v57 = vsub.f32 %v5820_v22, %v5895_v56 }
 0x241   :  { %2925 = vperm.xlu0 %3395, %v5591_v52   ;;  %v2374_v52 = vsub.f32 %v5782_v27, %v5895_v56  ;;  %v2436_v63 = vmul.f32 %v2373_v3, %v2373_v3  ;;  %v3526_v27 = vpop.eup %3525  ;;  %v2570_v15 = vmul.f32 1.442695, %v2497_v7 }
 0x242   :  { %v5967_v47 = vpop.permute.xlu1 %2350  ;;  %v3528_v6 = vpop.eup %3527 }
 0x243   :  { %2921 = vperm.xlu1 %3396, %v5588_v12   ;;  %v2566_v12 = vmul.f32 1.442695, %v2495_v37  ;;  %v2437_v54 = vmul.f32 %v2374_v52, %v2374_v52  ;;  %v2499_v3 = vmul.f32 %v2436_v63, %v5916_v44  ;;  %v2379_v63 = vsub.f32 %v5802_v59, %v5895_v56 }
 0x244   :  { %v2678_v31 = vpop.permute.xlu0 %2677 }
 0x245   :  { %v2928_v14 = vmul.f32 %v3524_v29, %v2678_v31  ;;  %v3530_v37 = vpop.eup %3529  ;;  %3537 = vpow2.f32 %v2566_v12  ;;  %v2376_v29 = vsub.f32 %v5788_v61, %v5895_v56  ;;  %v2500_v42 = vmul.f32 %v2437_v54, %v5916_v44 }
 0x246   :  { %v5981_v24 = vpop.permute.xlu1 %2358  ;;  %v3532_v17 = vpop.eup %3531  ;;  %3539 = vpow2.f32 %v2564_v4  ;;  %v2501_v31 = vmul.f32 %v2438_v43, %v5916_v44  ;;  %v2574_v7 = vmul.f32 1.442695, %v2499_v3  ;;  %v2572_v61 = vmul.f32 1.442695, %v2498_v26 }
 0x247   :  { %3054 = vrot.lane.b32.xlu1 %v2928_v14, %s3841_s2  ;;  %3541 = vpow2.f32 %v2570_v15  ;;  %v2439_v8 = vmul.f32 %v2376_v29, %v2376_v29  ;;  %v2576_v54 = vmul.f32 1.442695, %v2500_v42  ;;  %v2441_v3 = vmul.f32 %v2378_v9, %v2378_v9 }
 0x248   :  { %v2686_v30 = vpop.permute.xlu0 %2685  ;;  %3543 = vpow2.f32 %v2568_v20  ;;  %v2578_v43 = vmul.f32 1.442695, %v2501_v31  ;;  %v2582_v29 = vmul.f32 1.442695, %v2503_v36 }
 0x249   :  { %v2930_v60 = vmul.f32 %v3526_v27, %v2686_v30  ;;  %v3534_v27 = vpop.eup %3533  ;;  %3545 = vpow2.f32 %v2574_v7  ;;  %v2502_v41 = vmul.f32 %v2439_v8, %v5916_v44 }
 0x24a   :  { %v2682_v23 = vpop.permute.xlu1 %2681  ;;  %3547 = vpow2.f32 %v2572_v61  ;;  %v2384_v61 = vsub.f32 %v5812_v5, %v5895_v56 }
 0x24b   :  { %v2929_v16 = vmul.f32 %v3528_v6, %v2682_v23  ;;  %3058 = vrot.lane.b32.xlu1 %v2930_v60, %s3841_s2  ;;  %v3536_v6 = vpop.eup %3535  ;;  %v2442_v23 = vmul.f32 %v2379_v63, %v2379_v63  ;;  %3549 = vpow2.f32 %v2576_v54  ;;  %v2382_v63 = vsub.f32 %v5806_v33, %v5895_v56 }
 0x24c   :  { %v2694_v52 = vpop.permute.xlu0 %2693  ;;  %3551 = vpow2.f32 %v2578_v43  ;;  %v2446_v33 = vmul.f32 %v2383_v53, %v2383_v53 }
 0x24d   :  { %3056 = vrot.lane.b32.xlu0 %v2929_v16, %s3841_s2  ;;  %v2932_v14 = vmul.f32 %v3532_v17, %v2694_v52  ;;  %v2380_v16 = vsub.f32 %v5800_v34, %v5895_v56  ;;  %v2505_v52 = vmul.f32 %v2442_v23, %v5916_v44  ;;  %v2580_v34 = vmul.f32 1.442695, %v2502_v41 }
 0x24e   :  { %v2690_v12 = vpop.permute.xlu1 %2689  ;;  %3553 = vpow2.f32 %v2582_v29  ;;  %v2445_v5 = vmul.f32 %v2382_v63, %v2382_v63  ;;  %v2447_v23 = vmul.f32 %v2384_v61, %v2384_v61  ;;  %v2387_v41 = vsub.f32 %v5826_v48, %v5895_v56 }
 0x24f   :  { %v2931_v4 = vmul.f32 %v3530_v37, %v2690_v12  ;;  %3062 = vrot.lane.b32.xlu1 %v2932_v14, %s3841_s2  ;;  %v2381_v37 = vsub.f32 %v5808_v21, %v5895_v56  ;;  %v3538_v17 = vpop.eup %3537  ;;  %v2504_v12 = vmul.f32 %v2441_v3, %v5916_v44  ;;  %v2443_v7 = vmul.f32 %v2380_v16, %v2380_v16 }
 0x250   :  { %v2702_v30 = vpop.permute.xlu0 %2701  ;;  %v3540_v26 = vpop.eup %3539  ;;  %3555 = vpow2.f32 %v2580_v34  ;;  %v2510_v48 = vmul.f32 %v2447_v23, %v5916_v44  ;;  %v2450_v34 = vmul.f32 %v2387_v41, %v2387_v41  ;;  %v2390_v23 = vsub.f32 %v5830_v49, %v5895_v56 }
 0x251   :  { %3060 = vrot.lane.b32.xlu0 %v2931_v4, %s3841_s2  ;;  %v2934_v60 = vmul.f32 %v3534_v27, %v2702_v30  ;;  %v2444_v31 = vmul.f32 %v2381_v37, %v2381_v37  ;;  %v3542_v4 = vpop.eup %3541  ;;  %v2586_v30 = vmul.f32 1.442695, %v2505_v52  ;;  %v2584_v36 = vmul.f32 1.442695, %v2504_v12 }
 0x252   :  { %v2698_v59 = vpop.permute.xlu1 %2697  ;;  %v3544_v9 = vpop.eup %3543  ;;  %v2508_v52 = vmul.f32 %v2445_v5, %v5916_v44 }
 0x253   :  { %v2933_v15 = vmul.f32 %v3536_v6, %v2698_v59  ;;  %3066 = vrot.lane.b32.xlu1 %v2934_v60, %s3841_s2  ;;  %v2507_v6 = vmul.f32 %v2444_v31, %v5916_v44  ;;  %v2506_v60 = vmul.f32 %v2443_v7, %v5916_v44  ;;  %v3546_v59 = vpop.eup %3545  ;;  %3557 = vpow2.f32 %v2586_v30 }
 0x254   :  { %v2710_v20 = vpop.permute.xlu0 %2709  ;;  %v3548_v22 = vpop.eup %3547  ;;  %3559 = vpow2.f32 %v2584_v36  ;;  %v2386_v31 = vsub.f32 %v5818_v50, %v5895_v56  ;;  %v2592_v50 = vmul.f32 1.442695, %v2508_v52 }
 0x255   :  { %3064 = vrot.lane.b32.xlu0 %v2933_v15, %s3841_s2  ;;  %v2936_v42 = vmul.f32 %v3538_v17, %v2710_v20  ;;  %v2448_v15 = vmul.f32 %v2385_v57, %v2385_v57  ;;  %v3550_v17 = vpop.eup %3549  ;;  %v2590_v20 = vmul.f32 1.442695, %v2507_v6  ;;  %v2388_v57 = vsub.f32 %v5824_v38, %v5895_v56 }
 0x256   :  { %v2706_v21 = vpop.permute.xlu1 %2705 }
 0x257   :  { %v2935_v14 = vmul.f32 %v3540_v26, %v2706_v21  ;;  %3070 = vrot.lane.b32.xlu1 %v2936_v42, %s3841_s2  ;;  %v2509_v26 = vmul.f32 %v2446_v33, %v5916_v44  ;;  %v3552_v42 = vpop.eup %3551  ;;  %v2588_v21 = vmul.f32 1.442695, %v2506_v60  ;;  %3561 = vpow2.f32 %v2590_v20 }
 0x258   :  { %v2718_v8 = vpop.permute.xlu0 %2717  ;;  %v2513_v33 = vmul.f32 %v2450_v34, %v5916_v44  ;;  %v2391_v60 = vsub.f32 %v5838_v13, %v5895_v56  ;;  %v2393_v20 = vsub.f32 %v5844_v39, %v5895_v56  ;;  %v2395_v39 = vsub.f32 %v5850_v58, %v5895_v56 }
 0x259   :  { %3068 = vrot.lane.b32.xlu0 %v2935_v14, %s3841_s2  ;;  %v2938_v27 = vmul.f32 %v3542_v4, %v2718_v8  ;;  %v2511_v14 = vmul.f32 %v2448_v15, %v5916_v44  ;;  %v2594_v63 = vmul.f32 1.442695, %v2509_v26  ;;  %v2389_v4 = vsub.f32 %v5832_v1, %v5895_v56  ;;  %v3554_v8 = vpop.eup %3553 }
 0x25a   :  { %v2714_v54 = vpop.permute.xlu1 %2713  ;;  %3563 = vpow2.f32 %v2588_v21  ;;  %v3556_v30 = vpop.eup %3555  ;;  %v2602_v41 = vmul.f32 1.442695, %v2513_v33  ;;  %v2392_v21 = vsub.f32 %v5836_v45, %v5895_v56  ;;  %v2456_v45 = vmul.f32 %v2393_v20, %v2393_v20 }
 0x25b   :  { %v2937_v43 = vmul.f32 %v3544_v9, %v2714_v54  ;;  %3074 = vrot.lane.b32.xlu1 %v2938_v27, %s3841_s2  ;;  %v2449_v9 = vmul.f32 %v2386_v31, %v2386_v31  ;;  %v2596_v27 = vmul.f32 1.442695, %v2510_v48  ;;  %v2598_v6 = vmul.f32 1.442695, %v2511_v14 }
 0x25c   :  { %v2726_v37 = vpop.permute.xlu0 %2725  ;;  %3565 = vpow2.f32 %v2594_v63  ;;  %v2452_v36 = vmul.f32 %v2389_v4, %v2389_v4  ;;  %v2394_v31 = vsub.f32 %v5842_v40, %v5895_v56  ;;  %v2455_v40 = vmul.f32 %v2392_v21, %v2392_v21 }
 0x25d   :  { %3072 = vrot.lane.b32.xlu0 %v2937_v43, %s3841_s2  ;;  %v2940_v3 = vmul.f32 %v3546_v59, %v2726_v37  ;;  %3567 = vpow2.f32 %v2592_v50  ;;  %v2512_v38 = vmul.f32 %v2449_v9, %v5916_v44  ;;  %v2451_v59 = vmul.f32 %v2388_v57, %v2388_v57  ;;  %v3558_v37 = vpop.eup %3557 }
 0x25e   :  { %v2722_v16 = vpop.permute.xlu1 %2721  ;;  %3569 = vpow2.f32 %v2596_v27  ;;  %v3560_v15 = vpop.eup %3559  ;;  %v2457_v50 = vmul.f32 %v2394_v31, %v2394_v31  ;;  %v2458_v57 = vmul.f32 %v2395_v39, %v2395_v39  ;;  %v2397_v27 = vsub.f32 %v5856_v0, %v5895_v56 }
 0x25f   :  { %v2939_v29 = vmul.f32 %v3548_v22, %v2722_v16  ;;  %3078 = vrot.lane.b32.xlu1 %v2940_v3, %s3841_s2  ;;  %3571 = vpow2.f32 %v2598_v6  ;;  %v2515_v16 = vmul.f32 %v2452_v36, %v5916_v44  ;;  %v2600_v49 = vmul.f32 1.442695, %v2512_v38 }
 0x260   :  { %v2734_v53 = vpop.permute.xlu0 %2733  ;;  %3573 = vpow2.f32 %v2602_v41  ;;  %v2396_v38 = vsub.f32 %v5848_v10, %v5895_v56  ;;  %v2520_v0 = vmul.f32 %v2457_v50, %v5916_v44  ;;  %v2398_v20 = vsub.f32 %v5854_v11, %v5895_v56 }
 0x261   :  { %3076 = vrot.lane.b32.xlu0 %v2939_v29, %s3841_s2  ;;  %v2942_v12 = vmul.f32 %v3552_v42, %v2734_v53  ;;  %v2514_v29 = vmul.f32 %v2451_v59, %v5916_v44  ;;  %v2453_v42 = vmul.f32 %v2390_v23, %v2390_v23  ;;  %v3562_v52 = vpop.eup %3561  ;;  %3575 = vpow2.f32 %v2600_v49 }
 0x262   :  { %v2730_v7 = vpop.permute.xlu1 %2729  ;;  %v2521_v23 = vmul.f32 %v2458_v57, %v5916_v44  ;;  %v2461_v39 = vmul.f32 %v2398_v20, %v2398_v20 }
 0x263   :  { %v2941_v61 = vmul.f32 %v3550_v17, %v2730_v7  ;;  %3082 = vrot.lane.b32.xlu1 %v2942_v12, %s3841_s2  ;;  %v2454_v17 = vmul.f32 %v2391_v60, %v2391_v60  ;;  %v2606_v12 = vmul.f32 1.442695, %v2515_v16  ;;  %v2604_v4 = vmul.f32 1.442695, %v2514_v29 }
 0x264   :  { %v2742_v54 = vpop.permute.xlu0 %2741  ;;  %v3564_v53 = vpop.eup %3563  ;;  %v2524_v50 = vmul.f32 %v2461_v39, %v5916_v44 }
 0x265   :  { %3080 = vrot.lane.b32.xlu0 %v2941_v61, %s3841_s2  ;;  %v2944_v43 = vmul.f32 %v3554_v8, %v2742_v54  ;;  %v2517_v7 = vmul.f32 %v2454_v17, %v5916_v44  ;;  %v2516_v61 = vmul.f32 %v2453_v42, %v5916_v44  ;;  %3577 = vpow2.f32 %v2606_v12 }
 0x266   :  { %v2738_v1 = vpop.permute.xlu1 %2737  ;;  %v3566_v8 = vpop.eup %3565  ;;  %3579 = vpow2.f32 %v2604_v4  ;;  %v2459_v17 = vmul.f32 %v2396_v38, %v2396_v38  ;;  %v2618_v42 = vmul.f32 1.442695, %v2521_v23 }
 0x267   :  { %v2943_v5 = vmul.f32 %v3556_v30, %v2738_v1  ;;  %3086 = vrot.lane.b32.xlu1 %v2944_v43, %s3841_s2  ;;  %v3568_v58 = vpop.eup %3567  ;;  %v2610_v33 = vmul.f32 1.442695, %v2517_v7  ;;  %v2519_v43 = vmul.f32 %v2456_v45, %v5916_v44  ;;  %v2608_v60 = vmul.f32 1.442695, %v2516_v61 }
 0x268   :  { %v2750_v22 = vpop.permute.xlu0 %2749  ;;  %v3570_v6 = vpop.eup %3569  ;;  %v2522_v11 = vmul.f32 %v2459_v17, %v5916_v44 }
 0x269   :  { %3084 = vrot.lane.b32.xlu0 %v2943_v5, %s3841_s2  ;;  %v2946_v3 = vmul.f32 %v3558_v37, %v2750_v22  ;;  %v3572_v36 = vpop.eup %3571  ;;  %v2518_v5 = vmul.f32 %v2455_v40, %v5916_v44  ;;  %v2460_v37 = vmul.f32 %v2397_v27, %v2397_v27  ;;  %3581 = vpow2.f32 %v2610_v33 }
 0x26a   :  { %v2746_v13 = vpop.permute.xlu1 %2745  ;;  %v2614_v41 = vmul.f32 1.442695, %v2519_v43  ;;  %v3574_v16 = vpop.eup %3573  ;;  %3583 = vpow2.f32 %v2608_v60  ;;  %v2403_v40 = vsub.f32 %v5874_v55, %v5895_v56  ;;  %v2404_v27 = vsub.f32 %v5872_v35, %v5895_v56 }
 0x26b   :  { %v2945_v26 = vmul.f32 %v3560_v15, %v2746_v13  ;;  %3090 = vrot.lane.b32.xlu1 %v2946_v3, %s3841_s2  ;;  %v2399_v3 = vsub.f32 %v5862_v32, %v5895_v56  ;;  %v2612_v10 = vmul.f32 1.442695, %v2518_v5  ;;  %v3576_v29 = vpop.eup %3575  ;;  %v2523_v21 = vmul.f32 %v2460_v37, %v5916_v44  ;;  %v6939_v37 = vld [vmem:[#allocation51_spill] sm:$0xff] }
 0x26c   :  { %v2758_v48 = vpop.permute.xlu0 %2757  ;;  %3585 = vpow2.f32 %v2614_v41  ;;  %v2405_v55 = vsub.f32 %v5880_v2, %v5895_v56  ;;  %v2624_v60 = vmul.f32 1.442695, %v2524_v50 }
 0x26d   :  { %3088 = vrot.lane.b32.xlu0 %v2945_v26, %s3841_s2  ;;  %v2948_v14 = vmul.f32 %v3562_v52, %v2758_v48  ;;  %v2616_v26 = vmul.f32 1.442695, %v2520_v0  ;;  %v2462_v31 = vmul.f32 %v2399_v3, %v2399_v3  ;;  %v2401_v48 = vsub.f32 %v5868_v51, %v5895_v56 }
 0x26e   :  { %v2754_v34 = vpop.permute.xlu1 %2753  ;;  %3587 = vpow2.f32 %v2612_v10  ;;  %v2622_v45 = vmul.f32 1.442695, %v2523_v21  ;;  %v2467_v0 = vmul.f32 %v2404_v27, %v2404_v27  ;;  %v2468_v23 = vmul.f32 %v2405_v55, %v2405_v55  ;;  %v6944_v55 = vld [vmem:[#allocation52_spill] sm:$0xff] }
 0x26f   :  { %v2947_v63 = vmul.f32 %v3564_v53, %v2754_v34  ;;  %3094 = vrot.lane.b32.xlu1 %v2948_v14, %s3841_s2  ;;  %v2400_v14 = vsub.f32 %v5860_v62, %v5895_v56  ;;  %v3578_v34 = vpop.eup %3577  ;;  %3589 = vpow2.f32 %v2616_v26  ;;  %v2525_v4 = vmul.f32 %v2462_v31, %v5916_v44 }
 0x270   :  { %v2766_v9 = vpop.permute.xlu0 %2765  ;;  %v3580_v7 = vpop.eup %3579  ;;  %3591 = vpow2.f32 %v2618_v42  ;;  %v2464_v61 = vmul.f32 %v2401_v48, %v2401_v48  ;;  %v2620_v62 = vmul.f32 1.442695, %v2522_v11  ;;  %v2530_v42 = vmul.f32 %v2467_v0, %v5916_v44  ;;  %v6941_v11 = vld [vmem:[#allocation53_spill] sm:$0xff] }
 0x271   :  { %3092 = vrot.lane.b32.xlu0 %v2947_v63, %s3841_s2  ;;  %v2950_v54 = vmul.f32 %v3566_v8, %v2766_v9  ;;  %v2463_v9 = vmul.f32 %v2400_v14, %v2400_v14  ;;  %3593 = vpow2.f32 %v2622_v45  ;;  %v2626_v43 = vmul.f32 1.442695, %v2525_v4  ;;  %v6942_v45 = vld [vmem:[#allocation50_spill] sm:$0xff] }
 0x272   :  { %v2762_v30 = vpop.permute.xlu1 %2761  ;;  %3595 = vpow2.f32 %v2620_v62  ;;  %v2409_v39 = vsub.f32 %v6941_v11, %v5895_v56 }
 0x273   :  { %v2949_v1 = vmul.f32 %v3568_v58, %v2762_v30  ;;  %3098 = vrot.lane.b32.xlu1 %v2950_v54, %s3841_s2  ;;  %v2402_v58 = vsub.f32 %v5866_v18, %v5895_v56  ;;  %v3582_v57 = vpop.eup %3581  ;;  %v2466_v18 = vmul.f32 %v2403_v40, %v2403_v40  ;;  %v2526_v5 = vmul.f32 %v2463_v9, %v5916_v44 }
 0x274   :  { %v2774_v59 = vpop.permute.xlu0 %2773  ;;  %v3584_v30 = vpop.eup %3583  ;;  %3597 = vpow2.f32 %v2626_v43  ;;  %v2472_v9 = vmul.f32 %v2409_v39, %v2409_v39 }
 0x275   :  { %3096 = vrot.lane.b32.xlu0 %v2949_v1, %s3841_s2  ;;  %v2952_v22 = vmul.f32 %v3572_v36, %v2774_v59  ;;  %v2527_v1 = vmul.f32 %v2464_v61, %v5916_v44  ;;  %v2465_v35 = vmul.f32 %v2402_v58, %v2402_v58  ;;  %3599 = vpow2.f32 %v2624_v60  ;;  %v6943_v58 = vld [vmem:[#allocation55_spill] sm:$0xff] }
 0x276   :  { %v2770_v15 = vpop.permute.xlu1 %2769  ;;  %v3586_v38 = vpop.eup %3585  ;;  %v2628_v20 = vmul.f32 1.442695, %v2526_v5  ;;  %v2535_v5 = vmul.f32 %v2472_v9, %v5916_v44 }
 0x277   :  { %v2951_v13 = vmul.f32 %v3570_v6, %v2770_v15  ;;  %3102 = vrot.lane.b32.xlu1 %v2952_v22, %s3841_s2  ;;  %v2407_v22 = vsub.f32 %v6939_v37, %v5895_v56  ;;  %v2528_v26 = vmul.f32 %v2465_v35, %v5916_v44 }
 0x278   :  { %v2782_v49 = vpop.permute.xlu0 %2781  ;;  %v3588_v2 = vpop.eup %3587 }
 0x279   :  { %3100 = vrot.lane.b32.xlu0 %v2951_v13, %s3841_s2  ;;  %v2954_v52 = vmul.f32 %v3574_v16, %v2782_v49  ;;  %v3590_v3 = vpop.eup %3589  ;;  %v2630_v13 = vmul.f32 1.442695, %v2527_v1  ;;  %v2529_v16 = vmul.f32 %v2466_v18, %v5916_v44  ;;  %v6940_v49 = vld [vmem:[#allocation49_spill] sm:$0xff] }
 0x27a   :  { %v2778_v32 = vpop.permute.xlu1 %2777  ;;  %v3592_v17 = vpop.eup %3591 }
 0x27b   :  { %v2953_v53 = vmul.f32 %v3576_v29, %v2778_v32  ;;  %3106 = vrot.lane.b32.xlu1 %v2954_v52, %s3841_s2  ;;  %v2406_v29 = vsub.f32 %v6940_v49, %v5895_v56  ;;  %v2531_v52 = vmul.f32 %v2468_v23, %v5916_v44  ;;  %v2470_v32 = vmul.f32 %v2407_v22, %v2407_v22  ;;  %v6946_v22 = vld [vmem:[#allocation54_spill] sm:$0xff] }
 0x27c   :  { %v2790_v12 = vpop.permute.xlu0 %2789  ;;  %3601 = vpow2.f32 %v2630_v13  ;;  %v2646_v49 = vmul.f32 1.442695, %v2535_v5 }
 0x27d   :  { %3104 = vrot.lane.b32.xlu0 %v2953_v53, %s3841_s2  ;;  %v2956_v63 = vmul.f32 %v3578_v34, %v2790_v12  ;;  %v2634_v53 = vmul.f32 1.442695, %v2529_v16  ;;  %v3594_v34 = vpop.eup %3593  ;;  %3603 = vpow2.f32 %v2628_v20  ;;  %v2632_v12 = vmul.f32 1.442695, %v2528_v26 }
 0x27e   :  { %v2786_v51 = vpop.permute.xlu1 %2785  ;;  %v3596_v61 = vpop.eup %3595  ;;  %v2638_v40 = vmul.f32 1.442695, %v2531_v52 }
 0x27f   :  { %v2955_v8 = vmul.f32 %v3580_v7, %v2786_v51  ;;  %3110 = vrot.lane.b32.xlu1 %v2956_v63, %s3841_s2  ;;  %v2469_v7 = vmul.f32 %v2406_v29, %v2406_v29  ;;  %v2408_v63 = vsub.f32 %v6942_v45, %v5895_v56  ;;  %v2636_v51 = vmul.f32 1.442695, %v2530_v42 }
 0x280   :  { %v2798_v54 = vpop.permute.xlu0 %2797  ;;  %3605 = vpow2.f32 %v2634_v53 }
 0x281   :  { %3108 = vrot.lane.b32.xlu0 %v2955_v8, %s3841_s2  ;;  %v2958_v6 = vmul.f32 %v3582_v57, %v2798_v54  ;;  %v2533_v8 = vmul.f32 %v2470_v32, %v5916_v44  ;;  %v2411_v57 = vsub.f32 %v6943_v58, %v5895_v56  ;;  %3607 = vpow2.f32 %v2632_v12 }
 0x282   :  { %v2794_v33 = vpop.permute.xlu1 %2793  ;;  %v2532_v54 = vmul.f32 %v2469_v7, %v5916_v44  ;;  %3609 = vpow2.f32 %v2636_v51 }
 0x283   :  { %v2957_v36 = vmul.f32 %v3584_v30, %v2794_v33  ;;  %3114 = vrot.lane.b32.xlu1 %v2958_v6, %s3841_s2  ;;  %v2471_v30 = vmul.f32 %v2408_v63, %v2408_v63  ;;  %v2410_v6 = vsub.f32 %v6944_v55, %v5895_v56  ;;  %v3598_v33 = vpop.eup %3597  ;;  %3611 = vpow2.f32 %v2638_v40 }
 0x284   :  { %v2806_v59 = vpop.permute.xlu0 %2805  ;;  %v3600_v1 = vpop.eup %3599  ;;  %v2642_v18 = vmul.f32 1.442695, %v2533_v8  ;;  %v2474_v35 = vmul.f32 %v2411_v57, %v2411_v57 }
 0x285   :  { %3112 = vrot.lane.b32.xlu0 %v2957_v36, %s3841_s2  ;;  %v2960_v15 = vmul.f32 %v3586_v38, %v2806_v59  ;;  %v6945_v38 = vld [vmem:[#allocation57_spill] sm:$0xff]  ;;  %v2534_v23 = vmul.f32 %v2471_v30, %v5916_v44  ;;  %v2473_v37 = vmul.f32 %v2410_v6, %v2410_v6  ;;  %v2419_v6 = vsub.f32 %v5955_v46, %v5895_v56 }
 0x286   :  { %v2802_v41 = vpop.permute.xlu1 %2801  ;;  %v2413_v0 = vsub.f32 %v6945_v38, %v5895_v56  ;;  %3613 = vpow2.f32 %v2642_v18  ;;  %v2537_v29 = vmul.f32 %v2474_v35, %v5916_v44 }
 0x287   :  { %v2959_v10 = vmul.f32 %v3588_v2, %v2802_v41  ;;  %3118 = vrot.lane.b32.xlu1 %v2960_v15, %s3841_s2  ;;  %v2640_v2 = vmul.f32 1.442695, %v2532_v54  ;;  %v2412_v15 = vsub.f32 %v6946_v22, %v5895_v56  ;;  %v3602_v41 = vpop.eup %3601  ;;  %v2644_v52 = vmul.f32 1.442695, %v2534_v23 }
 0x288   :  { %v2814_v21 = vpop.permute.xlu0 %2813  ;;  %v2476_v42 = vmul.f32 %v2413_v0, %v2413_v0  ;;  %v2536_v32 = vmul.f32 %v2473_v37, %v5916_v44  ;;  %v2650_v63 = vmul.f32 1.442695, %v2537_v29  ;;  %v2482_v23 = vmul.f32 %v2419_v6, %v2419_v6  ;;  %v6174_v29 = vld [vmem:[%s6534_s1] ss:$0 sm:$0xff] }
 0x289   :  { %3116 = vrot.lane.b32.xlu0 %v2959_v10, %s3841_s2  ;;  %v2962_v31 = vmul.f32 %v3592_v17, %v2814_v21  ;;  %v3604_v10 = vpop.eup %3603  ;;  %v2415_v17 = vsub.f32 %v5931_v28, %v5895_v56  ;;  %3615 = vpow2.f32 %v2640_v2  ;;  %v2421_v37 = vsub.f32 %v5967_v47, %v5895_v56 }
 0x28a   :  { %v2810_v48 = vpop.permute.xlu1 %2809  ;;  %3617 = vpow2.f32 %v2646_v49  ;;  %v2539_v51 = vmul.f32 %v2476_v42, %v5916_v44  ;;  %v2648_v40 = vmul.f32 1.442695, %v2536_v32  ;;  %v2422_v32 = vsub.f32 %v5965_v25, %v6174_v29 }
 0x28b   :  { %v2961_v14 = vmul.f32 %v3590_v3, %v2810_v48  ;;  %3122 = vrot.lane.b32.xlu1 %v2962_v31, %s3841_s2  ;;  %v6947_v3 = vld [vmem:[#allocation56_spill] sm:$0xff]  ;;  %v2475_v31 = vmul.f32 %v2412_v15, %v2412_v15  ;;  %v3606_v48 = vpop.eup %3605  ;;  %v2478_v39 = vmul.f32 %v2415_v17, %v2415_v17  ;;  %3619 = vpow2.f32 %v2644_v52 }
 0x28c   :  { %v2822_v4 = vpop.permute.xlu0 %2821  ;;  %v2414_v13 = vsub.f32 %v6947_v3, %v5895_v56  ;;  %v3608_v28 = vpop.eup %3607  ;;  %3621 = vpow2.f32 %v2650_v63  ;;  %v2654_v55 = vmul.f32 1.442695, %v2539_v51  ;;  %v2420_v3 = vsub.f32 %v5953_v19, %v5895_v56 }
 0x28d   :  { %3120 = vrot.lane.b32.xlu0 %v2961_v14, %s3841_s2  ;;  %v2964_v62 = vmul.f32 %v3594_v34, %v2822_v4  ;;  %v6948_v14 = vld [vmem:[#allocation60_spill] sm:$0xff]  ;;  %v3610_v45 = vpop.eup %3609  ;;  %v2538_v8 = vmul.f32 %v2475_v31, %v5916_v44  ;;  %v2541_v57 = vmul.f32 %v2478_v39, %v5916_v44  ;;  %3623 = vpow2.f32 %v2648_v40 }
 0x28e   :  { %v2818_v50 = vpop.permute.xlu1 %2817  ;;  %v2477_v53 = vmul.f32 %v2414_v13, %v2414_v13  ;;  %v2417_v34 = vsub.f32 %v6948_v14, %v5895_v56  ;;  %3625 = vpow2.f32 %v2654_v55  ;;  %v2484_v49 = vmul.f32 %v2421_v37, %v2421_v37  ;;  %v6953_v14 = vld [vmem:[#allocation21_spill] sm:$0xff] }
 0x28f   :  { %v2963_v27 = vmul.f32 %v3596_v61, %v2818_v50  ;;  %3126 = vrot.lane.b32.xlu1 %v2964_v62, %s3841_s2  ;;  %v3612_v61 = vpop.eup %3611  ;;  %v6949_v62 = vld [vmem:[#allocation58_spill] sm:$0xff]  ;;  %v2658_v0 = vmul.f32 1.442695, %v2541_v57  ;;  %v2483_v52 = vmul.f32 %v2420_v3, %v2420_v3  ;;  %v2485_v40 = vmul.f32 %v2422_v32, %v2422_v32 }
 0x290   :  { %v2830_v43 = vpop.permute.xlu0 %2829  ;;  %v2416_v50 = vsub.f32 %v6949_v62, %v5895_v56  ;;  %v2540_v9 = vmul.f32 %v2477_v53, %v5916_v44 }
 0x291   :  { %3124 = vrot.lane.b32.xlu0 %v2963_v27, %s3841_s2  ;;  %v2966_v36 = vmul.f32 %v3598_v33, %v2830_v43  ;;  %v2480_v27 = vmul.f32 %v2417_v34, %v2417_v34  ;;  %v3614_v43 = vpop.eup %3613  ;;  %v1413_v34 = vsub.f32 %v6953_v14, %v6174_v29 }
 0x292   :  { %v2826_v60 = vpop.permute.xlu1 %2825  ;;  %v2479_v18 = vmul.f32 %v2416_v50, %v2416_v50  ;;  %v2656_v5 = vmul.f32 1.442695, %v2540_v9 }
 0x293   :  { %v2965_v59 = vmul.f32 %v3600_v1, %v2826_v60  ;;  %3130 = vrot.lane.b32.xlu1 %v2966_v36, %s3841_s2  ;;  %v2652_v1 = vmul.f32 1.442695, %v2538_v8  ;;  %v6950_v36 = vld [vmem:[#allocation59_spill] sm:$0xff]  ;;  %v3616_v38 = vpop.eup %3615 }
 0x294   :  { %v2838_v16 = vpop.permute.xlu0 %2837  ;;  %v2418_v60 = vsub.f32 %v6950_v36, %v5895_v56  ;;  %v2542_v15 = vmul.f32 %v2479_v18, %v5916_v44  ;;  %v3618_v13 = vpop.eup %3617  ;;  %v2423_v56 = vsub.f32 %v5981_v24, %v6174_v29  ;;  %v6952_v24 = vld [vmem:[#allocation69_spill] sm:$0xff] }
 0x295   :  { %3128 = vrot.lane.b32.xlu0 %v2965_v59, %s3841_s2  ;;  %v2968_v20 = vmul.f32 %v3602_v41, %v2838_v16  ;;  %v2543_v59 = vmul.f32 %v2480_v27, %v5916_v44  ;;  %3627 = vpow2.f32 %v2652_v1  ;;  %v1410_v39 = vsub.f32 %v6952_v24, %v6174_v29  ;;  %v6955_v36 = vld [vmem:[#allocation73_spill] sm:$0xff] }
 0x296   :  { %v2834_v26 = vpop.permute.xlu1 %2833  ;;  %v2481_v41 = vmul.f32 %v2418_v60, %v2418_v60  ;;  %3629 = vpow2.f32 %v2656_v5  ;;  %v2660_v42 = vmul.f32 1.442695, %v2542_v15  ;;  %v2486_v63 = vmul.f32 %v2423_v56, %v2423_v56 }
 0x297   :  { %v2967_v21 = vmul.f32 %v3604_v10, %v2834_v26  ;;  %3134 = vrot.lane.b32.xlu1 %v2968_v20, %s3841_s2  ;;  %v3620_v10 = vpop.eup %3619  ;;  %3631 = vpow2.f32 %v2658_v0  ;;  %v2662_v17 = vmul.f32 1.442695, %v2543_v59  ;;  %v2545_v26 = vmul.f32 %v2482_v23, %v5916_v44  ;;  %v6956_v0 = vld [vmem:[#allocation75_spill] sm:$0xff] }
 0x298   :  { %v2846_v11 = vpop.permute.xlu0 %2845  ;;  %v3622_v31 = vpop.eup %3621  ;;  %v1473_v27 = vmul.f32 %v1410_v39, %v1410_v39  ;;  %v1415_v60 = vsub.f32 %v6955_v36, %v6174_v29  ;;  %v1414_v59 = vsub.f32 %v6956_v0, %v6174_v29 }
 0x299   :  { %3132 = vrot.lane.b32.xlu0 %v2967_v21, %s3841_s2  ;;  %v2970_v12 = vmul.f32 %v3606_v48, %v2846_v11  ;;  %v2544_v21 = vmul.f32 %v2481_v41, %v5916_v44  ;;  %v6951_v48 = vld [vmem:[#allocation71_spill] sm:$0xff]  ;;  %3633 = vpow2.f32 %v2662_v17  ;;  %v2666_v25 = vmul.f32 1.442695, %v2545_v26 }
 0x29a   :  { %v2842_v7 = vpop.permute.xlu1 %2841  ;;  %v1411_v53 = vsub.f32 %v6951_v48, %v6174_v29  ;;  %3635 = vpow2.f32 %v2660_v42  ;;  %v1542_v23 = vmul.f32 %v5916_v44, %v1473_v27  ;;  %v1477_v26 = vmul.f32 %v1414_v59, %v1414_v59  ;;  %v6961_v27 = vld [vmem:[#allocation83_spill] sm:$0xff] }
 0x29b   :  { %v2969_v4 = vmul.f32 %v3608_v28, %v2842_v7  ;;  %3138 = vrot.lane.b32.xlu1 %v2970_v12, %s3841_s2  ;;  %v3624_v28 = vpop.eup %3623  ;;  %3637 = vpow2.f32 %v2666_v25 }
 0x29c   :  { %v2854_v58 = vpop.permute.xlu0 %2853  ;;  %v3626_v8 = vpop.eup %3625  ;;  %v1474_v62 = vmul.f32 %v1411_v53, %v1411_v53  ;;  %v1546_v39 = vmul.f32 %v5916_v44, %v1477_v26 }
 0x29d   :  { %3136 = vrot.lane.b32.xlu0 %v2969_v4, %s3841_s2  ;;  %v2972_v54 = vmul.f32 %v3612_v61, %v2854_v58  ;;  %v2664_v4 = vmul.f32 1.442695, %v2544_v21  ;;  %v2546_v61 = vmul.f32 %v2483_v52, %v5916_v44  ;;  %v6954_v58 = vld [vmem:[#allocation17_spill] sm:$0xff]  ;;  %v1605_v52 = vmul.f32 1.442695, %v1542_v23 }
 0x29e   :  { %v2850_v30 = vpop.permute.xlu1 %2849  ;;  %v1412_v57 = vsub.f32 %v6954_v58, %v6174_v29 }
 0x29f   :  { %v2971_v33 = vmul.f32 %v3610_v45, %v2850_v30  ;;  %3142 = vrot.lane.b32.xlu1 %v2972_v54, %s3841_s2  ;;  %v2547_v45 = vmul.f32 %v2484_v49, %v5916_v44  ;;  %v3628_v9 = vpop.eup %3627  ;;  %v1476_v54 = vmul.f32 %v1413_v34, %v1413_v34  ;;  %3639 = vpow2.f32 %v2664_v4  ;;  %v6958_v49 = vld [vmem:[#allocation78_spill] sm:$0xff]  ;;  %v6959_v34 = vld [vmem:[#allocation80_spill] sm:$0xff] }
 0x2a0   :  { %v2862_v35 = vpop.permute.xlu0 %2861  ;;  %v3630_v6 = vpop.eup %3629  ;;  %v2668_v5 = vmul.f32 1.442695, %v2546_v61  ;;  %v1416_v56 = vsub.f32 %v6958_v49, %v6174_v29  ;;  %v6966_v49 = vld [vmem:[#allocation89_spill] sm:$0xff] }
 0x2a1   :  { %3140 = vrot.lane.b32.xlu0 %v2971_v33, %s3841_s2  ;;  %v2974_v2 = vmul.f32 %v3614_v43, %v2862_v35  ;;  %v2670_v33 = vmul.f32 1.442695, %v2547_v45  ;;  %v2549_v43 = vmul.f32 %v2486_v63, %v5916_v44  ;;  %v3632_v18 = vpop.eup %3631  ;;  %v2548_v35 = vmul.f32 %v2485_v40, %v5916_v44  ;;  %v6960_v63 = vld [vmem:[#allocation81_spill] sm:$0xff] }
 0x2a2   :  { %v2858_v46 = vpop.permute.xlu1 %2857  ;;  %v1545_v15 = vmul.f32 %v5916_v44, %v1476_v54  ;;  %v1479_v14 = vmul.f32 %v1416_v56, %v1416_v56  ;;  %v1421_v54 = vsub.f32 %v6961_v27, %v6174_v29  ;;  %v1424_v56 = vsub.f32 %v6966_v49, %v6174_v29 }
 0x2a3   :  { %v2973_v22 = vmul.f32 %v3616_v38, %v2858_v46  ;;  %3146 = vrot.lane.b32.xlu1 %v2974_v2, %s3841_s2  ;;  %v1543_v38 = vmul.f32 %v5916_v44, %v1474_v62  ;;  %v1475_v46 = vmul.f32 %v1412_v57, %v1412_v57  ;;  %3641 = vpow2.f32 %v2670_v33  ;;  %v6962_v33 = vld [vmem:[#allocation84_spill] sm:$0xff] }
 0x2a4   :  { %v2870_v16 = vpop.permute.xlu0 %2869  ;;  %v2674_v41 = vmul.f32 1.442695, %v2549_v43  ;;  %3643 = vpow2.f32 %v2668_v5  ;;  %v1611_v53 = vmul.f32 1.442695, %v1545_v15  ;;  %v1548_v58 = vmul.f32 %v5916_v44, %v1479_v14  ;;  %v6963_v5 = vld [vmem:[#allocation86_spill] sm:$0xff]  ;;  %v6964_v15 = vld [vmem:[#allocation87_spill] sm:$0xff] }
 0x2a5   :  { %3144 = vrot.lane.b32.xlu0 %v2973_v22, %s3841_s2  ;;  %v2976_v20 = vmul.f32 %v3618_v13, %v2870_v16  ;;  %v3634_v13 = vpop.eup %3633  ;;  %v1478_v16 = vmul.f32 %v1415_v60, %v1415_v60  ;;  %v1544_v21 = vmul.f32 %v5916_v44, %v1475_v46  ;;  %v1420_v43 = vsub.f32 %v6962_v33, %v6174_v29 }
 0x2a6   :  { %v2866_v47 = vpop.permute.xlu1 %2865  ;;  %v3636_v42 = vpop.eup %3635  ;;  %3645 = vpow2.f32 %v2674_v41  ;;  %v1617_v0 = vmul.f32 1.442695, %v1548_v58  ;;  %v1422_v41 = vsub.f32 %v6964_v15, %v6174_v29 }
 0x2a7   :  { %v2975_v19 = vmul.f32 %v3620_v10, %v2866_v47  ;;  %3150 = vrot.lane.b32.xlu1 %v2976_v20, %s3841_s2  ;;  %v6957_v10 = vld [vmem:[#allocation76_spill] sm:$0xff]  ;;  %v2672_v20 = vmul.f32 1.442695, %v2548_v35  ;;  %v1607_v47 = vmul.f32 1.442695, %v1543_v38  ;;  %v3638_v24 = vpop.eup %3637  ;;  %v1423_v35 = vsub.f32 %v6963_v5, %v6174_v29 }
 0x2a8   :  { %v2878_v11 = vpop.permute.xlu0 %2877  ;;  %v1417_v17 = vsub.f32 %v6957_v10, %v6174_v29  ;;  %v1609_v45 = vmul.f32 1.442695, %v1544_v21  ;;  %v6965_v10 = vld [vmem:[#allocation88_spill] sm:$0xff] }
 0x2a9   :  { %3148 = vrot.lane.b32.xlu0 %v2975_v19, %s3841_s2  ;;  %v2978_v12 = vmul.f32 %v3622_v31, %v2878_v11  ;;  %v1547_v11 = vmul.f32 %v5916_v44, %v1478_v16  ;;  %3647 = vpow2.f32 %v2672_v20  ;;  %v3640_v25 = vpop.eup %3639  ;;  %v1486_v26 = vmul.f32 %v1423_v35, %v1423_v35 }
 0x2aa   :  { %v2874_v7 = vpop.permute.xlu1 %2873  ;;  %3649 = vpow2.f32 %v1607_v47 }
 0x2ab   :  { %v2977_v51 = vmul.f32 %v3624_v28, %v2874_v7  ;;  %3154 = vrot.lane.b32.xlu1 %v2978_v12, %s3841_s2  ;;  %v1480_v28 = vmul.f32 %v1417_v17, %v1417_v17  ;;  %v1419_v12 = vsub.f32 %v6959_v34, %v6174_v29  ;;  %3651 = vpow2.f32 %v1605_v52 }
 0x2ac   :  { %v2886_v50 = vpop.permute.xlu0 %2885  ;;  %3653 = vpow2.f32 %v1611_v53  ;;  %v1425_v17 = vsub.f32 %v6965_v10, %v6174_v29 }
 0x2ad   :  { %3152 = vrot.lane.b32.xlu0 %v2977_v51, %s3841_s2  ;;  %v2980_v30 = vmul.f32 %v3626_v8, %v2886_v50  ;;  %v1418_v51 = vsub.f32 %v6960_v63, %v6174_v29  ;;  %v1615_v8 = vmul.f32 1.442695, %v1547_v11  ;;  %v1549_v62 = vmul.f32 %v5916_v44, %v1480_v28  ;;  %v3642_v50 = vpop.eup %3641  ;;  %v6969_v63 = vld [vmem:[#allocation91_spill] sm:$0xff] }
 0x2ae   :  { %v2882_v55 = vpop.permute.xlu1 %2881  ;;  %v1482_v57 = vmul.f32 %v1419_v12, %v1419_v12  ;;  %3655 = vpow2.f32 %v1609_v45  ;;  %v1488_v34 = vmul.f32 %v1425_v17, %v1425_v17  ;;  %v1487_v45 = vmul.f32 %v1424_v56, %v1424_v56 }
 0x2af   :  { %v2979_v1 = vmul.f32 %v3628_v9, %v2882_v55  ;;  %3158 = vrot.lane.b32.xlu1 %v2980_v30, %s3841_s2  ;;  %v1613_v9 = vmul.f32 1.442695, %v1546_v39  ;;  %v3644_v55 = vpop.eup %3643  ;;  %3657 = vpow2.f32 %v1615_v8  ;;  %v1619_v60 = vmul.f32 1.442695, %v1549_v62  ;;  %v6971_v8 = vld [vmem:[#allocation92_spill] sm:$0xff] }
 0x2b0   :  { %v2894_v2 = vpop.permute.xlu0 %2893  ;;  %v3646_v38 = vpop.eup %3645  ;;  %v1551_v59 = vmul.f32 %v5916_v44, %v1482_v57  ;;  %v1426_v62 = vsub.f32 %v6971_v8, %v6174_v29  ;;  %v1557_v33 = vmul.f32 %v5916_v44, %v1488_v34 }
 0x2b1   :  { %3156 = vrot.lane.b32.xlu0 %v2979_v1, %s3841_s2  ;;  %v2982_v37 = vmul.f32 %v3632_v18, %v2894_v2  ;;  %3659 = vpow2.f32 %v1613_v9  ;;  %v1484_v2 = vmul.f32 %v1421_v54, %v1421_v54 }
 0x2b2   :  { %v2890_v22 = vpop.permute.xlu1 %2889  ;;  %3661 = vpow2.f32 %v1619_v60  ;;  %v1623_v21 = vmul.f32 1.442695, %v1551_v59  ;;  %v6973_v60 = vld [vmem:[#allocation153_spill] sm:$0xff]  ;;  %v1489_v35 = vmul.f32 %v1426_v62, %v1426_v62  ;;  %v6975_v59 = vld [vmem:[#allocation150_spill] sm:$0xff] }
 0x2b3   :  { %v2981_v3 = vmul.f32 %v3630_v6, %v2890_v22  ;;  %3162 = vrot.lane.b32.xlu1 %v2982_v37, %s3841_s2  ;;  %v1481_v6 = vmul.f32 %v1418_v51, %v1418_v51  ;;  %v3648_v23 = vpop.eup %3647  ;;  %v1483_v22 = vmul.f32 %v1420_v43, %v1420_v43  ;;  %3663 = vpow2.f32 %v1617_v0 }
 0x2b4   :  { %v2902_v19 = vpop.permute.xlu0 %2901  ;;  %v3650_v16 = vpop.eup %3649  ;;  %v1553_v52 = vmul.f32 %v5916_v44, %v1484_v2  ;;  %v1427_v51 = vsub.f32 %v6969_v63, %v6174_v29  ;;  %3665 = vpow2.f32 %v1623_v21  ;;  %v1558_v49 = vmul.f32 %v5916_v44, %v1489_v35  ;;  %v6979_v21 = vld [vmem:[#allocation154_spill] sm:$0xff] }
 0x2b5   :  { %3160 = vrot.lane.b32.xlu0 %v2981_v3, %s3841_s2  ;;  %v2984_v32 = vmul.f32 %v3634_v13, %v2902_v19  ;;  %v1550_v37 = vmul.f32 %v5916_v44, %v1481_v6  ;;  %v3652_v47 = vpop.eup %3651  ;;  %v6967_v19 = vld [vmem:[#allocation147_spill] sm:$0xff]  ;;  %v1552_v28 = vmul.f32 %v5916_v44, %v1483_v22  ;;  %v6976_v22 = vld [vmem:[#allocation94_spill] sm:$0xff] }
 0x2b6   :  { %v2898_v31 = vpop.permute.xlu1 %2897  ;;  %v3654_v53 = vpop.eup %3653  ;;  %v1428_v15 = vsub.f32 %v6976_v22, %v6174_v29  ;;  %v1637_v63 = vmul.f32 1.442695, %v1558_v49 }
 0x2b7   :  { %v2983_v48 = vmul.f32 %v3636_v42, %v2898_v31  ;;  %3166 = vrot.lane.b32.xlu1 %v2984_v32, %s3841_s2  ;;  %v2047_v42 = vmul.f32 %v3650_v16, %v6967_v19  ;;  %v6968_v32 = vld [vmem:[#allocation144_spill] sm:$0xff]  ;;  %v1621_v11 = vmul.f32 1.442695, %v1550_v37  ;;  %v1625_v27 = vmul.f32 1.442695, %v1552_v28  ;;  %v6978_v19 = vld [vmem:[#allocation95_spill] sm:$0xff] }
 0x2b8   :  { %v2910_v7 = vpop.permute.xlu0 %2909  ;;  %v2046_v31 = vmul.f32 %v3652_v47, %v6968_v32  ;;  %v1635_v16 = vmul.f32 1.442695, %v1557_v33  ;;  %v6977_v47 = vld [vmem:[#allocation157_spill] sm:$0xff] }
 0x2b9   :  { %3164 = vrot.lane.b32.xlu0 %v2983_v48, %s3841_s2  ;;  %v2986_v4 = vmul.f32 %v3638_v24, %v2910_v7  ;;  %v1485_v24 = vmul.f32 %v1422_v41, %v1422_v41  ;;  %v3656_v7 = vpop.eup %3655  ;;  %3667 = vpow2.f32 %v1621_v11 }
 0x2ba   :  { %v2906_v61 = vpop.permute.xlu1 %2905  ;;  %v3658_v57 = vpop.eup %3657 }
 0x2bb   :  { %v2985_v40 = vmul.f32 %v3640_v25, %v2906_v61  ;;  %3170 = vrot.lane.b32.xlu1 %v2986_v4, %s3841_s2  ;;  %v1555_v25 = vmul.f32 %v5916_v44, %v1486_v26  ;;  %v6970_v4 = vld [vmem:[#allocation149_spill] sm:$0xff]  ;;  %v1554_v54 = vmul.f32 %v5916_v44, %v1485_v24  ;;  %v3660_v6 = vpop.eup %3659  ;;  %v2051_v5 = vmul.f32 %v3658_v57, %v6973_v60 }
 0x2bc   :  { %v2918_v30 = vpop.permute.xlu0 %2917  ;;  %v2049_v61 = vmul.f32 %v3654_v53, %v6970_v4  ;;  %v2050_v2 = vmul.f32 %v3660_v6, %v6975_v59 }
 0x2bd   :  { %3168 = vrot.lane.b32.xlu0 %v2985_v40, %s3841_s2  ;;  %v2988_v1 = vmul.f32 %v3642_v50, %v2918_v30  ;;  %v1627_v40 = vmul.f32 1.442695, %v1553_v52  ;;  %v6972_v50 = vld [vmem:[#allocation148_spill] sm:$0xff]  ;;  %v1629_v37 = vmul.f32 1.442695, %v1554_v54 }
 0x2be   :  { %v2914_v18 = vpop.permute.xlu1 %2913  ;;  %v2048_v9 = vmul.f32 %v3656_v7, %v6972_v50 }
 0x2bf   :  { %v2987_v36 = vmul.f32 %v3644_v55, %v2914_v18  ;;  %3174 = vrot.lane.b32.xlu1 %v2988_v1, %s3841_s2  ;;  %v1631_v1 = vmul.f32 1.442695, %v1555_v25  ;;  %v1556_v18 = vmul.f32 %v5916_v44, %v1487_v45  ;;  %3669 = vpow2.f32 %v1627_v40  ;;  %v6982_v25 = vld [vmem:[#allocation159_spill] sm:$0xff] }
 0x2c0   :  { %v2926_v46 = vpop.permute.xlu0 %2925  ;;  %3671 = vpow2.f32 %v1625_v27 }
 0x2c1   :  { %3172 = vrot.lane.b32.xlu0 %v2987_v36, %s3841_s2  ;;  %v2990_v3 = vmul.f32 %v3646_v38, %v2926_v46  ;;  %v1490_v36 = vmul.f32 %v1427_v51, %v1427_v51  ;;  %v6974_v38 = vld [vmem:[#allocation93_spill] sm:$0xff]  ;;  %3673 = vpow2.f32 %v1631_v1  ;;  %v1633_v17 = vmul.f32 1.442695, %v1556_v18  ;;  %v6986_v1 = vld [vmem:[#allocation100_spill] sm:$0xff] }
 0x2c2   :  { %v2922_v13 = vpop.permute.xlu1 %2921  ;;  %v1429_v0 = vsub.f32 %v6974_v38, %v6174_v29  ;;  %3675 = vpow2.f32 %v1629_v37  ;;  %v1434_v18 = vsub.f32 %v6986_v1, %v6174_v29  ;;  %v6988_v38 = vld [vmem:[#allocation160_spill] sm:$0xff] }
 0x2c3   :  { %v2989_v20 = vmul.f32 %v3648_v23, %v2922_v13  ;;  %3178 = vrot.lane.b32.xlu1 %v2990_v3, %s3841_s2  ;;  %v3662_v23 = vpop.eup %3661  ;;  %3677 = vpow2.f32 %v1635_v16 }
 0x2c4   :  { %v3057_v48 = vpop.permute.xlu0 %3056  ;;  %v3664_v13 = vpop.eup %3663  ;;  %v2053_v26 = vmul.f32 %v3662_v23, %v6977_v47  ;;  %v1492_v56 = vmul.f32 %v1429_v0, %v1429_v0  ;;  %3679 = vpow2.f32 %v1633_v17  ;;  %v6989_v17 = vld [vmem:[#allocation101_spill] sm:$0xff]  ;;  %v6990_v47 = vld [vmem:[#allocation167_spill] sm:$0xff] }
 0x2c5   :  { %3176 = vrot.lane.b32.xlu0 %v2989_v20, %s3841_s2  ;;  %v3245_v39 = vsel %vm3243_vm15, %v2047_v42, %v3057_v48  ;;  %v1559_v20 = vmul.f32 %v5916_v44, %v1490_v36  ;;  %v1431_v42 = vsub.f32 %v6978_v19, %v6174_v29  ;;  %v2052_v52 = vmul.f32 %v3664_v13, %v6979_v21  ;;  %v6980_v48 = vld [vmem:[#allocation96_spill] sm:$0xff]  ;;  %v3666_v24 = vpop.eup %3665  ;;  %v6987_v36 = vld [vmem:[#allocation163_spill] sm:$0xff]  ;;  %v6991_v19 = vld [vmem:[#allocation102_spill] sm:$0xff] }
 0x2c6   :  { %v3055_v14 = vpop.permute.xlu1 %3054  ;;  %3308 = vst [vmem:[#allocation2 + $0x8] sm:$0xff] %v3245_v39  ;;  %v1430_v53 = vsub.f32 %v6980_v48, %v6174_v29  ;;  %v2055_v45 = vmul.f32 %v3666_v24, %v6982_v25  ;;  %v1561_v51 = vmul.f32 %v5916_v44, %v1492_v56  ;;  %v6992_v21 = vld [vmem:[#allocation164_spill] sm:$0xff] }
 0x2c7   :  { %v3244_v12 = vsel %vm3243_vm15, %v2046_v31, %v3055_v14  ;;  %v1491_v31 = vmul.f32 %v1428_v15, %v1428_v15  ;;  %v3668_v14 = vpop.eup %3667  ;;  %v1639_v34 = vmul.f32 1.442695, %v1559_v20  ;;  %v1494_v4 = vmul.f32 %v1431_v42, %v1431_v42 }
 0x2c8   :  { %3307 = vst [vmem:[#allocation2] sm:$0xff] %v3244_v12  ;;  %v3061_v58 = vpop.permute.xlu0 %3060  ;;  %v6981_v12 = vld [vmem:[#allocation97_spill] sm:$0xff]  ;;  %v1493_v50 = vmul.f32 %v1430_v53, %v1430_v53  ;;  %v1437_v20 = vsub.f32 %v6989_v17, %v6174_v29  ;;  %v1436_v42 = vsub.f32 %v6991_v19, %v6174_v29 }
 0x2c9   :  { %v3247_v30 = vsel %vm3243_vm15, %v2049_v61, %v3061_v58  ;;  %v1433_v7 = vsub.f32 %v6981_v12, %v6174_v29  ;;  %v6983_v61 = vld [vmem:[#allocation158_spill] sm:$0xff]  ;;  %v1560_v62 = vmul.f32 %v5916_v44, %v1491_v31  ;;  %v3670_v54 = vpop.eup %3669  ;;  %3681 = vpow2.f32 %v1639_v34 }
 0x2ca   :  { %v3059_v55 = vpop.permute.xlu1 %3058  ;;  %3310 = vst [vmem:[#allocation2 + $0x18] sm:$0xff] %v3247_v30  ;;  %v2054_v40 = vmul.f32 %v3668_v14, %v6983_v61  ;;  %v6985_v30 = vld [vmem:[#allocation99_spill] sm:$0xff]  ;;  %v3672_v33 = vpop.eup %3671  ;;  %v2057_v60 = vmul.f32 %v3670_v54, %v6987_v36  ;;  %3683 = vpow2.f32 %v1637_v63  ;;  %v1563_v35 = vmul.f32 %v5916_v44, %v1494_v4  ;;  %v6995_v4 = vld [vmem:[#allocation168_spill] sm:$0xff]  ;;  %v6998_v36 = vld [vmem:[#allocation105_spill] sm:$0xff] }
 0x2cb   :  { %v3246_v43 = vsel %vm3243_vm15, %v2048_v9, %v3059_v55  ;;  %v6984_v9 = vld [vmem:[#allocation98_spill] sm:$0xff]  ;;  %v1435_v55 = vsub.f32 %v6985_v30, %v6174_v29  ;;  %v2056_v0 = vmul.f32 %v3672_v33, %v6988_v38  ;;  %v1562_v23 = vmul.f32 %v5916_v44, %v1493_v50  ;;  %v6994_v63 = vld [vmem:[#allocation103_spill] sm:$0xff]  ;;  %v6996_v50 = vld [vmem:[#allocation104_spill] sm:$0xff] }
 0x2cc   :  { %3309 = vst [vmem:[#allocation2 + $0x10] sm:$0xff] %v3246_v43  ;;  %v3065_v46 = vpop.permute.xlu0 %3064  ;;  %v1432_v58 = vsub.f32 %v6984_v9, %v6174_v29  ;;  %v1496_v43 = vmul.f32 %v1433_v7, %v1433_v7  ;;  %v1647_v56 = vmul.f32 1.442695, %v1563_v35  ;;  %v1500_v12 = vmul.f32 %v1437_v20, %v1437_v20  ;;  %v6993_v7 = vld [vmem:[#allocation169_spill] sm:$0xff]  ;;  %v6997_v33 = vld [vmem:[#allocation171_spill] sm:$0xff] }
 0x2cd   :  { %v3249_v41 = vsel %vm3243_vm15, %v2051_v5, %v3065_v46  ;;  %v1643_v5 = vmul.f32 1.442695, %v1561_v51  ;;  %v1641_v46 = vmul.f32 1.442695, %v1560_v62  ;;  %v1645_v48 = vmul.f32 1.442695, %v1562_v23 }
 0x2ce   :  { %v3063_v3 = vpop.permute.xlu1 %3062  ;;  %3312 = vst [vmem:[#allocation2 + $0x28] sm:$0xff] %v3249_v41  ;;  %v1495_v37 = vmul.f32 %v1432_v58, %v1432_v58  ;;  %v1498_v41 = vmul.f32 %v1435_v55, %v1435_v55  ;;  %v1565_v16 = vmul.f32 %v5916_v44, %v1496_v43  ;;  %v1439_v51 = vsub.f32 %v6994_v63, %v6174_v29  ;;  %v7008_v63 = vld [vmem:[#allocation174_spill] sm:$0xff] }
 0x2cf   :  { %v3248_v10 = vsel %vm3243_vm15, %v2050_v2, %v3063_v3  ;;  %v3674_v2 = vpop.eup %3673  ;;  %3685 = vpow2.f32 %v1643_v5  ;;  %v1438_v9 = vsub.f32 %v6996_v50, %v6174_v29  ;;  %v6999_v5 = vld [vmem:[#allocation170_spill] sm:$0xff] }
 0x2d0   :  { %3311 = vst [vmem:[#allocation2 + $0x20] sm:$0xff] %v3248_v10  ;;  %v3069_v32 = vpop.permute.xlu0 %3068  ;;  %v3676_v13 = vpop.eup %3675  ;;  %v1497_v10 = vmul.f32 %v1434_v18, %v1434_v18  ;;  %3687 = vpow2.f32 %v1641_v46  ;;  %v1564_v53 = vmul.f32 %v5916_v44, %v1495_v37  ;;  %v1567_v24 = vmul.f32 %v5916_v44, %v1498_v41 }
 0x2d1   :  { %v3251_v11 = vsel %vm3243_vm15, %v2053_v26, %v3069_v32  ;;  %v2059_v26 = vmul.f32 %v3674_v2, %v6990_v47  ;;  %v3678_v49 = vpop.eup %3677  ;;  %v1651_v14 = vmul.f32 1.442695, %v1565_v16  ;;  %3689 = vpow2.f32 %v1647_v56  ;;  %v7002_v16 = vld [vmem:[#allocation173_spill] sm:$0xff] }
 0x2d2   :  { %v3067_v28 = vpop.permute.xlu1 %3066  ;;  %3314 = vst [vmem:[#allocation2 + $0x38] sm:$0xff] %v3251_v11  ;;  %v3680_v31 = vpop.eup %3679  ;;  %v1566_v34 = vmul.f32 %v5916_v44, %v1497_v10  ;;  %v2061_v25 = vmul.f32 %v3678_v49, %v6993_v7  ;;  %3691 = vpow2.f32 %v1645_v48  ;;  %v1649_v62 = vmul.f32 1.442695, %v1564_v53  ;;  %v7005_v53 = vld [vmem:[#allocation109_spill] sm:$0xff] }
 0x2d3   :  { %v3250_v39 = vsel %vm3243_vm15, %v2052_v52, %v3067_v28  ;;  %v2058_v52 = vmul.f32 %v3676_v13, %v6992_v21  ;;  %v2060_v61 = vmul.f32 %v3680_v31, %v6995_v4  ;;  %v1655_v54 = vmul.f32 1.442695, %v1567_v24  ;;  %v7004_v21 = vld [vmem:[#allocation108_spill] sm:$0xff] }
 0x2d4   :  { %3313 = vst [vmem:[#allocation2 + $0x30] sm:$0xff] %v3250_v39  ;;  %v3073_v8 = vpop.permute.xlu0 %3072  ;;  %3693 = vpow2.f32 %v1651_v14  ;;  %v1653_v55 = vmul.f32 1.442695, %v1566_v34  ;;  %v1502_v18 = vmul.f32 %v1439_v51, %v1439_v51  ;;  %v7006_v14 = vld [vmem:[#allocation110_spill] sm:$0xff] }
 0x2d5   :  { %v3253_v57 = vsel %vm3243_vm15, %v2055_v45, %v3073_v8  ;;  %v1499_v45 = vmul.f32 %v1436_v42, %v1436_v42  ;;  %v3682_v8 = vpop.eup %3681  ;;  %3695 = vpow2.f32 %v1649_v62  ;;  %v1444_v34 = vsub.f32 %v7006_v14, %v6174_v29 }
 0x2d6   :  { %v3071_v27 = vpop.permute.xlu1 %3070  ;;  %3316 = vst [vmem:[#allocation2 + $0x48] sm:$0xff] %v3253_v57  ;;  %v2063_v43 = vmul.f32 %v3682_v8, %v6997_v33  ;;  %3697 = vpow2.f32 %v1655_v54  ;;  %v1571_v20 = vmul.f32 %v5916_v44, %v1502_v18  ;;  %v7010_v33 = vld [vmem:[#allocation7_spill] sm:$0xff] }
 0x2d7   :  { %v3252_v6 = vsel %vm3243_vm15, %v2054_v40, %v3071_v27  ;;  %v3684_v27 = vpop.eup %3683  ;;  %v1568_v1 = vmul.f32 %v5916_v44, %v1499_v45  ;;  %3699 = vpow2.f32 %v1653_v55  ;;  %v7009_v55 = vld [vmem:[#allocation111_spill] sm:$0xff] }
 0x2d8   :  { %3315 = vst [vmem:[#allocation2 + $0x40] sm:$0xff] %v3252_v6  ;;  %v3077_v59 = vpop.permute.xlu0 %3076  ;;  %v1569_v6 = vmul.f32 %v5916_v44, %v1500_v12  ;;  %v2062_v35 = vmul.f32 %v3684_v27, %v6999_v5  ;;  %v7007_v12 = vld [vmem:[#allocation6_spill] sm:$0xff]  ;;  %v7012_v5 = vld [vmem:[#allocation8_spill] sm:$0xff] }
 0x2d9   :  { %v3255_v22 = vsel %vm3243_vm15, %v2057_v60, %v3077_v59  ;;  %v1441_v60 = vsub.f32 %v6998_v36, %v6174_v29  ;;  %v7000_v59 = vld [vmem:[#allocation106_spill] sm:$0xff]  ;;  %v3686_v37 = vpop.eup %3685  ;;  %v1657_v17 = vmul.f32 1.442695, %v1568_v1  ;;  %v7011_v36 = vld [vmem:[#allocation112_spill] sm:$0xff] }
 0x2da   :  { %v3075_v15 = vpop.permute.xlu1 %3074  ;;  %3318 = vst [vmem:[#allocation2 + $0x58] sm:$0xff] %v3255_v22  ;;  %v1440_v2 = vsub.f32 %v7000_v59, %v6174_v29  ;;  %v1659_v41 = vmul.f32 1.442695, %v1569_v6  ;;  %v2065_v10 = vmul.f32 %v3686_v37, %v7002_v16  ;;  %v1447_v6 = vsub.f32 %v7009_v55, %v6174_v29 }
 0x2db   :  { %v3254_v3 = vsel %vm3243_vm15, %v2056_v0, %v3075_v15  ;;  %v1501_v0 = vmul.f32 %v1438_v9, %v1438_v9  ;;  %v3688_v15 = vpop.eup %3687  ;;  %v1504_v47 = vmul.f32 %v1441_v60, %v1441_v60  ;;  %v1446_v60 = vsub.f32 %v7011_v36, %v6174_v29 }
 0x2dc   :  { %3317 = vst [vmem:[#allocation2 + $0x50] sm:$0xff] %v3254_v3  ;;  %v3081_v32 = vpop.permute.xlu0 %3080  ;;  %v7001_v3 = vld [vmem:[#allocation107_spill] sm:$0xff]  ;;  %v1503_v42 = vmul.f32 %v1440_v2, %v1440_v2  ;;  %v3690_v48 = vpop.eup %3689  ;;  %3701 = vpow2.f32 %v1659_v41 }
 0x2dd   :  { %v3257_v11 = vsel %vm3243_vm15, %v2059_v26, %v3081_v32  ;;  %v1443_v13 = vsub.f32 %v7001_v3, %v6174_v29  ;;  %v7003_v26 = vld [vmem:[#allocation172_spill] sm:$0xff]  ;;  %v1570_v19 = vmul.f32 %v5916_v44, %v1501_v0  ;;  %v3692_v24 = vpop.eup %3691  ;;  %v2067_v7 = vmul.f32 %v3690_v48, %v7007_v12  ;;  %v7018_v12 = vld [vmem:[#allocation115_spill] sm:$0xff] }
 0x2de   :  { %v3079_v28 = vpop.permute.xlu1 %3078  ;;  %3320 = vst [vmem:[#allocation2 + $0x68] sm:$0xff] %v3257_v11  ;;  %v2064_v49 = vmul.f32 %v3688_v15, %v7003_v26  ;;  %v1445_v11 = vsub.f32 %v7005_v53, %v6174_v29  ;;  %3703 = vpow2.f32 %v1657_v17  ;;  %v1573_v45 = vmul.f32 %v5916_v44, %v1504_v47  ;;  %v7014_v17 = vld [vmem:[#allocation113_spill] sm:$0xff] }
 0x2df   :  { %v3256_v39 = vsel %vm3243_vm15, %v2058_v52, %v3079_v28  ;;  %v1442_v52 = vsub.f32 %v7004_v21, %v6174_v29  ;;  %v2066_v51 = vmul.f32 %v3692_v24, %v7008_v63  ;;  %v1572_v8 = vmul.f32 %v5916_v44, %v1503_v42  ;;  %v7015_v47 = vld [vmem:[#allocation5_spill] sm:$0xff]  ;;  %v7016_v42 = vld [vmem:[#allocation114_spill] sm:$0xff]  ;;  %v7017_v24 = vld [vmem:[#allocation11_spill] sm:$0xff] }
 0x2e0   :  { %3319 = vst [vmem:[#allocation2 + $0x60] sm:$0xff] %v3256_v39  ;;  %v3085_v40 = vpop.permute.xlu0 %3084  ;;  %v1506_v39 = vmul.f32 %v1443_v13, %v1443_v13  ;;  %v1667_v18 = vmul.f32 1.442695, %v1573_v45  ;;  %v1510_v3 = vmul.f32 %v1447_v6, %v1447_v6  ;;  %v7013_v13 = vld [vmem:[#allocation9_spill] sm:$0xff]  ;;  %v1448_v21 = vsub.f32 %v7016_v42, %v6174_v29 }
 0x2e1   :  { %v3259_v58 = vsel %vm3243_vm15, %v2061_v25, %v3085_v40  ;;  %v1663_v25 = vmul.f32 1.442695, %v1571_v20  ;;  %v1661_v40 = vmul.f32 1.442695, %v1570_v19  ;;  %v1505_v62 = vmul.f32 %v1442_v52, %v1442_v52 }
 0x2e2   :  { %v3083_v57 = vpop.permute.xlu1 %3082  ;;  %3322 = vst [vmem:[#allocation2 + $0x78] sm:$0xff] %v3259_v58  ;;  %v1508_v58 = vmul.f32 %v1445_v11, %v1445_v11  ;;  %v1575_v54 = vmul.f32 %v5916_v44, %v1506_v39  ;;  %v1665_v59 = vmul.f32 1.442695, %v1572_v8  ;;  %v1449_v20 = vsub.f32 %v7014_v17, %v6174_v29  ;;  %v7028_v17 = vld [vmem:[#allocation14_spill] sm:$0xff] }
 0x2e3   :  { %v3258_v30 = vsel %vm3243_vm15, %v2060_v61, %v3083_v57  ;;  %v3694_v61 = vpop.eup %3693  ;;  %3705 = vpow2.f32 %v1663_v25  ;;  %v1574_v2 = vmul.f32 %v5916_v44, %v1505_v62  ;;  %v7019_v25 = vld [vmem:[#allocation10_spill] sm:$0xff] }
 0x2e4   :  { %3321 = vst [vmem:[#allocation2 + $0x70] sm:$0xff] %v3258_v30  ;;  %v3089_v38 = vpop.permute.xlu0 %3088  ;;  %v3696_v27 = vpop.eup %3695  ;;  %v1507_v30 = vmul.f32 %v1444_v34, %v1444_v34  ;;  %3707 = vpow2.f32 %v1661_v40  ;;  %v1577_v37 = vmul.f32 %v5916_v44, %v1508_v58  ;;  %v1671_v15 = vmul.f32 1.442695, %v1575_v54  ;;  %v7022_v54 = vld [vmem:[#allocation13_spill] sm:$0xff] }
 0x2e5   :  { %v3261_v46 = vsel %vm3243_vm15, %v2063_v43, %v3089_v38  ;;  %v2069_v43 = vmul.f32 %v3694_v61, %v7010_v33  ;;  %v3698_v1 = vpop.eup %3697  ;;  %3709 = vpow2.f32 %v1667_v18  ;;  %v1669_v19 = vmul.f32 1.442695, %v1574_v2  ;;  %v7025_v2 = vld [vmem:[#allocation119_spill] sm:$0xff] }
 0x2e6   :  { %v3087_v23 = vpop.permute.xlu1 %3086  ;;  %3324 = vst [vmem:[#allocation2 + $0x88] sm:$0xff] %v3261_v46  ;;  %v3700_v0 = vpop.eup %3699  ;;  %v1576_v41 = vmul.f32 %v5916_v44, %v1507_v30  ;;  %v2071_v16 = vmul.f32 %v3698_v1, %v7013_v13  ;;  %3711 = vpow2.f32 %v1665_v59  ;;  %v1675_v48 = vmul.f32 1.442695, %v1577_v37 }
 0x2e7   :  { %v3260_v22 = vsel %vm3243_vm15, %v2062_v35, %v3087_v23  ;;  %v2068_v35 = vmul.f32 %v3696_v27, %v7012_v5  ;;  %v2070_v26 = vmul.f32 %v3700_v0, %v7015_v47  ;;  %3713 = vpow2.f32 %v1671_v15  ;;  %v7024_v5 = vld [vmem:[#allocation118_spill] sm:$0xff]  ;;  %v7026_v15 = vld [vmem:[#allocation120_spill] sm:$0xff] }
 0x2e8   :  { %3323 = vst [vmem:[#allocation2 + $0x80] sm:$0xff] %v3260_v22  ;;  %v3093_v56 = vpop.permute.xlu0 %3092  ;;  %v1673_v11 = vmul.f32 1.442695, %v1576_v41  ;;  %v1512_v34 = vmul.f32 %v1449_v20, %v1449_v20  ;;  %3715 = vpow2.f32 %v1669_v19  ;;  %v1454_v41 = vsub.f32 %v7026_v15, %v6174_v29 }
 0x2e9   :  { %v3263_v32 = vsel %vm3243_vm15, %v2065_v10, %v3093_v56  ;;  %v1509_v10 = vmul.f32 %v1446_v60, %v1446_v60  ;;  %v3702_v56 = vpop.eup %3701  ;;  %3717 = vpow2.f32 %v1675_v48 }
 0x2ea   :  { %v3091_v31 = vpop.permute.xlu1 %3090  ;;  %3326 = vst [vmem:[#allocation2 + $0x98] sm:$0xff] %v3263_v32  ;;  %v2073_v39 = vmul.f32 %v3702_v56, %v7017_v24  ;;  %3719 = vpow2.f32 %v1673_v11  ;;  %v1581_v6 = vmul.f32 %v5916_v44, %v1512_v34  ;;  %v7029_v11 = vld [vmem:[#allocation121_spill] sm:$0xff]  ;;  %v7030_v24 = vld [vmem:[#allocation18_spill] sm:$0xff] }
 0x2eb   :  { %v3262_v28 = vsel %vm3243_vm15, %v2064_v49, %v3091_v31  ;;  %v3704_v31 = vpop.eup %3703  ;;  %v1578_v14 = vmul.f32 %v5916_v44, %v1509_v10 }
 0x2ec   :  { %3325 = vst [vmem:[#allocation2 + $0x90] sm:$0xff] %v3262_v28  ;;  %v3097_v4 = vpop.permute.xlu0 %3096  ;;  %v1579_v28 = vmul.f32 %v5916_v44, %v1510_v3  ;;  %v2072_v45 = vmul.f32 %v3704_v31, %v7019_v25  ;;  %v7027_v3 = vld [vmem:[#allocation15_spill] sm:$0xff]  ;;  %v7032_v25 = vld [vmem:[#allocation16_spill] sm:$0xff] }
 0x2ed   :  { %v3265_v50 = vsel %vm3243_vm15, %v2067_v7, %v3097_v4  ;;  %v1451_v7 = vsub.f32 %v7018_v12, %v6174_v29  ;;  %v7020_v4 = vld [vmem:[#allocation116_spill] sm:$0xff]  ;;  %v3706_v62 = vpop.eup %3705  ;;  %v1677_v55 = vmul.f32 1.442695, %v1578_v14  ;;  %v7031_v12 = vld [vmem:[#allocation122_spill] sm:$0xff] }
 0x2ee   :  { %v3095_v9 = vpop.permute.xlu1 %3094  ;;  %3328 = vst [vmem:[#allocation2 + $0xa8] sm:$0xff] %v3265_v50  ;;  %v1450_v61 = vsub.f32 %v7020_v4, %v6174_v29  ;;  %v1679_v58 = vmul.f32 1.442695, %v1579_v28  ;;  %v2075_v30 = vmul.f32 %v3706_v62, %v7022_v54  ;;  %v1457_v28 = vsub.f32 %v7029_v11, %v6174_v29 }
 0x2ef   :  { %v3264_v57 = vsel %vm3243_vm15, %v2066_v51, %v3095_v9  ;;  %v1511_v51 = vmul.f32 %v1448_v21, %v1448_v21  ;;  %v3708_v9 = vpop.eup %3707  ;;  %v1514_v33 = vmul.f32 %v1451_v7, %v1451_v7  ;;  %v1456_v7 = vsub.f32 %v7031_v12, %v6174_v29 }
 0x2f0   :  { %3327 = vst [vmem:[#allocation2 + $0xa0] sm:$0xff] %v3264_v57  ;;  %v3101_v38 = vpop.permute.xlu0 %3100  ;;  %v7021_v57 = vld [vmem:[#allocation117_spill] sm:$0xff]  ;;  %v1513_v60 = vmul.f32 %v1450_v61, %v1450_v61  ;;  %v3710_v59 = vpop.eup %3709  ;;  %3721 = vpow2.f32 %v1679_v58 }
 0x2f1   :  { %v3267_v46 = vsel %vm3243_vm15, %v2069_v43, %v3101_v38  ;;  %v1453_v27 = vsub.f32 %v7021_v57, %v6174_v29  ;;  %v7023_v43 = vld [vmem:[#allocation12_spill] sm:$0xff]  ;;  %v1580_v36 = vmul.f32 %v5916_v44, %v1511_v51  ;;  %v3712_v37 = vpop.eup %3711  ;;  %v2077_v13 = vmul.f32 %v3710_v59, %v7027_v3  ;;  %v7038_v3 = vld [vmem:[#allocation126_spill] sm:$0xff] }
 0x2f2   :  { %v3099_v23 = vpop.permute.xlu1 %3098  ;;  %3330 = vst [vmem:[#allocation2 + $0xb8] sm:$0xff] %v3267_v46  ;;  %v2074_v1 = vmul.f32 %v3708_v9, %v7023_v43  ;;  %v1455_v46 = vsub.f32 %v7025_v2, %v6174_v29  ;;  %3723 = vpow2.f32 %v1677_v55  ;;  %v1583_v10 = vmul.f32 %v5916_v44, %v1514_v33  ;;  %v7034_v55 = vld [vmem:[#allocation123_spill] sm:$0xff] }
 0x2f3   :  { %v3266_v22 = vsel %vm3243_vm15, %v2068_v35, %v3099_v23  ;;  %v1452_v35 = vsub.f32 %v7024_v5, %v6174_v29  ;;  %v2076_v20 = vmul.f32 %v3712_v37, %v7028_v17  ;;  %v1582_v56 = vmul.f32 %v5916_v44, %v1513_v60  ;;  %v7035_v33 = vld [vmem:[#allocation19_spill] sm:$0xff]  ;;  %v7036_v60 = vld [vmem:[#allocation124_spill] sm:$0xff] }
 0x2f4   :  { %3329 = vst [vmem:[#allocation2 + $0xb0] sm:$0xff] %v3266_v22  ;;  %v3105_v49 = vpop.permute.xlu0 %3104  ;;  %v1516_v22 = vmul.f32 %v1453_v27, %v1453_v27  ;;  %v1687_v34 = vmul.f32 1.442695, %v1583_v10  ;;  %v1520_v57 = vmul.f32 %v1457_v28, %v1457_v28  ;;  %v7033_v27 = vld [vmem:[#allocation20_spill] sm:$0xff]  ;;  %v1458_v5 = vsub.f32 %v7036_v60, %v6174_v29  ;;  %v7037_v37 = vld [vmem:[#allocation23_spill] sm:$0xff] }
 0x2f5   :  { %v3269_v52 = vsel %vm3243_vm15, %v2071_v16, %v3105_v49  ;;  %v1683_v16 = vmul.f32 1.442695, %v1581_v6  ;;  %v1681_v49 = vmul.f32 1.442695, %v1580_v36  ;;  %v1515_v19 = vmul.f32 %v1452_v35, %v1452_v35 }
 0x2f6   :  { %v3103_v32 = vpop.permute.xlu1 %3102  ;;  %3332 = vst [vmem:[#allocation2 + $0xc8] sm:$0xff] %v3269_v52  ;;  %v1518_v52 = vmul.f32 %v1455_v46, %v1455_v46  ;;  %v1585_v48 = vmul.f32 %v5916_v44, %v1516_v22  ;;  %v1685_v4 = vmul.f32 1.442695, %v1582_v56  ;;  %v1459_v6 = vsub.f32 %v7034_v55, %v6174_v29  ;;  %v7048_v55 = vld [vmem:[#allocation26_spill] sm:$0xff] }
 0x2f7   :  { %v3268_v53 = vsel %vm3243_vm15, %v2070_v26, %v3103_v32  ;;  %v3714_v26 = vpop.eup %3713  ;;  %3725 = vpow2.f32 %v1683_v16  ;;  %v1584_v61 = vmul.f32 %v5916_v44, %v1515_v19  ;;  %v7039_v16 = vld [vmem:[#allocation22_spill] sm:$0xff] }
 0x2f8   :  { %3331 = vst [vmem:[#allocation2 + $0xc0] sm:$0xff] %v3268_v53  ;;  %v3109_v63 = vpop.permute.xlu0 %3108  ;;  %v3716_v31 = vpop.eup %3715  ;;  %v1517_v53 = vmul.f32 %v1454_v41, %v1454_v41  ;;  %3727 = vpow2.f32 %v1681_v49  ;;  %v1587_v62 = vmul.f32 %v5916_v44, %v1518_v52  ;;  %v1691_v9 = vmul.f32 1.442695, %v1585_v48 }
 0x2f9   :  { %v3271_v40 = vsel %vm3243_vm15, %v2073_v39, %v3109_v63  ;;  %v2079_v39 = vmul.f32 %v3714_v26, %v7030_v24  ;;  %v3718_v14 = vpop.eup %3717  ;;  %3729 = vpow2.f32 %v1687_v34  ;;  %v1689_v36 = vmul.f32 1.442695, %v1584_v61  ;;  %v7045_v61 = vld [vmem:[#allocation131_spill] sm:$0xff] }
 0x2fa   :  { %v3107_v8 = vpop.permute.xlu1 %3106  ;;  %3334 = vst [vmem:[#allocation2 + $0xd8] sm:$0xff] %v3271_v40  ;;  %v3720_v51 = vpop.eup %3719  ;;  %v1586_v58 = vmul.f32 %v5916_v44, %v1517_v53  ;;  %v2081_v54 = vmul.f32 %v3718_v14, %v7033_v27  ;;  %3731 = vpow2.f32 %v1685_v4  ;;  %v1695_v59 = vmul.f32 1.442695, %v1587_v62 }
 0x2fb   :  { %v3270_v50 = vsel %vm3243_vm15, %v2072_v45, %v3107_v8  ;;  %v2078_v45 = vmul.f32 %v3716_v31, %v7032_v25  ;;  %v2080_v43 = vmul.f32 %v3720_v51, %v7035_v33  ;;  %3733 = vpow2.f32 %v1691_v9  ;;  %v7041_v31 = vld [vmem:[#allocation128_spill] sm:$0xff]  ;;  %v7044_v25 = vld [vmem:[#allocation127_spill] sm:$0xff]  ;;  %v7046_v9 = vld [vmem:[#allocation130_spill] sm:$0xff] }
 0x2fc   :  { %3333 = vst [vmem:[#allocation2 + $0xd0] sm:$0xff] %v3270_v50  ;;  %v3113_v18 = vpop.permute.xlu0 %3112  ;;  %v1693_v46 = vmul.f32 1.442695, %v1586_v58  ;;  %v1522_v41 = vmul.f32 %v1459_v6, %v1459_v6  ;;  %3735 = vpow2.f32 %v1689_v36 }
 0x2fd   :  { %v3273_v38 = vsel %vm3243_vm15, %v2075_v30, %v3113_v18  ;;  %v1519_v30 = vmul.f32 %v1456_v7, %v1456_v7  ;;  %v3722_v18 = vpop.eup %3721  ;;  %3737 = vpow2.f32 %v1695_v59 }
 0x2fe   :  { %v3111_v0 = vpop.permute.xlu1 %3110  ;;  %3336 = vst [vmem:[#allocation2 + $0xe8] sm:$0xff] %v3273_v38  ;;  %v2083_v22 = vmul.f32 %v3722_v18, %v7037_v37  ;;  %3739 = vpow2.f32 %v1693_v46  ;;  %v1591_v28 = vmul.f32 %v5916_v44, %v1522_v41  ;;  %v7049_v46 = vld [vmem:[#allocation134_spill] sm:$0xff]  ;;  %v7050_v37 = vld [vmem:[#allocation29_spill] sm:$0xff] }
 0x2ff   :  { %v3272_v23 = vsel %vm3243_vm15, %v2074_v1, %v3111_v0  ;;  %v3724_v0 = vpop.eup %3723  ;;  %v1588_v15 = vmul.f32 %v5916_v44, %v1519_v30 }
 0x300   :  { %3335 = vst [vmem:[#allocation2 + $0xe0] sm:$0xff] %v3272_v23  ;;  %v3117_v47 = vpop.permute.xlu0 %3116  ;;  %v1589_v23 = vmul.f32 %v5916_v44, %v1520_v57  ;;  %v2082_v10 = vmul.f32 %v3724_v0, %v7039_v16  ;;  %v7047_v57 = vld [vmem:[#allocation27_spill] sm:$0xff]  ;;  %v7052_v16 = vld [vmem:[#allocation28_spill] sm:$0xff] }
 0x301   :  { %v3275_v42 = vsel %vm3243_vm15, %v2077_v13, %v3117_v47  ;;  %v1461_v13 = vsub.f32 %v7038_v3, %v6174_v29  ;;  %v7040_v47 = vld [vmem:[#allocation125_spill] sm:$0xff]  ;;  %v3726_v19 = vpop.eup %3725  ;;  %v1697_v11 = vmul.f32 1.442695, %v1588_v15 }
 0x302   :  { %v3115_v21 = vpop.permute.xlu1 %3114  ;;  %3338 = vst [vmem:[#allocation2 + $0xf8] sm:$0xff] %v3275_v42  ;;  %v1460_v26 = vsub.f32 %v7040_v47, %v6174_v29  ;;  %v1699_v52 = vmul.f32 1.442695, %v1589_v23  ;;  %v7042_v29 = vld [vmem:[#allocation25_spill] sm:$0xff] }
 0x303   :  { %v3274_v32 = vsel %vm3243_vm15, %v2076_v20, %v3115_v21  ;;  %v1521_v20 = vmul.f32 %v1458_v5, %v1458_v5  ;;  %v3728_v21 = vpop.eup %3727  ;;  %v2085_v53 = vmul.f32 %v3726_v19, %v7042_v29  ;;  %v1524_v24 = vmul.f32 %v1461_v13, %v1461_v13  ;;  %v7051_v3 = vld [vmem:[#allocation133_spill] sm:$0xff] }
 0x304   :  { %3337 = vst [vmem:[#allocation2 + $0xf0] sm:$0xff] %v3274_v32  ;;  %v3121_v63 = vpop.permute.xlu0 %3120  ;;  %v6432_v32 = vld [vmem:[%s6534_s1] ss:$0 sm:$0xff]  ;;  %v1523_v7 = vmul.f32 %v1460_v26, %v1460_v26  ;;  %v3730_v4 = vpop.eup %3729  ;;  %3741 = vpow2.f32 %v1699_v52  ;;  %s3842_s1 = smov [#allocation2]  }
 0x305   :  { %v3277_v40 = vsel %vm3243_vm15, %v2079_v39, %v3121_v63  ;;  %v1463_v48 = vsub.f32 %v7041_v31, %v6432_v32  ;;  %v7043_v39 = vld [vmem:[#allocation24_spill] sm:$0xff]  ;;  %v1590_v12 = vmul.f32 %v5916_v44, %v1521_v20  ;;  %v3732_v62 = vpop.eup %3731  ;;  %v1464_v58 = vsub.f32 %v7046_v9, %v6432_v32  ;;  %s3375_s5 = sshll.u32 %s3842_s1, 4  ;;  %s3376_s5 = int_to_ptr.vmem [resolvable:$true] %s3375_s5 }
 0x306   :  { %v3119_v8 = vpop.permute.xlu1 %3118  ;;  %3340 = vst [vmem:[#allocation2 + $0x108] sm:$0xff] %v3277_v40  ;;  %v2084_v14 = vmul.f32 %v3728_v21, %v7043_v39  ;;  %v1465_v40 = vsub.f32 %v7045_v61, %v6432_v32  ;;  %v2087_v27 = vmul.f32 %v3730_v4, %v7047_v57  ;;  %3743 = vpow2.f32 %v1697_v11  ;;  %v7054_v11 = vld [vmem:[#allocation138_spill] sm:$0xff]  ;;  %v7058_v57 = vld [vmem:[#allocation140_spill] sm:$0xff]  ;;  %s3815_s6 = scalar_lea.vmem %s3376_s5, 8064  ;;  %p3820_p1 = scmp.lt.s32.totalorder %s3376_s5, %s3376_s5 }
 0x307   :  { %v3276_v50 = vsel %vm3243_vm15, %v2078_v45, %v3119_v8  ;;  %v1462_v45 = vsub.f32 %v7044_v25, %v6432_v32  ;;  %v1593_v30 = vmul.f32 %v5916_v44, %v1524_v24  ;;  %v2086_v6 = vmul.f32 %v3732_v62, %v7048_v55  ;;  %v7055_v24 = vld [vmem:[#allocation30_spill] sm:$0xff]  ;;  %v7057_v62 = vld [vmem:[#allocation33_spill] sm:$0xff]  ;;  %p3816_p0 = scmp.ne.s32.totalorder %s3376_s5, %s3815_s6  ;;  %p3821_p2 = scmp.lt.s32.totalorder %s3815_s6, %s3815_s6 }
 0x308   :  { %3339 = vst [vmem:[#allocation2 + $0x100] sm:$0xff] %v3276_v50  ;;  %v3125_v1 = vpop.permute.xlu0 %3124  ;;  %v1526_v50 = vmul.f32 %v1463_v48, %v1463_v48  ;;  %v1592_v18 = vmul.f32 %v5916_v44, %v1523_v7  ;;  %v1467_v23 = vsub.f32 %v7049_v46, %v6432_v32  ;;  %v1466_v13 = vsub.f32 %v7051_v3, %v6432_v32  ;;  %v7053_v48 = vld [vmem:[#allocation31_spill] sm:$0xff]  ;;  %v7056_v7 = vld [vmem:[#allocation137_spill] sm:$0xff] }
 0x309   :  { %v3279_v35 = vsel %vm3243_vm15, %v2081_v54, %v3125_v1  ;;  %v1703_v54 = vmul.f32 1.442695, %v1591_v28  ;;  %v1701_v1 = vmul.f32 1.442695, %v1590_v12  ;;  %v1525_v36 = vmul.f32 %v1462_v45, %v1462_v45  ;;  %v7063_v3 = vld [vmem:[#allocation143_spill] sm:$0xff]  ;;  %p3822_p3 = por %p3821_p2, %p3820_p1 }
 0x30a   :  { %v3123_v38 = vpop.permute.xlu1 %3122  ;;  %3342 = vst [vmem:[#allocation2 + $0x118] sm:$0xff] %v3279_v35  ;;  %v1528_v35 = vmul.f32 %v1465_v40, %v1465_v40  ;;  %v1595_v59 = vmul.f32 %v5916_v44, %v1526_v50  ;;  %v1707_v41 = vmul.f32 1.442695, %v1593_v30  ;;  %v1705_v47 = vmul.f32 1.442695, %v1592_v18 }
 0x30b   :  { %v3278_v2 = vsel %vm3243_vm15, %v2080_v43, %v3123_v38  ;;  %v3734_v43 = vpop.eup %3733  ;;  %3745 = vpow2.f32 %v1703_v54  ;;  %v1594_v26 = vmul.f32 %v5916_v44, %v1525_v36  ;;  %v1530_v31 = vmul.f32 %v1467_v23, %v1467_v23  ;;  %v7059_v54 = vld [vmem:[#allocation32_spill] sm:$0xff]  ;;  %v7062_v23 = vld [vmem:[#allocation34_spill] sm:$0xff]  ;;  %p3823_p4 = pnand %p3822_p3, %p3816_p0 }
 0x30c   :  { %3341 = vst [vmem:[#allocation2 + $0x110] sm:$0xff] %v3278_v2  ;;  %v3129_v17 = vpop.permute.xlu0 %3128  ;;  %v3736_v0 = vpop.eup %3735  ;;  %v1527_v2 = vmul.f32 %v1464_v58, %v1464_v58  ;;  %3747 = vpow2.f32 %v1701_v1  ;;  %v1597_v19 = vmul.f32 %v5916_v44, %v1528_v35  ;;  %v1711_v21 = vmul.f32 1.442695, %v1595_v59 }
 0x30d   :  { %v3281_v49 = vsel %vm3243_vm15, %v2083_v22, %v3129_v17  ;;  %v2089_v22 = vmul.f32 %v3734_v43, %v7050_v37  ;;  %v3738_v15 = vpop.eup %3737  ;;  %3749 = vpow2.f32 %v1707_v41  ;;  %v1469_v28 = vsub.f32 %v7054_v11, %v6432_v32 }
 0x30e   :  { %v3127_v56 = vpop.permute.xlu1 %3126  ;;  %3344 = vst [vmem:[#allocation2 + $0x128] sm:$0xff] %v3281_v49  ;;  %v3740_v20 = vpop.eup %3739  ;;  %v1596_v52 = vmul.f32 %v5916_v44, %v1527_v2  ;;  %v2091_v29 = vmul.f32 %v3738_v15, %v7053_v48  ;;  %3751 = vpow2.f32 %v1705_v47  ;;  %v1709_v12 = vmul.f32 1.442695, %v1594_v26  ;;  %v7064_v26 = vld [vmem:[#allocation37_spill] sm:$0xff] }
 0x30f   :  { %v3280_v42 = vsel %vm3243_vm15, %v2082_v10, %v3127_v56  ;;  %v2088_v10 = vmul.f32 %v3736_v0, %v7052_v16  ;;  %v2090_v39 = vmul.f32 %v3740_v20, %v7055_v24  ;;  %v1468_v25 = vsub.f32 %v7056_v7, %v6432_v32  ;;  %v7067_v7 = vld [vmem:[#allocation38_spill] sm:$0xff] }
 0x310   :  { %3343 = vst [vmem:[#allocation2 + $0x120] sm:$0xff] %v3280_v42  ;;  %v3133_v34 = vpop.permute.xlu0 %3132  ;;  %v1715_v4 = vmul.f32 1.442695, %v1597_v19  ;;  %3753 = vpow2.f32 %v1711_v21  ;;  %v1713_v40 = vmul.f32 1.442695, %v1596_v52  ;;  %v1532_v58 = vmul.f32 %v1469_v28, %v1469_v28 }
 0x311   :  { %v3283_v63 = vsel %vm3243_vm15, %v2085_v53, %v3133_v34  ;;  %v1529_v53 = vmul.f32 %v1466_v13, %v1466_v13  ;;  %v3742_v34 = vpop.eup %3741  ;;  %3755 = vpow2.f32 %v1709_v12  ;;  %v1472_v13 = vsub.f32 %v7063_v3, %v6432_v32 }
 0x312   :  { %v3131_v51 = vpop.permute.xlu1 %3130  ;;  %3346 = vst [vmem:[#allocation2 + $0x138] sm:$0xff] %v3283_v63  ;;  %v2093_v50 = vmul.f32 %v3742_v34, %v7057_v62  ;;  %3757 = vpow2.f32 %v1715_v4  ;;  %v1601_v2 = vmul.f32 %v5916_v44, %v1532_v58  ;;  %v7068_v62 = vld [vmem:[#allocation41_spill] sm:$0xff] }
 0x313   :  { %v3282_v8 = vsel %vm3243_vm15, %v2084_v14, %v3131_v51  ;;  %v3744_v51 = vpop.eup %3743  ;;  %v1598_v9 = vmul.f32 %v5916_v44, %v1529_v53  ;;  %3759 = vpow2.f32 %v1713_v40 }
 0x314   :  { %3345 = vst [vmem:[#allocation2 + $0x130] sm:$0xff] %v3282_v8  ;;  %v3137_v33 = vpop.permute.xlu0 %3136  ;;  %v1599_v8 = vmul.f32 %v5916_v44, %v1530_v31  ;;  %v2092_v30 = vmul.f32 %v3744_v51, %v7059_v54 }
 0x315   :  { %v3285_v60 = vsel %vm3243_vm15, %v2087_v27, %v3137_v33  ;;  %v1471_v27 = vsub.f32 %v7058_v57, %v6432_v32  ;;  %v7060_v33 = vld [vmem:[#allocation139_spill] sm:$0xff]  ;;  %v3746_v36 = vpop.eup %3745  ;;  %v1717_v59 = vmul.f32 1.442695, %v1598_v9  ;;  %v7069_v9 = vld [vmem:[#allocation40_spill] sm:$0xff] }
 0x316   :  { %v3135_v5 = vpop.permute.xlu1 %3134  ;;  %3348 = vst [vmem:[#allocation2 + $0x148] sm:$0xff] %v3285_v60  ;;  %v1470_v43 = vsub.f32 %v7060_v33, %v6432_v32  ;;  %v1719_v35 = vmul.f32 1.442695, %v1599_v8  ;;  %v7070_v33 = vld [vmem:[#allocation43_spill] sm:$0xff] }
 0x317   :  { %v3284_v38 = vsel %vm3243_vm15, %v2086_v6, %v3135_v5  ;;  %v1531_v6 = vmul.f32 %v1468_v25, %v1468_v25  ;;  %v3748_v5 = vpop.eup %3747  ;;  %v1534_v46 = vmul.f32 %v1471_v27, %v1471_v27 }
 0x318   :  { %3347 = vst [vmem:[#allocation2 + $0x140] sm:$0xff] %v3284_v38  ;;  %v3141_v17 = vpop.permute.xlu0 %3140  ;;  %v7061_v38 = vld [vmem:[#allocation35_spill] sm:$0xff]  ;;  %v2094_v37 = vmul.f32 %v3748_v5, %v7062_v23  ;;  %v1533_v41 = vmul.f32 %v1470_v43, %v1470_v43  ;;  %3761 = vpow2.f32 %v1719_v35 }
 0x319   :  { %v3287_v49 = vsel %vm3243_vm15, %v2089_v22, %v3141_v17  ;;  %v2095_v0 = vmul.f32 %v3746_v36, %v7061_v38  ;;  %v1600_v15 = vmul.f32 %v5916_v44, %v1531_v6  ;;  %v3750_v17 = vpop.eup %3749  ;;  %3763 = vpow2.f32 %v1717_v59  ;;  %v7072_v59 = vld [vmem:[#allocation45_spill] sm:$0xff] }
 0x31a   :  { %v3139_v56 = vpop.permute.xlu1 %3138  ;;  %3350 = vst [vmem:[#allocation2 + $0x158] sm:$0xff] %v3287_v49  ;;  %v3752_v47 = vpop.eup %3751  ;;  %v2097_v49 = vmul.f32 %v3750_v17, %v7064_v26  ;;  %v1603_v19 = vmul.f32 %v5916_v44, %v1534_v46  ;;  %v1602_v48 = vmul.f32 %v5916_v44, %v1533_v41  ;;  %v7073_v46 = vld [vmem:[#allocation44_spill] sm:$0xff]  ;;  %v7075_v17 = vld [vmem:[#allocation46_spill] sm:$0xff] }
 0x31b   :  { %v3286_v42 = vsel %vm3243_vm15, %v2088_v10, %v3139_v56  ;;  %v1723_v56 = vmul.f32 1.442695, %v1601_v2  ;;  %v3754_v32 = vpop.eup %3753  ;;  %v1721_v31 = vmul.f32 1.442695, %v1600_v15 }
 0x31c   :  { %3349 = vst [vmem:[#allocation2 + $0x150] sm:$0xff] %v3286_v42  ;;  %v3145_v14 = vpop.permute.xlu0 %3144  ;;  %v7065_v42 = vld [vmem:[#allocation36_spill] sm:$0xff]  ;;  %v3756_v24 = vpop.eup %3755  ;;  %v1727_v12 = vmul.f32 1.442695, %v1603_v19  ;;  %v1725_v51 = vmul.f32 1.442695, %v1602_v48 }
 0x31d   :  { %v3289_v45 = vsel %vm3243_vm15, %v2091_v29, %v3145_v14  ;;  %v2096_v21 = vmul.f32 %v3752_v47, %v7065_v42  ;;  %v1535_v29 = vmul.f32 %v1472_v13, %v1472_v13  ;;  %v3758_v34 = vpop.eup %3757  ;;  %3765 = vpow2.f32 %v1723_v56  ;;  %v7076_v42 = vld [vmem:[#allocation48_spill] sm:$0xff] }
 0x31e   :  { %v3143_v63 = vpop.permute.xlu1 %3142  ;;  %3352 = vst [vmem:[#allocation2 + $0x168] sm:$0xff] %v3289_v45  ;;  %v2098_v25 = vmul.f32 %v3756_v24, %v7067_v7  ;;  %3767 = vpow2.f32 %v1721_v31 }
 0x31f   :  { %v3288_v61 = vsel %vm3243_vm15, %v2090_v39, %v3143_v63  ;;  %v7066_v39 = vld [vmem:[#allocation39_spill] sm:$0xff]  ;;  %v3760_v63 = vpop.eup %3759  ;;  %v1604_v4 = vmul.f32 %v5916_v44, %v1535_v29  ;;  %3769 = vpow2.f32 %v1727_v12 }
 0x320   :  { %3351 = vst [vmem:[#allocation2 + $0x160] sm:$0xff] %v3288_v61  ;;  %v3149_v55 = vpop.permute.xlu0 %3148  ;;  %v2099_v14 = vmul.f32 %v3754_v32, %v7066_v39  ;;  %v2100_v58 = vmul.f32 %v3760_v63, %v7069_v9  ;;  %3771 = vpow2.f32 %v1725_v51 }
 0x321   :  { %v3291_v1 = vsel %vm3243_vm15, %v2093_v50, %v3149_v55  ;;  %v2101_v50 = vmul.f32 %v3758_v34, %v7068_v62  ;;  %v1729_v54 = vmul.f32 1.442695, %v1604_v4 }
 0x322   :  { %v3147_v18 = vpop.permute.xlu1 %3146  ;;  %3354 = vst [vmem:[#allocation2 + $0x178] sm:$0xff] %v3291_v1  ;;  %v3762_v27 = vpop.eup %3761  ;;  %v7071_v1 = vld [vmem:[#allocation42_spill] sm:$0xff] }
 0x323   :  { %v3290_v60 = vsel %vm3243_vm15, %v2092_v30, %v3147_v18  ;;  %v3764_v44 = vpop.eup %3763  ;;  %v2103_v43 = vmul.f32 %v3762_v27, %v7070_v33  ;;  %3773 = vpow2.f32 %v1729_v54 }
 0x324   :  { %3353 = vst [vmem:[#allocation2 + $0x170] sm:$0xff] %v3290_v60  ;;  %v3153_v22 = vpop.permute.xlu0 %3152  ;;  %v2102_v18 = vmul.f32 %v3764_v44, %v7071_v1 }
 0x325   :  { %v3293_v16 = vsel %vm3243_vm15, %v2095_v0, %v3153_v22 }
 0x326   :  { %v3151_v10 = vpop.permute.xlu1 %3150  ;;  %3356 = vst [vmem:[#allocation2 + $0x188] sm:$0xff] %v3293_v16  ;;  %v7074_v16 = vld [vmem:[#allocation47_spill] sm:$0xff] }
 0x327   :  { %v3292_v20 = vsel %vm3243_vm15, %v2094_v37, %v3151_v10  ;;  %v3766_v35 = vpop.eup %3765 }
 0x328   :  { %3355 = vst [vmem:[#allocation2 + $0x180] sm:$0xff] %v3292_v20  ;;  %v3157_v52 = vpop.permute.xlu0 %3156  ;;  %v3768_v0 = vpop.eup %3767  ;;  %v2105_v2 = vmul.f32 %v3766_v35, %v7072_v59 }
 0x329   :  { %v3295_v53 = vsel %vm3243_vm15, %v2097_v49, %v3157_v52  ;;  %v2104_v23 = vmul.f32 %v3768_v0, %v7073_v46  ;;  %v3770_v41 = vpop.eup %3769 }
 0x32a   :  { %v3155_v11 = vpop.permute.xlu1 %3154  ;;  %3358 = vst [vmem:[#allocation2 + $0x198] sm:$0xff] %v3295_v53  ;;  %v3772_v13 = vpop.eup %3771  ;;  %v2107_v10 = vmul.f32 %v3770_v41, %v7074_v16 }
 0x32b   :  { %v3294_v28 = vsel %vm3243_vm15, %v2096_v21, %v3155_v11  ;;  %v2106_v20 = vmul.f32 %v3772_v13, %v7075_v17 }
 0x32c   :  { %3357 = vst [vmem:[#allocation2 + $0x190] sm:$0xff] %v3294_v28  ;;  %v3161_v45 = vpop.permute.xlu0 %3160 }
 0x32d   :  { %v3297_v61 = vsel %vm3243_vm15, %v2099_v14, %v3161_v45  ;;  %v3774_v19 = vpop.eup %3773 }
 0x32e   :  { %v3159_v40 = vpop.permute.xlu1 %3158  ;;  %3360 = vst [vmem:[#allocation2 + $0x1a8] sm:$0xff] %v3297_v61  ;;  %v2108_v21 = vmul.f32 %v3774_v19, %v7076_v42 }
 0x32f   :  { %v3296_v8 = vsel %vm3243_vm15, %v2098_v25, %v3159_v40 }
 0x330   :  { %3359 = vst [vmem:[#allocation2 + $0x1a0] sm:$0xff] %v3296_v8  ;;  %v3165_v57 = vpop.permute.xlu0 %3164 }
 0x331   :  { %v3299_v30 = vsel %vm3243_vm15, %v2101_v50, %v3165_v57 }
 0x332   :  { %v3163_v55 = vpop.permute.xlu1 %3162  ;;  %3362 = vst [vmem:[#allocation2 + $0x1b8] sm:$0xff] %v3299_v30 }
 0x333   :  { %v3298_v6 = vsel %vm3243_vm15, %v2100_v58, %v3163_v55 }
 0x334   :  { %3361 = vst [vmem:[#allocation2 + $0x1b0] sm:$0xff] %v3298_v6  ;;  %v3169_v36 = vpop.permute.xlu0 %3168 }
 0x335   :  { %v3301_v60 = vsel %vm3243_vm15, %v2103_v43, %v3169_v36 }
 0x336   :  { %v3167_v5 = vpop.permute.xlu1 %3166  ;;  %3364 = vst [vmem:[#allocation2 + $0x1c8] sm:$0xff] %v3301_v60 }
 0x337   :  { %v3300_v38 = vsel %vm3243_vm15, %v2102_v18, %v3167_v5 }
 0x338   :  { %3363 = vst [vmem:[#allocation2 + $0x1c0] sm:$0xff] %v3300_v38  ;;  %v3173_v37 = vpop.permute.xlu0 %3172 }
 0x339   :  { %v3303_v22 = vsel %vm3243_vm15, %v2105_v2, %v3173_v37 }
 0x33a   :  { %v3171_v15 = vpop.permute.xlu1 %3170  ;;  %3366 = vst [vmem:[#allocation2 + $0x1d8] sm:$0xff] %v3303_v22 }
 0x33b   :  { %v3302_v3 = vsel %vm3243_vm15, %v2104_v23, %v3171_v15 }
 0x33c   :  { %3365 = vst [vmem:[#allocation2 + $0x1d0] sm:$0xff] %v3302_v3  ;;  %v3177_v47 = vpop.permute.xlu0 %3176 }
 0x33d   :  { %v3305_v26 = vsel %vm3243_vm15, %v2107_v10, %v3177_v47 }
 0x33e   :  { %v3175_v49 = vpop.permute.xlu1 %3174  ;;  %3368 = vst [vmem:[#allocation2 + $0x1e8] sm:$0xff] %v3305_v26 }
 0x33f   :  { %v3304_v56 = vsel %vm3243_vm15, %v2106_v20, %v3175_v49 }
 0x340   :  { %3367 = vst [vmem:[#allocation2 + $0x1e0] sm:$0xff] %v3304_v56 }
 0x342   :  { %v3179_v52 = vpop.permute.xlu1 %3178 }
 0x343   :  { %v3306_v32 = vsel %vm3243_vm15, %v2108_v21, %v3179_v52 }
 0x344   :  { %3369 = vst [vmem:[#allocation2 + $0x1f0] sm:$0xff] %v3306_v32 }
 0x345   :  { %3826 = shalt.err (!%p3823_p4)
}
 0x346   :  { %s3827_s9 = scalar_lea.hbm %s6536_s3, 8064 }
 0x347   :  { %p3828_p5 = scmp.ne.s32.totalorder %s6536_s3, %s3827_s9  ;;  %p3831_p6 = scmp.lt.u32.totalorder %s3827_s9, %s6536_s3 }
 0x349   :  { %p3833_p7 = pnand %p3831_p6, %p3828_p5 }
 0x34b   :  { %3836 = shalt.err (!%p3833_p7)
}
 0x34c   :  { %s3843_s14 = smov 128   ;;  %s3844_s15 = smov 8  }
 0x34d   :  { %3381 = dma.vmem_to_hbm [thread:$0]  %s3376_s5, 8064, %s6536_s3, [#allocation3], %s3843_s14, %s3843_s14, %s3844_s15  }
 0x34e   :  { %3837 = dma.done.wait [#allocation3], 8064  }
 0x34f   :  { %3838 = vsyncadd [#allocation3], 4294959232 }
 0x350   :  { %3385 = vsyncpa [#allocation3], 1 }

</bundles_post_ra>
